<compile_context>
chip_gen: v6e
topology: v6e:2x2x1
jax: 0.10.0
libtpu: 0.0.40
codegen_flags: <defaults>
</compile_context>

<pallas_src>
import functools
import math

import jax
import jax.numpy as jnp
from jax.experimental import pallas as pl
from jax.experimental.pallas import tpu as pltpu

BN_EPS = 1e-5


# ------------------------------ BlockSpec helpers --------------------------- #

def _batched_spec(a):
    """Per-batch block covering the full trailing dims of array `a`."""
    zeros = (0,) * (a.ndim - 1)
    return pl.BlockSpec((1,) + a.shape[1:], lambda i, z=zeros: (i,) + z)


def _full_spec(a):
    """Whole-array block (weights / biases), same block at every grid step."""
    zeros = (0,) * a.ndim
    return pl.BlockSpec(a.shape, lambda i, z=zeros: z)


_PARALLEL = pltpu.CompilerParams(dimension_semantics=("parallel",))


# ------------------------------- Pallas kernels ----------------------------- #

def _stem_kernel(cols_ref, w_ref, b_ref, o_ref):
    """Stem 3x3/s2 conv as a single im2col matmul + folded-BN bias + ReLU6.

    cols_ref: (1, Ho*Wo, 9*Cin) im2col patches (built in the XLA wrapper).
    w_ref:    (9*Cin, Cout) bf16 (BN scale folded), rows ordered (kh*3+kw)*Cin + c.
    """
    y = jnp.dot(cols_ref[0].astype(jnp.bfloat16), w_ref[...],
                preferred_element_type=jnp.float32) + b_ref[...]
    o_ref[0, :, :] = jnp.clip(y, 0.0, 6.0)


def _ir_s1_kernel(*refs, H, W, has_expand, use_res):
    """Fused InvertedResidual, stride 1: [expand 1x1+ReLU6] -> DW3x3+ReLU6 -> proj 1x1 (+res)."""
    if has_expand:
        (x_ref, we_ref, be_ref, wd_ref, bd_ref, wp_ref, bp_ref,
         o_ref, pad_sc, dw_sc) = refs
    else:
        (x_ref, wd_ref, bd_ref, wp_ref, bp_ref, o_ref, pad_sc, dw_sc) = refs

    hidden = pad_sc.shape[-1]

    # zero-padded (pad=1) hidden activation lives entirely in VMEM scratch
    pad_sc[...] = jnp.zeros_like(pad_sc)

    if has_expand:
        h = jnp.clip(jnp.dot(x_ref[0].astype(jnp.bfloat16), we_ref[...],
                             preferred_element_type=jnp.float32) + be_ref[...],
                     0.0, 6.0)
        for i in range(H):                                   # write rows into pad interior
            pad_sc[1 + i, pl.ds(1, W), :] = h[i * W:(i + 1) * W, :]
    else:
        for i in range(H):
            pad_sc[1 + i, pl.ds(1, W), :] = x_ref[0, pl.ds(i * W, W), :]

    # depthwise 3x3, stride 1: 9 whole-volume VPU multiply-adds + BN bias + ReLU6
    acc = jnp.zeros((H, W, hidden), jnp.float32)
    for kh in range(3):
        for kw in range(3):
            acc = acc + (pad_sc[pl.ds(kh, H), pl.ds(kw, W), :]
                         * wd_ref[pl.ds(kh * 3 + kw, 1), :])
    acc = jnp.clip(acc + bd_ref[...], 0.0, 6.0)
    for i in range(H):                                       # repack to (H*W, hidden) for MXU
        dw_sc[pl.ds(i * W, W), :] = acc[i]

    # linear bottleneck projection (no activation), fused residual add
    y = jnp.dot(dw_sc[...].astype(jnp.bfloat16), wp_ref[...],
                preferred_element_type=jnp.float32) + bp_ref[...]
    if use_res:
        y = y + x_ref[0]
    o_ref[0, :, :] = y


def _ir_s2_kernel(*refs, H, W, has_expand):
    """Fused InvertedResidual, stride 2 (F.pad(0,1,0,1) + DW stride 2 computed in-kernel).

    xe_ref/xo_ref are the even/odd-column phases of the unpadded input, flattened to
    (1, H*(W//2), Cin); padding happens after the expand (in hidden space) via the
    zero-initialised phase scratches, matching PyTorch exactly.
    """
    if has_expand:
        (xe_ref, xo_ref, we_ref, be_ref, wd_ref, bd_ref, wp_ref, bp_ref,
         o_ref, pe_sc, po_sc, dw_sc) = refs
    else:
        (xe_ref, xo_ref, wd_ref, bd_ref, wp_ref, bp_ref,
         o_ref, pe_sc, po_sc, dw_sc) = refs

    Wc = W // 2
    Ho, Wo = H // 2, W // 2

    pe_sc[...] = jnp.zeros_like(pe_sc)                # (H+1, Wc+1, hidden): pad row/col = 0
    po_sc[...] = jnp.zeros_like(po_sc)                # (H+1, Wc,   hidden): pad row = 0

    def expand_phase(x_phase_ref, dst_sc):
        if has_expand:
            h = jnp.clip(jnp.dot(x_phase_ref[0].astype(jnp.bfloat16), we_ref[...],
                                 preferred_element_type=jnp.float32) + be_ref[...],
                         0.0, 6.0)
            for i in range(H):
                dst_sc[i, pl.ds(0, Wc), :] = h[i * Wc:(i + 1) * Wc, :]
        else:
            for i in range(H):
                dst_sc[i, pl.ds(0, Wc), :] = x_phase_ref[0, pl.ds(i * Wc, Wc), :]

    expand_phase(xe_ref, pe_sc)
    expand_phase(xo_ref, po_sc)

    # depthwise 3x3 at stride 2: taps are contiguous slices of the parity phases
    bd = bd_ref[...]
    hidden = bd.shape[-1]
    for i in range(Ho):
        acc = jnp.zeros((Wo, hidden), jnp.float32)
        for kh in range(3):
            for kw in range(3):
                if kw % 2 == 0:
                    tap = pe_sc[2 * i + kh, pl.ds(kw // 2, Wo), :]
                else:
                    tap = po_sc[2 * i + kh, pl.ds(0, Wo), :]
                acc = acc + tap * wd_ref[pl.ds(kh * 3 + kw, 1), :]
        dw_sc[pl.ds(i * Wo, Wo), :] = jnp.clip(acc + bd, 0.0, 6.0)

    y = jnp.dot(dw_sc[...].astype(jnp.bfloat16), wp_ref[...],
                preferred_element_type=jnp.float32) + bp_ref[...]
    o_ref[0, :, :] = y


# ------------------------------ kernel wrappers ----------------------------- #

def stem_conv(x, p):
    """ConvBNReLU(in, out, kernel=3, stride=2): F.pad(0,1,0,1) + conv(pad=0) + BN + ReLU6."""
    n, h, w, cin = x.shape
    cout = p['b'].shape[-1]
    ho, wo = h // 2, w // 2
    # XLA-side im2col on the tiny input: 9 strided slices, concat on channel.
    xp = jnp.pad(x, ((0, 0), (0, 1), (0, 1), (0, 0)))
    taps = [xp[:, kh:kh + 2 * ho:2, kw:kw + 2 * wo:2, :]
            for kh in range(3) for kw in range(3)]
    cols = jnp.concatenate(taps, axis=-1).reshape(n, ho * wo, 9 * cin)
    out = pl.pallas_call(
        _stem_kernel,
        grid=(n,),
        in_specs=[_batched_spec(cols), _full_spec(p['w']), _full_spec(p['b'])],
        out_specs=pl.BlockSpec((1, ho * wo, cout), lambda i: (i, 0, 0)),
        out_shape=jax.ShapeDtypeStruct((n, ho * wo, cout), jnp.float32),
        compiler_params=_PARALLEL,
    )(cols, p['w'], p['b'])
    return out.reshape(n, ho, wo, cout)


def inverted_residual(x, blk):
    n, h, w, cin = x.shape
    stride = blk['stride']
    hidden = blk['dw']['b'].shape[-1]
    cout = blk['proj']['b'].shape[-1]
    has_expand = blk['expand'] is not None

    weight_args = []
    if has_expand:
        weight_args += [blk['expand']['w'], blk['expand']['b']]
    weight_args += [blk['dw']['w'], blk['dw']['b'], blk['proj']['w'], blk['proj']['b']]
    weight_specs = [_full_spec(a) for a in weight_args]

    if stride == 1:
        x2 = x.reshape(n, h * w, cin)
        out = pl.pallas_call(
            functools.partial(_ir_s1_kernel, H=h, W=w, has_expand=has_expand,
                              use_res=blk['use_res']),
            grid=(n,),
            in_specs=[_batched_spec(x2)] + weight_specs,
            out_specs=pl.BlockSpec((1, h * w, cout), lambda i: (i, 0, 0)),
            out_shape=jax.ShapeDtypeStruct((n, h * w, cout), jnp.float32),
            scratch_shapes=[pltpu.VMEM((h + 2, w + 2, hidden), jnp.float32),  # padded hidden
                            pltpu.VMEM((h * w, hidden), jnp.float32)],        # DW output
            compiler_params=_PARALLEL,
        )(x2, *weight_args)
        return out.reshape(n, h, w, cout)

    # stride == 2
    assert h % 2 == 0 and w % 2 == 0
    ho, wo, wc = h // 2, w // 2, w // 2
    xe = x[:, :, 0::2, :].reshape(n, h * wc, cin)        # column-parity split (XLA-side)
    xo = x[:, :, 1::2, :].reshape(n, h * wc, cin)
    out = pl.pallas_call(
        functools.partial(_ir_s2_kernel, H=h, W=w, has_expand=has_expand),
        grid=(n,),
        in_specs=[_batched_spec(xe), _batched_spec(xo)] + weight_specs,
        out_specs=pl.BlockSpec((1, ho * wo, cout), lambda i: (i, 0, 0)),
        out_shape=jax.ShapeDtypeStruct((n, ho * wo, cout), jnp.float32),
        scratch_shapes=[pltpu.VMEM((h + 1, wc + 1, hidden), jnp.float32),  # even-col phase (padded)
                        pltpu.VMEM((h + 1, wc, hidden), jnp.float32),      # odd-col phase (padded)
                        pltpu.VMEM((ho * wo, hidden), jnp.float32)],       # DW output
        compiler_params=_PARALLEL,
    )(xe, xo, *weight_args)
    return out.reshape(n, ho, wo, cout)


# ------------------------------ parameter init ------------------------------ #

def _fold_bn(w, c):
    """Fold inference-mode BatchNorm (identity running stats) into weight + bias."""
    gamma = jnp.ones((c,), jnp.float32)
    beta = jnp.zeros((c,), jnp.float32)
    mean = jnp.zeros((c,), jnp.float32)
    var = jnp.ones((c,), jnp.float32)
    scale = gamma / jnp.sqrt(var + BN_EPS)
    bias = beta - mean * scale
    return w * scale, bias.reshape(1, c)   # scale broadcasts over the output-channel (last) axis


def _init_conv1x1(key, cin, cout):
    std = math.sqrt(2.0 / cout)                                    # kaiming fan_out = cout*1*1
    w = std * jax.random.normal(key, (cin, cout), jnp.float32)
    w, b = _fold_bn(w, cout)
    return dict(w=w.astype(jnp.bfloat16), b=b)                     # bf16 MXU weight, f32 bias


def _init_dw3x3(key, c):
    std = math.sqrt(2.0 / 9.0)                                     # fan_out = c*9/groups(=c)
    w = std * jax.random.normal(key, (9, c), jnp.float32)          # rows ordered (kh*3+kw)
    w, b = _fold_bn(w, c)
    return dict(w=w, b=b)                                          # f32: depthwise runs on the VPU


def _init_stem(key, cin, cout):
    std = math.sqrt(2.0 / (cout * 9))                              # fan_out = cout*3*3
    w = std * jax.random.normal(key, (9, cin, cout), jnp.float32)  # rows ordered (kh*3+kw)
    w, b = _fold_bn(w, cout)
    return dict(w=w.reshape(9 * cin, cout).astype(jnp.bfloat16), b=b)  # im2col layout


def init_mobilenet_v2(key, block_settings, channels=8, in_ch=4):
    keys = iter(jax.random.split(key, 256))
    features = [dict(kind='stem', p=_init_stem(next(keys), in_ch, channels))]
    for t, c, n_rep, s in block_settings:
        for i in range(n_rep):
            stride = s if i == 0 else 1
            hidden = int(round(channels * t))
            blk = dict(stride=stride, use_res=(stride == 1 and channels == c))
            blk['expand'] = (_init_conv1x1(next(keys), channels, hidden)
                             if t != 1 else None)
            blk['dw'] = _init_dw3x3(next(keys), hidden)
            blk['proj'] = _init_conv1x1(next(keys), hidden, c)
            features.append(dict(kind='ir', p=blk))
            channels = c
    return features


# --------------------------------- forward ---------------------------------- #

def mobilenet_v2_forward(features, fpn_selected, x_nchw):
    x = jnp.transpose(x_nchw, (0, 2, 3, 1))  # NCHW -> NHWC
    fpn = []
    for i, f in enumerate(features):
        if i > fpn_selected[-1]:
            break
        if f['kind'] == 'stem':
            x = stem_conv(x, f['p'])
        else:
            x = inverted_residual(x, f['p'])
        if i in fpn_selected:
            fpn.append(jnp.transpose(x, (0, 3, 1, 2)))  # back to NCHW
    c1, c2, c3, c4, c5 = fpn
    return c1, c2, c3, c4, c5


if __name__ == "__main__":
    key = jax.random.PRNGKey(0)
    k_param, k_x = jax.random.split(key)

    # small but structurally faithful configuration (t, c, n, s)
    block_settings = [
        [1, 8, 1, 1],   # expand=1, residual block
        [4, 16, 1, 2],  # expand + depthwise stride 2
        [4, 16, 1, 1],  # residual block
        [4, 24, 1, 2],  # expand + depthwise stride 2
    ]
    fpn_selected = (0, 1, 2, 3, 4)

    features = init_mobilenet_v2(k_param, block_settings, channels=8, in_ch=4)

    x = jax.random.normal(k_x, (2, 4, 16, 16), jnp.float32)  # NCHW like PyTorch

    fwd = jax.jit(lambda inp: mobilenet_v2_forward(features, fpn_selected, inp))
    outs = jax.block_until_ready(fwd(x))
    # c1:(2,8,8,8) c2:(2,8,8,8) c3:(2,16,4,4) c4:(2,16,4,4) c5:(2,24,2,2)  (NCHW)
    print("KERNEL_OK")
</pallas_src>

<mosaic_0001>
module attributes {stable_mosaic.version = 11 : i64} {
  func.func @_stem_kernel(%arg0: i32, %arg1: memref<1x64x36xf32, #tpu.memory_space<vmem>>, %arg2: memref<36x8xbf16, #tpu.memory_space<vmem>>, %arg3: memref<1x8xf32, #tpu.memory_space<vmem>>, %arg4: memref<1x64x8xf32, #tpu.memory_space<vmem>>) attributes {dimension_semantics = [#tpu.dimension_semantics<parallel>], iteration_bounds = array<i64: 2>, scalar_prefetch = 0 : i64, scratch_operands = 0 : i64, tpu.core_type = #tpu.core_type<tc>, window_params = [{transform_indices = @transform_0, window_bounds = array<i64: 1, 64, 36>}, {pipeline_mode = #tpu.pipeline_mode<synchronous>, transform_indices = @transform_1, window_bounds = array<i64: 36, 8>}, {pipeline_mode = #tpu.pipeline_mode<synchronous>, transform_indices = @transform_2, window_bounds = array<i64: 1, 8>}, {transform_indices = @transform_3, window_bounds = array<i64: 1, 64, 8>}]} {
    %c0 = arith.constant 0 : index
    %c0_0 = arith.constant 0 : index
    %c0_1 = arith.constant 0 : index
    %0 = vector.load %arg1[%c0, %c0_0, %c0_1] : memref<1x64x36xf32, #tpu.memory_space<vmem>>, vector<1x64x36xf32>
    %1 = vector.shape_cast %0 : vector<1x64x36xf32> to vector<64x36xf32>
    %2 = arith.truncf %1 : vector<64x36xf32> to vector<64x36xbf16>
    %c0_2 = arith.constant 0 : index
    %c0_3 = arith.constant 0 : index
    %3 = vector.load %arg2[%c0_2, %c0_3] : memref<36x8xbf16, #tpu.memory_space<vmem>>, vector<36x8xbf16>
    %cst = arith.constant dense<0.000000e+00> : vector<64x8xf32>
    %4 = tpu.matmul %2, %3, %cst {dimension_numbers = #tpu.dot_dimension_numbers<[1], [0], [0], [1], [0, 0, 1, 1], [], []>} : vector<64x36xbf16>, vector<36x8xbf16>, vector<64x8xf32> -> vector<64x8xf32>
    %c0_4 = arith.constant 0 : index
    %c0_5 = arith.constant 0 : index
    %5 = vector.load %arg3[%c0_4, %c0_5] : memref<1x8xf32, #tpu.memory_space<vmem>>, vector<1x8xf32>
    %6 = vector.broadcast %5 : vector<1x8xf32> to vector<64x8xf32>
    %7 = arith.addf %4, %6 : vector<64x8xf32>
    %cst_6 = arith.constant 0.000000e+00 : f32
    %cst_7 = arith.constant 6.000000e+00 : f32
    %8 = vector.broadcast %cst_6 : f32 to vector<64x8xf32>
    %9 = arith.maximumf %8, %7 : vector<64x8xf32>
    %10 = vector.broadcast %cst_7 : f32 to vector<64x8xf32>
    %11 = arith.minimumf %10, %9 : vector<64x8xf32>
    %c0_8 = arith.constant 0 : index
    %c0_9 = arith.constant 0 : index
    %c0_10 = arith.constant 0 : index
    %12 = vector.load %arg4[%c0_8, %c0_9, %c0_10] : memref<1x64x8xf32, #tpu.memory_space<vmem>>, vector<1x64x8xf32>
    %13 = vector.shape_cast %12 : vector<1x64x8xf32> to vector<64x8xf32>
    %14 = vector.shape_cast %11 : vector<64x8xf32> to vector<1x64x8xf32>
    tpu.vector_store %arg4[%c0_8, %c0_9, %c0_10], %14 {strides = array<i32>} : memref<1x64x8xf32, #tpu.memory_space<vmem>>, vector<1x64x8xf32>,
    return
  }
  func.func @transform_0(%arg0: i32) -> (i32, i32, i32) {
    %c0_i32 = arith.constant 0 : i32
    %c0_i32_0 = arith.constant 0 : i32
    %c0_i32_1 = arith.constant 0 : i32
    return %arg0, %c0_i32, %c0_i32_0 : i32, i32, i32
  }
  func.func @transform_1(%arg0: i32) -> (i32, i32) {
    %c0_i32 = arith.constant 0 : i32
    %c0_i32_0 = arith.constant 0 : i32
    %c0_i32_1 = arith.constant 0 : i32
    return %c0_i32, %c0_i32_0 : i32, i32
  }
  func.func @transform_2(%arg0: i32) -> (i32, i32) {
    %c0_i32 = arith.constant 0 : i32
    %c0_i32_0 = arith.constant 0 : i32
    %c0_i32_1 = arith.constant 0 : i32
    return %c0_i32, %c0_i32_0 : i32, i32
  }
  func.func @transform_3(%arg0: i32) -> (i32, i32, i32) {
    %c0_i32 = arith.constant 0 : i32
    %c0_i32_0 = arith.constant 0 : i32
    %c0_i32_1 = arith.constant 0 : i32
    return %arg0, %c0_i32, %c0_i32_0 : i32, i32, i32
  }
}

module attributes {stable_mosaic.version = 11 : i64} {
  func.func @_ir_s1_kernel(%arg0: i32, %arg1: memref<1x64x8xf32, #tpu.memory_space<vmem>>, %arg2: memref<9x8xf32, #tpu.memory_space<vmem>>, %arg3: memref<1x8xf32, #tpu.memory_space<vmem>>, %arg4: memref<8x8xbf16, #tpu.memory_space<vmem>>, %arg5: memref<1x8xf32, #tpu.memory_space<vmem>>, %arg6: memref<1x64x8xf32, #tpu.memory_space<vmem>>, %arg7: memref<10x10x8xf32, #tpu.memory_space<vmem>>, %arg8: memref<64x8xf32, #tpu.memory_space<vmem>>) attributes {dimension_semantics = [#tpu.dimension_semantics<parallel>], iteration_bounds = array<i64: 2>, scalar_prefetch = 0 : i64, scratch_operands = 2 : i64, tpu.core_type = #tpu.core_type<tc>, window_params = [{transform_indices = @transform_0, window_bounds = array<i64: 1, 64, 8>}, {pipeline_mode = #tpu.pipeline_mode<synchronous>, transform_indices = @transform_1, window_bounds = array<i64: 9, 8>}, {pipeline_mode = #tpu.pipeline_mode<synchronous>, transform_indices = @transform_2, window_bounds = array<i64: 1, 8>}, {pipeline_mode = #tpu.pipeline_mode<synchronous>, transform_indices = @transform_3, window_bounds = array<i64: 8, 8>}, {pipeline_mode = #tpu.pipeline_mode<synchronous>, transform_indices = @transform_4, window_bounds = array<i64: 1, 8>}, {transform_indices = @transform_5, window_bounds = array<i64: 1, 64, 8>}]} {
    %cst = arith.constant 0.000000e+00 : f32
    %0 = vector.broadcast %cst : f32 to vector<10x10x8xf32>
    %c0 = arith.constant 0 : index
    %c0_0 = arith.constant 0 : index
    %c0_1 = arith.constant 0 : index
    %1 = vector.load %arg7[%c0, %c0_0, %c0_1] : memref<10x10x8xf32, #tpu.memory_space<vmem>>, vector<10x10x8xf32>
    tpu.vector_store %arg7[%c0, %c0_0, %c0_1], %0 {strides = array<i32>} : memref<10x10x8xf32, #tpu.memory_space<vmem>>, vector<10x10x8xf32>,
    %c0_2 = arith.constant 0 : index
    %c0_3 = arith.constant 0 : index
    %c0_4 = arith.constant 0 : index
    %2 = vector.load %arg1[%c0_2, %c0_3, %c0_4] : memref<1x64x8xf32, #tpu.memory_space<vmem>>, vector<1x8x8xf32>
    %3 = vector.shape_cast %2 : vector<1x8x8xf32> to vector<8x8xf32>
    %c1 = arith.constant 1 : index
    %c1_5 = arith.constant 1 : index
    %c0_6 = arith.constant 0 : index
    %4 = vector.load %arg7[%c1, %c1_5, %c0_6] : memref<10x10x8xf32, #tpu.memory_space<vmem>>, vector<1x8x8xf32>
    %5 = vector.shape_cast %4 : vector<1x8x8xf32> to vector<8x8xf32>
    %6 = vector.shape_cast %3 : vector<8x8xf32> to vector<1x8x8xf32>
    tpu.vector_store %arg7[%c1, %c1_5, %c0_6], %6 {strides = array<i32>} : memref<10x10x8xf32, #tpu.memory_space<vmem>>, vector<1x8x8xf32>,
    %c0_7 = arith.constant 0 : index
    %c8 = arith.constant 8 : index
    %c0_8 = arith.constant 0 : index
    %7 = vector.load %arg1[%c0_7, %c8, %c0_8] : memref<1x64x8xf32, #tpu.memory_space<vmem>>, vector<1x8x8xf32>
    %8 = vector.shape_cast %7 : vector<1x8x8xf32> to vector<8x8xf32>
    %c2 = arith.constant 2 : index
    %c1_9 = arith.constant 1 : index
    %c0_10 = arith.constant 0 : index
    %9 = vector.load %arg7[%c2, %c1_9, %c0_10] : memref<10x10x8xf32, #tpu.memory_space<vmem>>, vector<1x8x8xf32>
    %10 = vector.shape_cast %9 : vector<1x8x8xf32> to vector<8x8xf32>
    %11 = vector.shape_cast %8 : vector<8x8xf32> to vector<1x8x8xf32>
    tpu.vector_store %arg7[%c2, %c1_9, %c0_10], %11 {strides = array<i32>} : memref<10x10x8xf32, #tpu.memory_space<vmem>>, vector<1x8x8xf32>,
    %c0_11 = arith.constant 0 : index
    %c16 = arith.constant 16 : index
    %c0_12 = arith.constant 0 : index
    %12 = vector.load %arg1[%c0_11, %c16, %c0_12] : memref<1x64x8xf32, #tpu.memory_space<vmem>>, vector<1x8x8xf32>
    %13 = vector.shape_cast %12 : vector<1x8x8xf32> to vector<8x8xf32>
    %c3 = arith.constant 3 : index
    %c1_13 = arith.constant 1 : index
    %c0_14 = arith.constant 0 : index
    %14 = vector.load %arg7[%c3, %c1_13, %c0_14] : memref<10x10x8xf32, #tpu.memory_space<vmem>>, vector<1x8x8xf32>
    %15 = vector.shape_cast %14 : vector<1x8x8xf32> to vector<8x8xf32>
    %16 = vector.shape_cast %13 : vector<8x8xf32> to vector<1x8x8xf32>
    tpu.vector_store %arg7[%c3, %c1_13, %c0_14], %16 {strides = array<i32>} : memref<10x10x8xf32, #tpu.memory_space<vmem>>, vector<1x8x8xf32>,
    %c0_15 = arith.constant 0 : index
    %c24 = arith.constant 24 : index
    %c0_16 = arith.constant 0 : index
    %17 = vector.load %arg1[%c0_15, %c24, %c0_16] : memref<1x64x8xf32, #tpu.memory_space<vmem>>, vector<1x8x8xf32>
    %18 = vector.shape_cast %17 : vector<1x8x8xf32> to vector<8x8xf32>
    %c4 = arith.constant 4 : index
    %c1_17 = arith.constant 1 : index
    %c0_18 = arith.constant 0 : index
    %19 = vector.load %arg7[%c4, %c1_17, %c0_18] : memref<10x10x8xf32, #tpu.memory_space<vmem>>, vector<1x8x8xf32>
    %20 = vector.shape_cast %19 : vector<1x8x8xf32> to vector<8x8xf32>
    %21 = vector.shape_cast %18 : vector<8x8xf32> to vector<1x8x8xf32>
    tpu.vector_store %arg7[%c4, %c1_17, %c0_18], %21 {strides = array<i32>} : memref<10x10x8xf32, #tpu.memory_space<vmem>>, vector<1x8x8xf32>,
    %c0_19 = arith.constant 0 : index
    %c32 = arith.constant 32 : index
    %c0_20 = arith.constant 0 : index
    %22 = vector.load %arg1[%c0_19, %c32, %c0_20] : memref<1x64x8xf32, #tpu.memory_space<vmem>>, vector<1x8x8xf32>
    %23 = vector.shape_cast %22 : vector<1x8x8xf32> to vector<8x8xf32>
    %c5 = arith.constant 5 : index
    %c1_21 = arith.constant 1 : index
    %c0_22 = arith.constant 0 : index
    %24 = vector.load %arg7[%c5, %c1_21, %c0_22] : memref<10x10x8xf32, #tpu.memory_space<vmem>>, vector<1x8x8xf32>
    %25 = vector.shape_cast %24 : vector<1x8x8xf32> to vector<8x8xf32>
    %26 = vector.shape_cast %23 : vector<8x8xf32> to vector<1x8x8xf32>
    tpu.vector_store %arg7[%c5, %c1_21, %c0_22], %26 {strides = array<i32>} : memref<10x10x8xf32, #tpu.memory_space<vmem>>, vector<1x8x8xf32>,
    %c0_23 = arith.constant 0 : index
    %c40 = arith.constant 40 : index
    %c0_24 = arith.constant 0 : index
    %27 = vector.load %arg1[%c0_23, %c40, %c0_24] : memref<1x64x8xf32, #tpu.memory_space<vmem>>, vector<1x8x8xf32>
    %28 = vector.shape_cast %27 : vector<1x8x8xf32> to vector<8x8xf32>
    %c6 = arith.constant 6 : index
    %c1_25 = arith.constant 1 : index
    %c0_26 = arith.constant 0 : index
    %29 = vector.load %arg7[%c6, %c1_25, %c0_26] : memref<10x10x8xf32, #tpu.memory_space<vmem>>, vector<1x8x8xf32>
    %30 = vector.shape_cast %29 : vector<1x8x8xf32> to vector<8x8xf32>
    %31 = vector.shape_cast %28 : vector<8x8xf32> to vector<1x8x8xf32>
    tpu.vector_store %arg7[%c6, %c1_25, %c0_26], %31 {strides = array<i32>} : memref<10x10x8xf32, #tpu.memory_space<vmem>>, vector<1x8x8xf32>,
    %c0_27 = arith.constant 0 : index
    %c48 = arith.constant 48 : index
    %c0_28 = arith.constant 0 : index
    %32 = vector.load %arg1[%c0_27, %c48, %c0_28] : memref<1x64x8xf32, #tpu.memory_space<vmem>>, vector<1x8x8xf32>
    %33 = vector.shape_cast %32 : vector<1x8x8xf32> to vector<8x8xf32>
    %c7 = arith.constant 7 : index
    %c1_29 = arith.constant 1 : index
    %c0_30 = arith.constant 0 : index
    %34 = vector.load %arg7[%c7, %c1_29, %c0_30] : memref<10x10x8xf32, #tpu.memory_space<vmem>>, vector<1x8x8xf32>
    %35 = vector.shape_cast %34 : vector<1x8x8xf32> to vector<8x8xf32>
    %36 = vector.shape_cast %33 : vector<8x8xf32> to vector<1x8x8xf32>
    tpu.vector_store %arg7[%c7, %c1_29, %c0_30], %36 {strides = array<i32>} : memref<10x10x8xf32, #tpu.memory_space<vmem>>, vector<1x8x8xf32>,
    %c0_31 = arith.constant 0 : index
    %c56 = arith.constant 56 : index
    %c0_32 = arith.constant 0 : index
    %37 = vector.load %arg1[%c0_31, %c56, %c0_32] : memref<1x64x8xf32, #tpu.memory_space<vmem>>, vector<1x8x8xf32>
    %38 = vector.shape_cast %37 : vector<1x8x8xf32> to vector<8x8xf32>
    %c8_33 = arith.constant 8 : index
    %c1_34 = arith.constant 1 : index
    %c0_35 = arith.constant 0 : index
    %39 = vector.load %arg7[%c8_33, %c1_34, %c0_35] : memref<10x10x8xf32, #tpu.memory_space<vmem>>, vector<1x8x8xf32>
    %40 = vector.shape_cast %39 : vector<1x8x8xf32> to vector<8x8xf32>
    %41 = vector.shape_cast %38 : vector<8x8xf32> to vector<1x8x8xf32>
    tpu.vector_store %arg7[%c8_33, %c1_34, %c0_35], %41 {strides = array<i32>} : memref<10x10x8xf32, #tpu.memory_space<vmem>>, vector<1x8x8xf32>,
    %cst_36 = arith.constant 0.000000e+00 : f32
    %42 = vector.broadcast %cst_36 : f32 to vector<8x8x8xf32>
    %c0_37 = arith.constant 0 : index
    %c0_38 = arith.constant 0 : index
    %c0_39 = arith.constant 0 : index
    %43 = vector.load %arg7[%c0_37, %c0_38, %c0_39] : memref<10x10x8xf32, #tpu.memory_space<vmem>>, vector<8x8x8xf32>
    %c0_40 = arith.constant 0 : index
    %c0_41 = arith.constant 0 : index
    %44 = vector.load %arg2[%c0_40, %c0_41] : memref<9x8xf32, #tpu.memory_space<vmem>>, vector<1x8xf32>
    %45 = vector.shape_cast %44 : vector<1x8xf32> to vector<1x1x8xf32>
    %46 = vector.broadcast %45 : vector<1x1x8xf32> to vector<8x8x8xf32>
    %47 = arith.mulf %43, %46 : vector<8x8x8xf32>
    %48 = arith.addf %42, %47 : vector<8x8x8xf32>
    %c0_42 = arith.constant 0 : index
    %c1_43 = arith.constant 1 : index
    %c0_44 = arith.constant 0 : index
    %49 = vector.load %arg7[%c0_42, %c1_43, %c0_44] : memref<10x10x8xf32, #tpu.memory_space<vmem>>, vector<8x8x8xf32>
    %c1_45 = arith.constant 1 : index
    %c0_46 = arith.constant 0 : index
    %50 = vector.load %arg2[%c1_45, %c0_46] : memref<9x8xf32, #tpu.memory_space<vmem>>, vector<1x8xf32>
    %51 = vector.shape_cast %50 : vector<1x8xf32> to vector<1x1x8xf32>
    %52 = vector.broadcast %51 : vector<1x1x8xf32> to vector<8x8x8xf32>
    %53 = arith.mulf %49, %52 : vector<8x8x8xf32>
    %54 = arith.addf %48, %53 : vector<8x8x8xf32>
    %c0_47 = arith.constant 0 : index
    %c2_48 = arith.constant 2 : index
    %c0_49 = arith.constant 0 : index
    %55 = vector.load %arg7[%c0_47, %c2_48, %c0_49] : memref<10x10x8xf32, #tpu.memory_space<vmem>>, vector<8x8x8xf32>
    %c2_50 = arith.constant 2 : index
    %c0_51 = arith.constant 0 : index
    %56 = vector.load %arg2[%c2_50, %c0_51] : memref<9x8xf32, #tpu.memory_space<vmem>>, vector<1x8xf32>
    %57 = vector.shape_cast %56 : vector<1x8xf32> to vector<1x1x8xf32>
    %58 = vector.broadcast %57 : vector<1x1x8xf32> to vector<8x8x8xf32>
    %59 = arith.mulf %55, %58 : vector<8x8x8xf32>
    %60 = arith.addf %54, %59 : vector<8x8x8xf32>
    %c1_52 = arith.constant 1 : index
    %c0_53 = arith.constant 0 : index
    %c0_54 = arith.constant 0 : index
    %61 = vector.load %arg7[%c1_52, %c0_53, %c0_54] : memref<10x10x8xf32, #tpu.memory_space<vmem>>, vector<8x8x8xf32>
    %c3_55 = arith.constant 3 : index
    %c0_56 = arith.constant 0 : index
    %62 = vector.load %arg2[%c3_55, %c0_56] : memref<9x8xf32, #tpu.memory_space<vmem>>, vector<1x8xf32>
    %63 = vector.shape_cast %62 : vector<1x8xf32> to vector<1x1x8xf32>
    %64 = vector.broadcast %63 : vector<1x1x8xf32> to vector<8x8x8xf32>
    %65 = arith.mulf %61, %64 : vector<8x8x8xf32>
    %66 = arith.addf %60, %65 : vector<8x8x8xf32>
    %c1_57 = arith.constant 1 : index
    %c1_58 = arith.constant 1 : index
    %c0_59 = arith.constant 0 : index
    %67 = vector.load %arg7[%c1_57, %c1_58, %c0_59] : memref<10x10x8xf32, #tpu.memory_space<vmem>>, vector<8x8x8xf32>
    %c4_60 = arith.constant 4 : index
    %c0_61 = arith.constant 0 : index
    %68 = vector.load %arg2[%c4_60, %c0_61] : memref<9x8xf32, #tpu.memory_space<vmem>>, vector<1x8xf32>
    %69 = vector.shape_cast %68 : vector<1x8xf32> to vector<1x1x8xf32>
    %70 = vector.broadcast %69 : vector<1x1x8xf32> to vector<8x8x8xf32>
    %71 = arith.mulf %67, %70 : vector<8x8x8xf32>
    %72 = arith.addf %66, %71 : vector<8x8x8xf32>
    %c1_62 = arith.constant 1 : index
    %c2_63 = arith.constant 2 : index
    %c0_64 = arith.constant 0 : index
    %73 = vector.load %arg7[%c1_62, %c2_63, %c0_64] : memref<10x10x8xf32, #tpu.memory_space<vmem>>, vector<8x8x8xf32>
    %c5_65 = arith.constant 5 : index
    %c0_66 = arith.constant 0 : index
    %74 = vector.load %arg2[%c5_65, %c0_66] : memref<9x8xf32, #tpu.memory_space<vmem>>, vector<1x8xf32>
    %75 = vector.shape_cast %74 : vector<1x8xf32> to vector<1x1x8xf32>
    %76 = vector.broadcast %75 : vector<1x1x8xf32> to vector<8x8x8xf32>
    %77 = arith.mulf %73, %76 : vector<8x8x8xf32>
    %78 = arith.addf %72, %77 : vector<8x8x8xf32>
    %c2_67 = arith.constant 2 : index
    %c0_68 = arith.constant 0 : index
    %c0_69 = arith.constant 0 : index
    %79 = vector.load %arg7[%c2_67, %c0_68, %c0_69] : memref<10x10x8xf32, #tpu.memory_space<vmem>>, vector<8x8x8xf32>
    %c6_70 = arith.constant 6 : index
    %c0_71 = arith.constant 0 : index
    %80 = vector.load %arg2[%c6_70, %c0_71] : memref<9x8xf32, #tpu.memory_space<vmem>>, vector<1x8xf32>
    %81 = vector.shape_cast %80 : vector<1x8xf32> to vector<1x1x8xf32>
    %82 = vector.broadcast %81 : vector<1x1x8xf32> to vector<8x8x8xf32>
    %83 = arith.mulf %79, %82 : vector<8x8x8xf32>
    %84 = arith.addf %78, %83 : vector<8x8x8xf32>
    %c2_72 = arith.constant 2 : index
    %c1_73 = arith.constant 1 : index
    %c0_74 = arith.constant 0 : index
    %85 = vector.load %arg7[%c2_72, %c1_73, %c0_74] : memref<10x10x8xf32, #tpu.memory_space<vmem>>, vector<8x8x8xf32>
    %c7_75 = arith.constant 7 : index
    %c0_76 = arith.constant 0 : index
    %86 = vector.load %arg2[%c7_75, %c0_76] : memref<9x8xf32, #tpu.memory_space<vmem>>, vector<1x8xf32>
    %87 = vector.shape_cast %86 : vector<1x8xf32> to vector<1x1x8xf32>
    %88 = vector.broadcast %87 : vector<1x1x8xf32> to vector<8x8x8xf32>
    %89 = arith.mulf %85, %88 : vector<8x8x8xf32>
    %90 = arith.addf %84, %89 : vector<8x8x8xf32>
    %c2_77 = arith.constant 2 : index
    %c2_78 = arith.constant 2 : index
    %c0_79 = arith.constant 0 : index
    %91 = vector.load %arg7[%c2_77, %c2_78, %c0_79] : memref<10x10x8xf32, #tpu.memory_space<vmem>>, vector<8x8x8xf32>
    %c8_80 = arith.constant 8 : index
    %c0_81 = arith.constant 0 : index
    %92 = vector.load %arg2[%c8_80, %c0_81] : memref<9x8xf32, #tpu.memory_space<vmem>>, vector<1x8xf32>
    %93 = vector.shape_cast %92 : vector<1x8xf32> to vector<1x1x8xf32>
    %94 = vector.broadcast %93 : vector<1x1x8xf32> to vector<8x8x8xf32>
    %95 = arith.mulf %91, %94 : vector<8x8x8xf32>
    %96 = arith.addf %90, %95 : vector<8x8x8xf32>
    %c0_82 = arith.constant 0 : index
    %c0_83 = arith.constant 0 : index
    %97 = vector.load %arg3[%c0_82, %c0_83] : memref<1x8xf32, #tpu.memory_space<vmem>>, vector<1x8xf32>
    %98 = vector.shape_cast %97 : vector<1x8xf32> to vector<1x1x8xf32>
    %99 = vector.broadcast %98 : vector<1x1x8xf32> to vector<8x8x8xf32>
    %100 = arith.addf %96, %99 : vector<8x8x8xf32>
    %cst_84 = arith.constant 0.000000e+00 : f32
    %cst_85 = arith.constant 6.000000e+00 : f32
    %101 = vector.broadcast %cst_84 : f32 to vector<8x8x8xf32>
    %102 = arith.maximumf %101, %100 : vector<8x8x8xf32>
    %103 = vector.broadcast %cst_85 : f32 to vector<8x8x8xf32>
    %104 = arith.minimumf %103, %102 : vector<8x8x8xf32>
    %105 = vector.extract_strided_slice %104 {offsets = [0, 0, 0], sizes = [1, 8, 8], strides = [1, 1, 1]} : vector<8x8x8xf32> to vector<1x8x8xf32>
    %106 = vector.shape_cast %105 : vector<1x8x8xf32> to vector<8x8xf32>
    %c0_86 = arith.constant 0 : index
    %c0_87 = arith.constant 0 : index
    %107 = vector.load %arg8[%c0_86, %c0_87] : memref<64x8xf32, #tpu.memory_space<vmem>>, vector<8x8xf32>
    tpu.vector_store %arg8[%c0_86, %c0_87], %106 {strides = array<i32>} : memref<64x8xf32, #tpu.memory_space<vmem>>, vector<8x8xf32>,
    %108 = vector.extract_strided_slice %104 {offsets = [1, 0, 0], sizes = [1, 8, 8], strides = [1, 1, 1]} : vector<8x8x8xf32> to vector<1x8x8xf32>
    %109 = vector.shape_cast %108 : vector<1x8x8xf32> to vector<8x8xf32>
    %c8_88 = arith.constant 8 : index
    %c0_89 = arith.constant 0 : index
    %110 = vector.load %arg8[%c8_88, %c0_89] : memref<64x8xf32, #tpu.memory_space<vmem>>, vector<8x8xf32>
    tpu.vector_store %arg8[%c8_88, %c0_89], %109 {strides = array<i32>} : memref<64x8xf32, #tpu.memory_space<vmem>>, vector<8x8xf32>,
    %111 = vector.extract_strided_slice %104 {offsets = [2, 0, 0], sizes = [1, 8, 8], strides = [1, 1, 1]} : vector<8x8x8xf32> to vector<1x8x8xf32>
    %112 = vector.shape_cast %111 : vector<1x8x8xf32> to vector<8x8xf32>
    %c16_90 = arith.constant 16 : index
    %c0_91 = arith.constant 0 : index
    %113 = vector.load %arg8[%c16_90, %c0_91] : memref<64x8xf32, #tpu.memory_space<vmem>>, vector<8x8xf32>
    tpu.vector_store %arg8[%c16_90, %c0_91], %112 {strides = array<i32>} : memref<64x8xf32, #tpu.memory_space<vmem>>, vector<8x8xf32>,
    %114 = vector.extract_strided_slice %104 {offsets = [3, 0, 0], sizes = [1, 8, 8], strides = [1, 1, 1]} : vector<8x8x8xf32> to vector<1x8x8xf32>
    %115 = vector.shape_cast %114 : vector<1x8x8xf32> to vector<8x8xf32>
    %c24_92 = arith.constant 24 : index
    %c0_93 = arith.constant 0 : index
    %116 = vector.load %arg8[%c24_92, %c0_93] : memref<64x8xf32, #tpu.memory_space<vmem>>, vector<8x8xf32>
    tpu.vector_store %arg8[%c24_92, %c0_93], %115 {strides = array<i32>} : memref<64x8xf32, #tpu.memory_space<vmem>>, vector<8x8xf32>,
    %117 = vector.extract_strided_slice %104 {offsets = [4, 0, 0], sizes = [1, 8, 8], strides = [1, 1, 1]} : vector<8x8x8xf32> to vector<1x8x8xf32>
    %118 = vector.shape_cast %117 : vector<1x8x8xf32> to vector<8x8xf32>
    %c32_94 = arith.constant 32 : index
    %c0_95 = arith.constant 0 : index
    %119 = vector.load %arg8[%c32_94, %c0_95] : memref<64x8xf32, #tpu.memory_space<vmem>>, vector<8x8xf32>
    tpu.vector_store %arg8[%c32_94, %c0_95], %118 {strides = array<i32>} : memref<64x8xf32, #tpu.memory_space<vmem>>, vector<8x8xf32>,
    %120 = vector.extract_strided_slice %104 {offsets = [5, 0, 0], sizes = [1, 8, 8], strides = [1, 1, 1]} : vector<8x8x8xf32> to vector<1x8x8xf32>
    %121 = vector.shape_cast %120 : vector<1x8x8xf32> to vector<8x8xf32>
    %c40_96 = arith.constant 40 : index
    %c0_97 = arith.constant 0 : index
    %122 = vector.load %arg8[%c40_96, %c0_97] : memref<64x8xf32, #tpu.memory_space<vmem>>, vector<8x8xf32>
    tpu.vector_store %arg8[%c40_96, %c0_97], %121 {strides = array<i32>} : memref<64x8xf32, #tpu.memory_space<vmem>>, vector<8x8xf32>,
    %123 = vector.extract_strided_slice %104 {offsets = [6, 0, 0], sizes = [1, 8, 8], strides = [1, 1, 1]} : vector<8x8x8xf32> to vector<1x8x8xf32>
    %124 = vector.shape_cast %123 : vector<1x8x8xf32> to vector<8x8xf32>
    %c48_98 = arith.constant 48 : index
    %c0_99 = arith.constant 0 : index
    %125 = vector.load %arg8[%c48_98, %c0_99] : memref<64x8xf32, #tpu.memory_space<vmem>>, vector<8x8xf32>
    tpu.vector_store %arg8[%c48_98, %c0_99], %124 {strides = array<i32>} : memref<64x8xf32, #tpu.memory_space<vmem>>, vector<8x8xf32>,
    %126 = vector.extract_strided_slice %104 {offsets = [7, 0, 0], sizes = [1, 8, 8], strides = [1, 1, 1]} : vector<8x8x8xf32> to vector<1x8x8xf32>
    %127 = vector.shape_cast %126 : vector<1x8x8xf32> to vector<8x8xf32>
    %c56_100 = arith.constant 56 : index
    %c0_101 = arith.constant 0 : index
    %128 = vector.load %arg8[%c56_100, %c0_101] : memref<64x8xf32, #tpu.memory_space<vmem>>, vector<8x8xf32>
    tpu.vector_store %arg8[%c56_100, %c0_101], %127 {strides = array<i32>} : memref<64x8xf32, #tpu.memory_space<vmem>>, vector<8x8xf32>,
    %c0_102 = arith.constant 0 : index
    %c0_103 = arith.constant 0 : index
    %129 = vector.load %arg8[%c0_102, %c0_103] : memref<64x8xf32, #tpu.memory_space<vmem>>, vector<64x8xf32>
    %130 = arith.truncf %129 : vector<64x8xf32> to vector<64x8xbf16>
    %c0_104 = arith.constant 0 : index
    %c0_105 = arith.constant 0 : index
    %131 = vector.load %arg4[%c0_104, %c0_105] : memref<8x8xbf16, #tpu.memory_space<vmem>>, vector<8x8xbf16>
    %cst_106 = arith.constant dense<0.000000e+00> : vector<64x8xf32>
    %132 = tpu.matmul %130, %131, %cst_106 {dimension_numbers = #tpu.dot_dimension_numbers<[1], [0], [0], [1], [0, 0, 1, 1], [], []>} : vector<64x8xbf16>, vector<8x8xbf16>, vector<64x8xf32> -> vector<64x8xf32>
    %c0_107 = arith.constant 0 : index
    %c0_108 = arith.constant 0 : index
    %133 = vector.load %arg5[%c0_107, %c0_108] : memref<1x8xf32, #tpu.memory_space<vmem>>, vector<1x8xf32>
    %134 = vector.broadcast %133 : vector<1x8xf32> to vector<64x8xf32>
    %135 = arith.addf %132, %134 : vector<64x8xf32>
    %c0_109 = arith.constant 0 : index
    %c0_110 = arith.constant 0 : index
    %c0_111 = arith.constant 0 : index
    %136 = vector.load %arg1[%c0_109, %c0_110, %c0_111] : memref<1x64x8xf32, #tpu.memory_space<vmem>>, vector<1x64x8xf32>
    %137 = vector.shape_cast %136 : vector<1x64x8xf32> to vector<64x8xf32>
    %138 = arith.addf %135, %137 : vector<64x8xf32>
    %c0_112 = arith.constant 0 : index
    %c0_113 = arith.constant 0 : index
    %c0_114 = arith.constant 0 : index
    %139 = vector.load %arg6[%c0_112, %c0_113, %c0_114] : memref<1x64x8xf32, #tpu.memory_space<vmem>>, vector<1x64x8xf32>
    %140 = vector.shape_cast %139 : vector<1x64x8xf32> to vector<64x8xf32>
    %141 = vector.shape_cast %138 : vector<64x8xf32> to vector<1x64x8xf32>
    tpu.vector_store %arg6[%c0_112, %c0_113, %c0_114], %141 {strides = array<i32>} : memref<1x64x8xf32, #tpu.memory_space<vmem>>, vector<1x64x8xf32>,
    return
  }
  func.func @transform_0(%arg0: i32) -> (i32, i32, i32) {
    %c0_i32 = arith.constant 0 : i32
    %c0_i32_0 = arith.constant 0 : i32
    %c0_i32_1 = arith.constant 0 : i32
    return %arg0, %c0_i32, %c0_i32_0 : i32, i32, i32
  }
  func.func @transform_1(%arg0: i32) -> (i32, i32) {
    %c0_i32 = arith.constant 0 : i32
    %c0_i32_0 = arith.constant 0 : i32
    %c0_i32_1 = arith.constant 0 : i32
    return %c0_i32, %c0_i32_0 : i32, i32
  }
  func.func @transform_2(%arg0: i32) -> (i32, i32) {
    %c0_i32 = arith.constant 0 : i32
    %c0_i32_0 = arith.constant 0 : i32
    %c0_i32_1 = arith.constant 0 : i32
    return %c0_i32, %c0_i32_0 : i32, i32
  }
  func.func @transform_3(%arg0: i32) -> (i32, i32) {
    %c0_i32 = arith.constant 0 : i32
    %c0_i32_0 = arith.constant 0 : i32
    %c0_i32_1 = arith.constant 0 : i32
    return %c0_i32, %c0_i32_0 : i32, i32
  }
  func.func @transform_4(%arg0: i32) -> (i32, i32) {
    %c0_i32 = arith.constant 0 : i32
    %c0_i32_0 = arith.constant 0 : i32
    %c0_i32_1 = arith.constant 0 : i32
    return %c0_i32, %c0_i32_0 : i32, i32
  }
  func.func @transform_5(%arg0: i32) -> (i32, i32, i32) {
    %c0_i32 = arith.constant 0 : i32
    %c0_i32_0 = arith.constant 0 : i32
    %c0_i32_1 = arith.constant 0 : i32
    return %arg0, %c0_i32, %c0_i32_0 : i32, i32, i32
  }
}

module attributes {stable_mosaic.version = 11 : i64} {
  func.func @_ir_s1_kernel(%arg0: i32, %arg1: memref<1x16x16xf32, #tpu.memory_space<vmem>>, %arg2: memref<16x64xbf16, #tpu.memory_space<vmem>>, %arg3: memref<1x64xf32, #tpu.memory_space<vmem>>, %arg4: memref<9x64xf32, #tpu.memory_space<vmem>>, %arg5: memref<1x64xf32, #tpu.memory_space<vmem>>, %arg6: memref<64x16xbf16, #tpu.memory_space<vmem>>, %arg7: memref<1x16xf32, #tpu.memory_space<vmem>>, %arg8: memref<1x16x16xf32, #tpu.memory_space<vmem>>, %arg9: memref<6x6x64xf32, #tpu.memory_space<vmem>>, %arg10: memref<16x64xf32, #tpu.memory_space<vmem>>) attributes {dimension_semantics = [#tpu.dimension_semantics<parallel>], iteration_bounds = array<i64: 2>, scalar_prefetch = 0 : i64, scratch_operands = 2 : i64, tpu.core_type = #tpu.core_type<tc>, window_params = [{transform_indices = @transform_0, window_bounds = array<i64: 1, 16, 16>}, {pipeline_mode = #tpu.pipeline_mode<synchronous>, transform_indices = @transform_1, window_bounds = array<i64: 16, 64>}, {pipeline_mode = #tpu.pipeline_mode<synchronous>, transform_indices = @transform_2, window_bounds = array<i64: 1, 64>}, {pipeline_mode = #tpu.pipeline_mode<synchronous>, transform_indices = @transform_3, window_bounds = array<i64: 9, 64>}, {pipeline_mode = #tpu.pipeline_mode<synchronous>, transform_indices = @transform_4, window_bounds = array<i64: 1, 64>}, {pipeline_mode = #tpu.pipeline_mode<synchronous>, transform_indices = @transform_5, window_bounds = array<i64: 64, 16>}, {pipeline_mode = #tpu.pipeline_mode<synchronous>, transform_indices = @transform_6, window_bounds = array<i64: 1, 16>}, {transform_indices = @transform_7, window_bounds = array<i64: 1, 16, 16>}]} {
    %cst = arith.constant 0.000000e+00 : f32
    %0 = vector.broadcast %cst : f32 to vector<6x6x64xf32>
    %c0 = arith.constant 0 : index
    %c0_0 = arith.constant 0 : index
    %c0_1 = arith.constant 0 : index
    %1 = vector.load %arg9[%c0, %c0_0, %c0_1] : memref<6x6x64xf32, #tpu.memory_space<vmem>>, vector<6x6x64xf32>
    tpu.vector_store %arg9[%c0, %c0_0, %c0_1], %0 {strides = array<i32>} : memref<6x6x64xf32, #tpu.memory_space<vmem>>, vector<6x6x64xf32>,
    %c0_2 = arith.constant 0 : index
    %c0_3 = arith.constant 0 : index
    %c0_4 = arith.constant 0 : index
    %2 = vector.load %arg1[%c0_2, %c0_3, %c0_4] : memref<1x16x16xf32, #tpu.memory_space<vmem>>, vector<1x16x16xf32>
    %3 = vector.shape_cast %2 : vector<1x16x16xf32> to vector<16x16xf32>
    %4 = arith.truncf %3 : vector<16x16xf32> to vector<16x16xbf16>
    %c0_5 = arith.constant 0 : index
    %c0_6 = arith.constant 0 : index
    %5 = vector.load %arg2[%c0_5, %c0_6] : memref<16x64xbf16, #tpu.memory_space<vmem>>, vector<16x64xbf16>
    %cst_7 = arith.constant dense<0.000000e+00> : vector<16x64xf32>
    %6 = tpu.matmul %4, %5, %cst_7 {dimension_numbers = #tpu.dot_dimension_numbers<[1], [0], [0], [1], [0, 0, 1, 1], [], []>} : vector<16x16xbf16>, vector<16x64xbf16>, vector<16x64xf32> -> vector<16x64xf32>
    %c0_8 = arith.constant 0 : index
    %c0_9 = arith.constant 0 : index
    %7 = vector.load %arg3[%c0_8, %c0_9] : memref<1x64xf32, #tpu.memory_space<vmem>>, vector<1x64xf32>
    %8 = vector.broadcast %7 : vector<1x64xf32> to vector<16x64xf32>
    %9 = arith.addf %6, %8 : vector<16x64xf32>
    %cst_10 = arith.constant 0.000000e+00 : f32
    %cst_11 = arith.constant 6.000000e+00 : f32
    %10 = vector.broadcast %cst_10 : f32 to vector<16x64xf32>
    %11 = arith.maximumf %10, %9 : vector<16x64xf32>
    %12 = vector.broadcast %cst_11 : f32 to vector<16x64xf32>
    %13 = arith.minimumf %12, %11 : vector<16x64xf32>
    %14 = vector.extract_strided_slice %13 {offsets = [0, 0], sizes = [4, 64], strides = [1, 1]} : vector<16x64xf32> to vector<4x64xf32>
    %c1 = arith.constant 1 : index
    %c1_12 = arith.constant 1 : index
    %c0_13 = arith.constant 0 : index
    %15 = vector.load %arg9[%c1, %c1_12, %c0_13] : memref<6x6x64xf32, #tpu.memory_space<vmem>>, vector<1x4x64xf32>
    %16 = vector.shape_cast %15 : vector<1x4x64xf32> to vector<4x64xf32>
    %17 = vector.shape_cast %14 : vector<4x64xf32> to vector<1x4x64xf32>
    tpu.vector_store %arg9[%c1, %c1_12, %c0_13], %17 {strides = array<i32>} : memref<6x6x64xf32, #tpu.memory_space<vmem>>, vector<1x4x64xf32>,
    %18 = vector.extract_strided_slice %13 {offsets = [4, 0], sizes = [4, 64], strides = [1, 1]} : vector<16x64xf32> to vector<4x64xf32>
    %c2 = arith.constant 2 : index
    %c1_14 = arith.constant 1 : index
    %c0_15 = arith.constant 0 : index
    %19 = vector.load %arg9[%c2, %c1_14, %c0_15] : memref<6x6x64xf32, #tpu.memory_space<vmem>>, vector<1x4x64xf32>
    %20 = vector.shape_cast %19 : vector<1x4x64xf32> to vector<4x64xf32>
    %21 = vector.shape_cast %18 : vector<4x64xf32> to vector<1x4x64xf32>
    tpu.vector_store %arg9[%c2, %c1_14, %c0_15], %21 {strides = array<i32>} : memref<6x6x64xf32, #tpu.memory_space<vmem>>, vector<1x4x64xf32>,
    %22 = vector.extract_strided_slice %13 {offsets = [8, 0], sizes = [4, 64], strides = [1, 1]} : vector<16x64xf32> to vector<4x64xf32>
    %c3 = arith.constant 3 : index
    %c1_16 = arith.constant 1 : index
    %c0_17 = arith.constant 0 : index
    %23 = vector.load %arg9[%c3, %c1_16, %c0_17] : memref<6x6x64xf32, #tpu.memory_space<vmem>>, vector<1x4x64xf32>
    %24 = vector.shape_cast %23 : vector<1x4x64xf32> to vector<4x64xf32>
    %25 = vector.shape_cast %22 : vector<4x64xf32> to vector<1x4x64xf32>
    tpu.vector_store %arg9[%c3, %c1_16, %c0_17], %25 {strides = array<i32>} : memref<6x6x64xf32, #tpu.memory_space<vmem>>, vector<1x4x64xf32>,
    %26 = vector.extract_strided_slice %13 {offsets = [12, 0], sizes = [4, 64], strides = [1, 1]} : vector<16x64xf32> to vector<4x64xf32>
    %c4 = arith.constant 4 : index
    %c1_18 = arith.constant 1 : index
    %c0_19 = arith.constant 0 : index
    %27 = vector.load %arg9[%c4, %c1_18, %c0_19] : memref<6x6x64xf32, #tpu.memory_space<vmem>>, vector<1x4x64xf32>
    %28 = vector.shape_cast %27 : vector<1x4x64xf32> to vector<4x64xf32>
    %29 = vector.shape_cast %26 : vector<4x64xf32> to vector<1x4x64xf32>
    tpu.vector_store %arg9[%c4, %c1_18, %c0_19], %29 {strides = array<i32>} : memref<6x6x64xf32, #tpu.memory_space<vmem>>, vector<1x4x64xf32>,
    %cst_20 = arith.constant 0.000000e+00 : f32
    %30 = vector.broadcast %cst_20 : f32 to vector<4x4x64xf32>
    %c0_21 = arith.constant 0 : index
    %c0_22 = arith.constant 0 : index
    %c0_23 = arith.constant 0 : index
    %31 = vector.load %arg9[%c0_21, %c0_22, %c0_23] : memref<6x6x64xf32, #tpu.memory_space<vmem>>, vector<4x4x64xf32>
    %c0_24 = arith.constant 0 : index
    %c0_25 = arith.constant 0 : index
    %32 = vector.load %arg4[%c0_24, %c0_25] : memref<9x64xf32, #tpu.memory_space<vmem>>, vector<1x64xf32>
    %33 = vector.shape_cast %32 : vector<1x64xf32> to vector<1x1x64xf32>
    %34 = vector.broadcast %33 : vector<1x1x64xf32> to vector<4x4x64xf32>
    %35 = arith.mulf %31, %34 : vector<4x4x64xf32>
    %36 = arith.addf %30, %35 : vector<4x4x64xf32>
    %c0_26 = arith.constant 0 : index
    %c1_27 = arith.constant 1 : index
    %c0_28 = arith.constant 0 : index
    %37 = vector.load %arg9[%c0_26, %c1_27, %c0_28] : memref<6x6x64xf32, #tpu.memory_space<vmem>>, vector<4x4x64xf32>
    %c1_29 = arith.constant 1 : index
    %c0_30 = arith.constant 0 : index
    %38 = vector.load %arg4[%c1_29, %c0_30] : memref<9x64xf32, #tpu.memory_space<vmem>>, vector<1x64xf32>
    %39 = vector.shape_cast %38 : vector<1x64xf32> to vector<1x1x64xf32>
    %40 = vector.broadcast %39 : vector<1x1x64xf32> to vector<4x4x64xf32>
    %41 = arith.mulf %37, %40 : vector<4x4x64xf32>
    %42 = arith.addf %36, %41 : vector<4x4x64xf32>
    %c0_31 = arith.constant 0 : index
    %c2_32 = arith.constant 2 : index
    %c0_33 = arith.constant 0 : index
    %43 = vector.load %arg9[%c0_31, %c2_32, %c0_33] : memref<6x6x64xf32, #tpu.memory_space<vmem>>, vector<4x4x64xf32>
    %c2_34 = arith.constant 2 : index
    %c0_35 = arith.constant 0 : index
    %44 = vector.load %arg4[%c2_34, %c0_35] : memref<9x64xf32, #tpu.memory_space<vmem>>, vector<1x64xf32>
    %45 = vector.shape_cast %44 : vector<1x64xf32> to vector<1x1x64xf32>
    %46 = vector.broadcast %45 : vector<1x1x64xf32> to vector<4x4x64xf32>
    %47 = arith.mulf %43, %46 : vector<4x4x64xf32>
    %48 = arith.addf %42, %47 : vector<4x4x64xf32>
    %c1_36 = arith.constant 1 : index
    %c0_37 = arith.constant 0 : index
    %c0_38 = arith.constant 0 : index
    %49 = vector.load %arg9[%c1_36, %c0_37, %c0_38] : memref<6x6x64xf32, #tpu.memory_space<vmem>>, vector<4x4x64xf32>
    %c3_39 = arith.constant 3 : index
    %c0_40 = arith.constant 0 : index
    %50 = vector.load %arg4[%c3_39, %c0_40] : memref<9x64xf32, #tpu.memory_space<vmem>>, vector<1x64xf32>
    %51 = vector.shape_cast %50 : vector<1x64xf32> to vector<1x1x64xf32>
    %52 = vector.broadcast %51 : vector<1x1x64xf32> to vector<4x4x64xf32>
    %53 = arith.mulf %49, %52 : vector<4x4x64xf32>
    %54 = arith.addf %48, %53 : vector<4x4x64xf32>
    %c1_41 = arith.constant 1 : index
    %c1_42 = arith.constant 1 : index
    %c0_43 = arith.constant 0 : index
    %55 = vector.load %arg9[%c1_41, %c1_42, %c0_43] : memref<6x6x64xf32, #tpu.memory_space<vmem>>, vector<4x4x64xf32>
    %c4_44 = arith.constant 4 : index
    %c0_45 = arith.constant 0 : index
    %56 = vector.load %arg4[%c4_44, %c0_45] : memref<9x64xf32, #tpu.memory_space<vmem>>, vector<1x64xf32>
    %57 = vector.shape_cast %56 : vector<1x64xf32> to vector<1x1x64xf32>
    %58 = vector.broadcast %57 : vector<1x1x64xf32> to vector<4x4x64xf32>
    %59 = arith.mulf %55, %58 : vector<4x4x64xf32>
    %60 = arith.addf %54, %59 : vector<4x4x64xf32>
    %c1_46 = arith.constant 1 : index
    %c2_47 = arith.constant 2 : index
    %c0_48 = arith.constant 0 : index
    %61 = vector.load %arg9[%c1_46, %c2_47, %c0_48] : memref<6x6x64xf32, #tpu.memory_space<vmem>>, vector<4x4x64xf32>
    %c5 = arith.constant 5 : index
    %c0_49 = arith.constant 0 : index
    %62 = vector.load %arg4[%c5, %c0_49] : memref<9x64xf32, #tpu.memory_space<vmem>>, vector<1x64xf32>
    %63 = vector.shape_cast %62 : vector<1x64xf32> to vector<1x1x64xf32>
    %64 = vector.broadcast %63 : vector<1x1x64xf32> to vector<4x4x64xf32>
    %65 = arith.mulf %61, %64 : vector<4x4x64xf32>
    %66 = arith.addf %60, %65 : vector<4x4x64xf32>
    %c2_50 = arith.constant 2 : index
    %c0_51 = arith.constant 0 : index
    %c0_52 = arith.constant 0 : index
    %67 = vector.load %arg9[%c2_50, %c0_51, %c0_52] : memref<6x6x64xf32, #tpu.memory_space<vmem>>, vector<4x4x64xf32>
    %c6 = arith.constant 6 : index
    %c0_53 = arith.constant 0 : index
    %68 = vector.load %arg4[%c6, %c0_53] : memref<9x64xf32, #tpu.memory_space<vmem>>, vector<1x64xf32>
    %69 = vector.shape_cast %68 : vector<1x64xf32> to vector<1x1x64xf32>
    %70 = vector.broadcast %69 : vector<1x1x64xf32> to vector<4x4x64xf32>
    %71 = arith.mulf %67, %70 : vector<4x4x64xf32>
    %72 = arith.addf %66, %71 : vector<4x4x64xf32>
    %c2_54 = arith.constant 2 : index
    %c1_55 = arith.constant 1 : index
    %c0_56 = arith.constant 0 : index
    %73 = vector.load %arg9[%c2_54, %c1_55, %c0_56] : memref<6x6x64xf32, #tpu.memory_space<vmem>>, vector<4x4x64xf32>
    %c7 = arith.constant 7 : index
    %c0_57 = arith.constant 0 : index
    %74 = vector.load %arg4[%c7, %c0_57] : memref<9x64xf32, #tpu.memory_space<vmem>>, vector<1x64xf32>
    %75 = vector.shape_cast %74 : vector<1x64xf32> to vector<1x1x64xf32>
    %76 = vector.broadcast %75 : vector<1x1x64xf32> to vector<4x4x64xf32>
    %77 = arith.mulf %73, %76 : vector<4x4x64xf32>
    %78 = arith.addf %72, %77 : vector<4x4x64xf32>
    %c2_58 = arith.constant 2 : index
    %c2_59 = arith.constant 2 : index
    %c0_60 = arith.constant 0 : index
    %79 = vector.load %arg9[%c2_58, %c2_59, %c0_60] : memref<6x6x64xf32, #tpu.memory_space<vmem>>, vector<4x4x64xf32>
    %c8 = arith.constant 8 : index
    %c0_61 = arith.constant 0 : index
    %80 = vector.load %arg4[%c8, %c0_61] : memref<9x64xf32, #tpu.memory_space<vmem>>, vector<1x64xf32>
    %81 = vector.shape_cast %80 : vector<1x64xf32> to vector<1x1x64xf32>
    %82 = vector.broadcast %81 : vector<1x1x64xf32> to vector<4x4x64xf32>
    %83 = arith.mulf %79, %82 : vector<4x4x64xf32>
    %84 = arith.addf %78, %83 : vector<4x4x64xf32>
    %c0_62 = arith.constant 0 : index
    %c0_63 = arith.constant 0 : index
    %85 = vector.load %arg5[%c0_62, %c0_63] : memref<1x64xf32, #tpu.memory_space<vmem>>, vector<1x64xf32>
    %86 = vector.shape_cast %85 : vector<1x64xf32> to vector<1x1x64xf32>
    %87 = vector.broadcast %86 : vector<1x1x64xf32> to vector<4x4x64xf32>
    %88 = arith.addf %84, %87 : vector<4x4x64xf32>
    %cst_64 = arith.constant 0.000000e+00 : f32
    %cst_65 = arith.constant 6.000000e+00 : f32
    %89 = vector.broadcast %cst_64 : f32 to vector<4x4x64xf32>
    %90 = arith.maximumf %89, %88 : vector<4x4x64xf32>
    %91 = vector.broadcast %cst_65 : f32 to vector<4x4x64xf32>
    %92 = arith.minimumf %91, %90 : vector<4x4x64xf32>
    %93 = vector.extract_strided_slice %92 {offsets = [0, 0, 0], sizes = [1, 4, 64], strides = [1, 1, 1]} : vector<4x4x64xf32> to vector<1x4x64xf32>
    %94 = vector.shape_cast %93 : vector<1x4x64xf32> to vector<4x64xf32>
    %c0_66 = arith.constant 0 : index
    %c0_67 = arith.constant 0 : index
    %95 = vector.load %arg10[%c0_66, %c0_67] : memref<16x64xf32, #tpu.memory_space<vmem>>, vector<4x64xf32>
    tpu.vector_store %arg10[%c0_66, %c0_67], %94 {strides = array<i32>} : memref<16x64xf32, #tpu.memory_space<vmem>>, vector<4x64xf32>,
    %96 = vector.extract_strided_slice %92 {offsets = [1, 0, 0], sizes = [1, 4, 64], strides = [1, 1, 1]} : vector<4x4x64xf32> to vector<1x4x64xf32>
    %97 = vector.shape_cast %96 : vector<1x4x64xf32> to vector<4x64xf32>
    %c4_68 = arith.constant 4 : index
    %c0_69 = arith.constant 0 : index
    %98 = vector.load %arg10[%c4_68, %c0_69] : memref<16x64xf32, #tpu.memory_space<vmem>>, vector<4x64xf32>
    tpu.vector_store %arg10[%c4_68, %c0_69], %97 {strides = array<i32>} : memref<16x64xf32, #tpu.memory_space<vmem>>, vector<4x64xf32>,
    %99 = vector.extract_strided_slice %92 {offsets = [2, 0, 0], sizes = [1, 4, 64], strides = [1, 1, 1]} : vector<4x4x64xf32> to vector<1x4x64xf32>
    %100 = vector.shape_cast %99 : vector<1x4x64xf32> to vector<4x64xf32>
    %c8_70 = arith.constant 8 : index
    %c0_71 = arith.constant 0 : index
    %101 = vector.load %arg10[%c8_70, %c0_71] : memref<16x64xf32, #tpu.memory_space<vmem>>, vector<4x64xf32>
    tpu.vector_store %arg10[%c8_70, %c0_71], %100 {strides = array<i32>} : memref<16x64xf32, #tpu.memory_space<vmem>>, vector<4x64xf32>,
    %102 = vector.extract_strided_slice %92 {offsets = [3, 0, 0], sizes = [1, 4, 64], strides = [1, 1, 1]} : vector<4x4x64xf32> to vector<1x4x64xf32>
    %103 = vector.shape_cast %102 : vector<1x4x64xf32> to vector<4x64xf32>
    %c12 = arith.constant 12 : index
    %c0_72 = arith.constant 0 : index
    %104 = vector.load %arg10[%c12, %c0_72] : memref<16x64xf32, #tpu.memory_space<vmem>>, vector<4x64xf32>
    tpu.vector_store %arg10[%c12, %c0_72], %103 {strides = array<i32>} : memref<16x64xf32, #tpu.memory_space<vmem>>, vector<4x64xf32>,
    %c0_73 = arith.constant 0 : index
    %c0_74 = arith.constant 0 : index
    %105 = vector.load %arg10[%c0_73, %c0_74] : memref<16x64xf32, #tpu.memory_space<vmem>>, vector<16x64xf32>
    %106 = arith.truncf %105 : vector<16x64xf32> to vector<16x64xbf16>
    %c0_75 = arith.constant 0 : index
    %c0_76 = arith.constant 0 : index
    %107 = vector.load %arg6[%c0_75, %c0_76] : memref<64x16xbf16, #tpu.memory_space<vmem>>, vector<64x16xbf16>
    %cst_77 = arith.constant dense<0.000000e+00> : vector<16x16xf32>
    %108 = tpu.matmul %106, %107, %cst_77 {dimension_numbers = #tpu.dot_dimension_numbers<[1], [0], [0], [1], [0, 0, 1, 1], [], []>} : vector<16x64xbf16>, vector<64x16xbf16>, vector<16x16xf32> -> vector<16x16xf32>
    %c0_78 = arith.constant 0 : index
    %c0_79 = arith.constant 0 : index
    %109 = vector.load %arg7[%c0_78, %c0_79] : memref<1x16xf32, #tpu.memory_space<vmem>>, vector<1x16xf32>
    %110 = vector.broadcast %109 : vector<1x16xf32> to vector<16x16xf32>
    %111 = arith.addf %108, %110 : vector<16x16xf32>
    %c0_80 = arith.constant 0 : index
    %c0_81 = arith.constant 0 : index
    %c0_82 = arith.constant 0 : index
    %112 = vector.load %arg1[%c0_80, %c0_81, %c0_82] : memref<1x16x16xf32, #tpu.memory_space<vmem>>, vector<1x16x16xf32>
    %113 = vector.shape_cast %112 : vector<1x16x16xf32> to vector<16x16xf32>
    %114 = arith.addf %111, %113 : vector<16x16xf32>
    %c0_83 = arith.constant 0 : index
    %c0_84 = arith.constant 0 : index
    %c0_85 = arith.constant 0 : index
    %115 = vector.load %arg8[%c0_83, %c0_84, %c0_85] : memref<1x16x16xf32, #tpu.memory_space<vmem>>, vector<1x16x16xf32>
    %116 = vector.shape_cast %115 : vector<1x16x16xf32> to vector<16x16xf32>
    %117 = vector.shape_cast %114 : vector<16x16xf32> to vector<1x16x16xf32>
    tpu.vector_store %arg8[%c0_83, %c0_84, %c0_85], %117 {strides = array<i32>} : memref<1x16x16xf32, #tpu.memory_space<vmem>>, vector<1x16x16xf32>,
    return
  }
  func.func @transform_0(%arg0: i32) -> (i32, i32, i32) {
    %c0_i32 = arith.constant 0 : i32
    %c0_i32_0 = arith.constant 0 : i32
    %c0_i32_1 = arith.constant 0 : i32
    return %arg0, %c0_i32, %c0_i32_0 : i32, i32, i32
  }
  func.func @transform_1(%arg0: i32) -> (i32, i32) {
    %c0_i32 = arith.constant 0 : i32
    %c0_i32_0 = arith.constant 0 : i32
    %c0_i32_1 = arith.constant 0 : i32
    return %c0_i32, %c0_i32_0 : i32, i32
  }
  func.func @transform_2(%arg0: i32) -> (i32, i32) {
    %c0_i32 = arith.constant 0 : i32
    %c0_i32_0 = arith.constant 0 : i32
    %c0_i32_1 = arith.constant 0 : i32
    return %c0_i32, %c0_i32_0 : i32, i32
  }
  func.func @transform_3(%arg0: i32) -> (i32, i32) {
    %c0_i32 = arith.constant 0 : i32
    %c0_i32_0 = arith.constant 0 : i32
    %c0_i32_1 = arith.constant 0 : i32
    return %c0_i32, %c0_i32_0 : i32, i32
  }
  func.func @transform_4(%arg0: i32) -> (i32, i32) {
    %c0_i32 = arith.constant 0 : i32
    %c0_i32_0 = arith.constant 0 : i32
    %c0_i32_1 = arith.constant 0 : i32
    return %c0_i32, %c0_i32_0 : i32, i32
  }
  func.func @transform_5(%arg0: i32) -> (i32, i32) {
    %c0_i32 = arith.constant 0 : i32
    %c0_i32_0 = arith.constant 0 : i32
    %c0_i32_1 = arith.constant 0 : i32
    return %c0_i32, %c0_i32_0 : i32, i32
  }
  func.func @transform_6(%arg0: i32) -> (i32, i32) {
    %c0_i32 = arith.constant 0 : i32
    %c0_i32_0 = arith.constant 0 : i32
    %c0_i32_1 = arith.constant 0 : i32
    return %c0_i32, %c0_i32_0 : i32, i32
  }
  func.func @transform_7(%arg0: i32) -> (i32, i32, i32) {
    %c0_i32 = arith.constant 0 : i32
    %c0_i32_0 = arith.constant 0 : i32
    %c0_i32_1 = arith.constant 0 : i32
    return %arg0, %c0_i32, %c0_i32_0 : i32, i32, i32
  }
}

module attributes {stable_mosaic.version = 11 : i64} {
  func.func @_ir_s2_kernel(%arg0: i32, %arg1: memref<1x32x8xf32, #tpu.memory_space<vmem>>, %arg2: memref<1x32x8xf32, #tpu.memory_space<vmem>>, %arg3: memref<8x32xbf16, #tpu.memory_space<vmem>>, %arg4: memref<1x32xf32, #tpu.memory_space<vmem>>, %arg5: memref<9x32xf32, #tpu.memory_space<vmem>>, %arg6: memref<1x32xf32, #tpu.memory_space<vmem>>, %arg7: memref<32x16xbf16, #tpu.memory_space<vmem>>, %arg8: memref<1x16xf32, #tpu.memory_space<vmem>>, %arg9: memref<1x16x16xf32, #tpu.memory_space<vmem>>, %arg10: memref<9x5x32xf32, #tpu.memory_space<vmem>>, %arg11: memref<9x4x32xf32, #tpu.memory_space<vmem>>, %arg12: memref<16x32xf32, #tpu.memory_space<vmem>>) attributes {dimension_semantics = [#tpu.dimension_semantics<parallel>], iteration_bounds = array<i64: 2>, scalar_prefetch = 0 : i64, scratch_operands = 3 : i64, tpu.core_type = #tpu.core_type<tc>, window_params = [{transform_indices = @transform_0, window_bounds = array<i64: 1, 32, 8>}, {transform_indices = @transform_1, window_bounds = array<i64: 1, 32, 8>}, {pipeline_mode = #tpu.pipeline_mode<synchronous>, transform_indices = @transform_2, window_bounds = array<i64: 8, 32>}, {pipeline_mode = #tpu.pipeline_mode<synchronous>, transform_indices = @transform_3, window_bounds = array<i64: 1, 32>}, {pipeline_mode = #tpu.pipeline_mode<synchronous>, transform_indices = @transform_4, window_bounds = array<i64: 9, 32>}, {pipeline_mode = #tpu.pipeline_mode<synchronous>, transform_indices = @transform_5, window_bounds = array<i64: 1, 32>}, {pipeline_mode = #tpu.pipeline_mode<synchronous>, transform_indices = @transform_6, window_bounds = array<i64: 32, 16>}, {pipeline_mode = #tpu.pipeline_mode<synchronous>, transform_indices = @transform_7, window_bounds = array<i64: 1, 16>}, {transform_indices = @transform_8, window_bounds = array<i64: 1, 16, 16>}]} {
    %cst = arith.constant 0.000000e+00 : f32
    %0 = vector.broadcast %cst : f32 to vector<9x5x32xf32>
    %c0 = arith.constant 0 : index
    %c0_0 = arith.constant 0 : index
    %c0_1 = arith.constant 0 : index
    %1 = vector.load %arg10[%c0, %c0_0, %c0_1] : memref<9x5x32xf32, #tpu.memory_space<vmem>>, vector<9x5x32xf32>
    tpu.vector_store %arg10[%c0, %c0_0, %c0_1], %0 {strides = array<i32>} : memref<9x5x32xf32, #tpu.memory_space<vmem>>, vector<9x5x32xf32>,
    %cst_2 = arith.constant 0.000000e+00 : f32
    %2 = vector.broadcast %cst_2 : f32 to vector<9x4x32xf32>
    %c0_3 = arith.constant 0 : index
    %c0_4 = arith.constant 0 : index
    %c0_5 = arith.constant 0 : index
    %3 = vector.load %arg11[%c0_3, %c0_4, %c0_5] : memref<9x4x32xf32, #tpu.memory_space<vmem>>, vector<9x4x32xf32>
    tpu.vector_store %arg11[%c0_3, %c0_4, %c0_5], %2 {strides = array<i32>} : memref<9x4x32xf32, #tpu.memory_space<vmem>>, vector<9x4x32xf32>,
    %c0_6 = arith.constant 0 : index
    %c0_7 = arith.constant 0 : index
    %c0_8 = arith.constant 0 : index
    %4 = vector.load %arg1[%c0_6, %c0_7, %c0_8] : memref<1x32x8xf32, #tpu.memory_space<vmem>>, vector<1x32x8xf32>
    %5 = vector.shape_cast %4 : vector<1x32x8xf32> to vector<32x8xf32>
    %6 = arith.truncf %5 : vector<32x8xf32> to vector<32x8xbf16>
    %c0_9 = arith.constant 0 : index
    %c0_10 = arith.constant 0 : index
    %7 = vector.load %arg3[%c0_9, %c0_10] : memref<8x32xbf16, #tpu.memory_space<vmem>>, vector<8x32xbf16>
    %cst_11 = arith.constant dense<0.000000e+00> : vector<32x32xf32>
    %8 = tpu.matmul %6, %7, %cst_11 {dimension_numbers = #tpu.dot_dimension_numbers<[1], [0], [0], [1], [0, 0, 1, 1], [], []>} : vector<32x8xbf16>, vector<8x32xbf16>, vector<32x32xf32> -> vector<32x32xf32>
    %c0_12 = arith.constant 0 : index
    %c0_13 = arith.constant 0 : index
    %9 = vector.load %arg4[%c0_12, %c0_13] : memref<1x32xf32, #tpu.memory_space<vmem>>, vector<1x32xf32>
    %10 = vector.broadcast %9 : vector<1x32xf32> to vector<32x32xf32>
    %11 = arith.addf %8, %10 : vector<32x32xf32>
    %cst_14 = arith.constant 0.000000e+00 : f32
    %cst_15 = arith.constant 6.000000e+00 : f32
    %12 = vector.broadcast %cst_14 : f32 to vector<32x32xf32>
    %13 = arith.maximumf %12, %11 : vector<32x32xf32>
    %14 = vector.broadcast %cst_15 : f32 to vector<32x32xf32>
    %15 = arith.minimumf %14, %13 : vector<32x32xf32>
    %16 = vector.extract_strided_slice %15 {offsets = [0, 0], sizes = [4, 32], strides = [1, 1]} : vector<32x32xf32> to vector<4x32xf32>
    %c0_16 = arith.constant 0 : index
    %c0_17 = arith.constant 0 : index
    %c0_18 = arith.constant 0 : index
    %17 = vector.load %arg10[%c0_16, %c0_17, %c0_18] : memref<9x5x32xf32, #tpu.memory_space<vmem>>, vector<1x4x32xf32>
    %18 = vector.shape_cast %17 : vector<1x4x32xf32> to vector<4x32xf32>
    %19 = vector.shape_cast %16 : vector<4x32xf32> to vector<1x4x32xf32>
    tpu.vector_store %arg10[%c0_16, %c0_17, %c0_18], %19 {strides = array<i32>} : memref<9x5x32xf32, #tpu.memory_space<vmem>>, vector<1x4x32xf32>,
    %20 = vector.extract_strided_slice %15 {offsets = [4, 0], sizes = [4, 32], strides = [1, 1]} : vector<32x32xf32> to vector<4x32xf32>
    %c1 = arith.constant 1 : index
    %c0_19 = arith.constant 0 : index
    %c0_20 = arith.constant 0 : index
    %21 = vector.load %arg10[%c1, %c0_19, %c0_20] : memref<9x5x32xf32, #tpu.memory_space<vmem>>, vector<1x4x32xf32>
    %22 = vector.shape_cast %21 : vector<1x4x32xf32> to vector<4x32xf32>
    %23 = vector.shape_cast %20 : vector<4x32xf32> to vector<1x4x32xf32>
    tpu.vector_store %arg10[%c1, %c0_19, %c0_20], %23 {strides = array<i32>} : memref<9x5x32xf32, #tpu.memory_space<vmem>>, vector<1x4x32xf32>,
    %24 = vector.extract_strided_slice %15 {offsets = [8, 0], sizes = [4, 32], strides = [1, 1]} : vector<32x32xf32> to vector<4x32xf32>
    %c2 = arith.constant 2 : index
    %c0_21 = arith.constant 0 : index
    %c0_22 = arith.constant 0 : index
    %25 = vector.load %arg10[%c2, %c0_21, %c0_22] : memref<9x5x32xf32, #tpu.memory_space<vmem>>, vector<1x4x32xf32>
    %26 = vector.shape_cast %25 : vector<1x4x32xf32> to vector<4x32xf32>
    %27 = vector.shape_cast %24 : vector<4x32xf32> to vector<1x4x32xf32>
    tpu.vector_store %arg10[%c2, %c0_21, %c0_22], %27 {strides = array<i32>} : memref<9x5x32xf32, #tpu.memory_space<vmem>>, vector<1x4x32xf32>,
    %28 = vector.extract_strided_slice %15 {offsets = [12, 0], sizes = [4, 32], strides = [1, 1]} : vector<32x32xf32> to vector<4x32xf32>
    %c3 = arith.constant 3 : index
    %c0_23 = arith.constant 0 : index
    %c0_24 = arith.constant 0 : index
    %29 = vector.load %arg10[%c3, %c0_23, %c0_24] : memref<9x5x32xf32, #tpu.memory_space<vmem>>, vector<1x4x32xf32>
    %30 = vector.shape_cast %29 : vector<1x4x32xf32> to vector<4x32xf32>
    %31 = vector.shape_cast %28 : vector<4x32xf32> to vector<1x4x32xf32>
    tpu.vector_store %arg10[%c3, %c0_23, %c0_24], %31 {strides = array<i32>} : memref<9x5x32xf32, #tpu.memory_space<vmem>>, vector<1x4x32xf32>,
    %32 = vector.extract_strided_slice %15 {offsets = [16, 0], sizes = [4, 32], strides = [1, 1]} : vector<32x32xf32> to vector<4x32xf32>
    %c4 = arith.constant 4 : index
    %c0_25 = arith.constant 0 : index
    %c0_26 = arith.constant 0 : index
    %33 = vector.load %arg10[%c4, %c0_25, %c0_26] : memref<9x5x32xf32, #tpu.memory_space<vmem>>, vector<1x4x32xf32>
    %34 = vector.shape_cast %33 : vector<1x4x32xf32> to vector<4x32xf32>
    %35 = vector.shape_cast %32 : vector<4x32xf32> to vector<1x4x32xf32>
    tpu.vector_store %arg10[%c4, %c0_25, %c0_26], %35 {strides = array<i32>} : memref<9x5x32xf32, #tpu.memory_space<vmem>>, vector<1x4x32xf32>,
    %36 = vector.extract_strided_slice %15 {offsets = [20, 0], sizes = [4, 32], strides = [1, 1]} : vector<32x32xf32> to vector<4x32xf32>
    %c5 = arith.constant 5 : index
    %c0_27 = arith.constant 0 : index
    %c0_28 = arith.constant 0 : index
    %37 = vector.load %arg10[%c5, %c0_27, %c0_28] : memref<9x5x32xf32, #tpu.memory_space<vmem>>, vector<1x4x32xf32>
    %38 = vector.shape_cast %37 : vector<1x4x32xf32> to vector<4x32xf32>
    %39 = vector.shape_cast %36 : vector<4x32xf32> to vector<1x4x32xf32>
    tpu.vector_store %arg10[%c5, %c0_27, %c0_28], %39 {strides = array<i32>} : memref<9x5x32xf32, #tpu.memory_space<vmem>>, vector<1x4x32xf32>,
    %40 = vector.extract_strided_slice %15 {offsets = [24, 0], sizes = [4, 32], strides = [1, 1]} : vector<32x32xf32> to vector<4x32xf32>
    %c6 = arith.constant 6 : index
    %c0_29 = arith.constant 0 : index
    %c0_30 = arith.constant 0 : index
    %41 = vector.load %arg10[%c6, %c0_29, %c0_30] : memref<9x5x32xf32, #tpu.memory_space<vmem>>, vector<1x4x32xf32>
    %42 = vector.shape_cast %41 : vector<1x4x32xf32> to vector<4x32xf32>
    %43 = vector.shape_cast %40 : vector<4x32xf32> to vector<1x4x32xf32>
    tpu.vector_store %arg10[%c6, %c0_29, %c0_30], %43 {strides = array<i32>} : memref<9x5x32xf32, #tpu.memory_space<vmem>>, vector<1x4x32xf32>,
    %44 = vector.extract_strided_slice %15 {offsets = [28, 0], sizes = [4, 32], strides = [1, 1]} : vector<32x32xf32> to vector<4x32xf32>
    %c7 = arith.constant 7 : index
    %c0_31 = arith.constant 0 : index
    %c0_32 = arith.constant 0 : index
    %45 = vector.load %arg10[%c7, %c0_31, %c0_32] : memref<9x5x32xf32, #tpu.memory_space<vmem>>, vector<1x4x32xf32>
    %46 = vector.shape_cast %45 : vector<1x4x32xf32> to vector<4x32xf32>
    %47 = vector.shape_cast %44 : vector<4x32xf32> to vector<1x4x32xf32>
    tpu.vector_store %arg10[%c7, %c0_31, %c0_32], %47 {strides = array<i32>} : memref<9x5x32xf32, #tpu.memory_space<vmem>>, vector<1x4x32xf32>,
    %c0_33 = arith.constant 0 : index
    %c0_34 = arith.constant 0 : index
    %c0_35 = arith.constant 0 : index
    %48 = vector.load %arg2[%c0_33, %c0_34, %c0_35] : memref<1x32x8xf32, #tpu.memory_space<vmem>>, vector<1x32x8xf32>
    %49 = vector.shape_cast %48 : vector<1x32x8xf32> to vector<32x8xf32>
    %50 = arith.truncf %49 : vector<32x8xf32> to vector<32x8xbf16>
    %c0_36 = arith.constant 0 : index
    %c0_37 = arith.constant 0 : index
    %51 = vector.load %arg3[%c0_36, %c0_37] : memref<8x32xbf16, #tpu.memory_space<vmem>>, vector<8x32xbf16>
    %cst_38 = arith.constant dense<0.000000e+00> : vector<32x32xf32>
    %52 = tpu.matmul %50, %51, %cst_38 {dimension_numbers = #tpu.dot_dimension_numbers<[1], [0], [0], [1], [0, 0, 1, 1], [], []>} : vector<32x8xbf16>, vector<8x32xbf16>, vector<32x32xf32> -> vector<32x32xf32>
    %c0_39 = arith.constant 0 : index
    %c0_40 = arith.constant 0 : index
    %53 = vector.load %arg4[%c0_39, %c0_40] : memref<1x32xf32, #tpu.memory_space<vmem>>, vector<1x32xf32>
    %54 = vector.broadcast %53 : vector<1x32xf32> to vector<32x32xf32>
    %55 = arith.addf %52, %54 : vector<32x32xf32>
    %cst_41 = arith.constant 0.000000e+00 : f32
    %cst_42 = arith.constant 6.000000e+00 : f32
    %56 = vector.broadcast %cst_41 : f32 to vector<32x32xf32>
    %57 = arith.maximumf %56, %55 : vector<32x32xf32>
    %58 = vector.broadcast %cst_42 : f32 to vector<32x32xf32>
    %59 = arith.minimumf %58, %57 : vector<32x32xf32>
    %60 = vector.extract_strided_slice %59 {offsets = [0, 0], sizes = [4, 32], strides = [1, 1]} : vector<32x32xf32> to vector<4x32xf32>
    %c0_43 = arith.constant 0 : index
    %c0_44 = arith.constant 0 : index
    %c0_45 = arith.constant 0 : index
    %61 = vector.load %arg11[%c0_43, %c0_44, %c0_45] : memref<9x4x32xf32, #tpu.memory_space<vmem>>, vector<1x4x32xf32>
    %62 = vector.shape_cast %61 : vector<1x4x32xf32> to vector<4x32xf32>
    %63 = vector.shape_cast %60 : vector<4x32xf32> to vector<1x4x32xf32>
    tpu.vector_store %arg11[%c0_43, %c0_44, %c0_45], %63 {strides = array<i32>} : memref<9x4x32xf32, #tpu.memory_space<vmem>>, vector<1x4x32xf32>,
    %64 = vector.extract_strided_slice %59 {offsets = [4, 0], sizes = [4, 32], strides = [1, 1]} : vector<32x32xf32> to vector<4x32xf32>
    %c1_46 = arith.constant 1 : index
    %c0_47 = arith.constant 0 : index
    %c0_48 = arith.constant 0 : index
    %65 = vector.load %arg11[%c1_46, %c0_47, %c0_48] : memref<9x4x32xf32, #tpu.memory_space<vmem>>, vector<1x4x32xf32>
    %66 = vector.shape_cast %65 : vector<1x4x32xf32> to vector<4x32xf32>
    %67 = vector.shape_cast %64 : vector<4x32xf32> to vector<1x4x32xf32>
    tpu.vector_store %arg11[%c1_46, %c0_47, %c0_48], %67 {strides = array<i32>} : memref<9x4x32xf32, #tpu.memory_space<vmem>>, vector<1x4x32xf32>,
    %68 = vector.extract_strided_slice %59 {offsets = [8, 0], sizes = [4, 32], strides = [1, 1]} : vector<32x32xf32> to vector<4x32xf32>
    %c2_49 = arith.constant 2 : index
    %c0_50 = arith.constant 0 : index
    %c0_51 = arith.constant 0 : index
    %69 = vector.load %arg11[%c2_49, %c0_50, %c0_51] : memref<9x4x32xf32, #tpu.memory_space<vmem>>, vector<1x4x32xf32>
    %70 = vector.shape_cast %69 : vector<1x4x32xf32> to vector<4x32xf32>
    %71 = vector.shape_cast %68 : vector<4x32xf32> to vector<1x4x32xf32>
    tpu.vector_store %arg11[%c2_49, %c0_50, %c0_51], %71 {strides = array<i32>} : memref<9x4x32xf32, #tpu.memory_space<vmem>>, vector<1x4x32xf32>,
    %72 = vector.extract_strided_slice %59 {offsets = [12, 0], sizes = [4, 32], strides = [1, 1]} : vector<32x32xf32> to vector<4x32xf32>
    %c3_52 = arith.constant 3 : index
    %c0_53 = arith.constant 0 : index
    %c0_54 = arith.constant 0 : index
    %73 = vector.load %arg11[%c3_52, %c0_53, %c0_54] : memref<9x4x32xf32, #tpu.memory_space<vmem>>, vector<1x4x32xf32>
    %74 = vector.shape_cast %73 : vector<1x4x32xf32> to vector<4x32xf32>
    %75 = vector.shape_cast %72 : vector<4x32xf32> to vector<1x4x32xf32>
    tpu.vector_store %arg11[%c3_52, %c0_53, %c0_54], %75 {strides = array<i32>} : memref<9x4x32xf32, #tpu.memory_space<vmem>>, vector<1x4x32xf32>,
    %76 = vector.extract_strided_slice %59 {offsets = [16, 0], sizes = [4, 32], strides = [1, 1]} : vector<32x32xf32> to vector<4x32xf32>
    %c4_55 = arith.constant 4 : index
    %c0_56 = arith.constant 0 : index
    %c0_57 = arith.constant 0 : index
    %77 = vector.load %arg11[%c4_55, %c0_56, %c0_57] : memref<9x4x32xf32, #tpu.memory_space<vmem>>, vector<1x4x32xf32>
    %78 = vector.shape_cast %77 : vector<1x4x32xf32> to vector<4x32xf32>
    %79 = vector.shape_cast %76 : vector<4x32xf32> to vector<1x4x32xf32>
    tpu.vector_store %arg11[%c4_55, %c0_56, %c0_57], %79 {strides = array<i32>} : memref<9x4x32xf32, #tpu.memory_space<vmem>>, vector<1x4x32xf32>,
    %80 = vector.extract_strided_slice %59 {offsets = [20, 0], sizes = [4, 32], strides = [1, 1]} : vector<32x32xf32> to vector<4x32xf32>
    %c5_58 = arith.constant 5 : index
    %c0_59 = arith.constant 0 : index
    %c0_60 = arith.constant 0 : index
    %81 = vector.load %arg11[%c5_58, %c0_59, %c0_60] : memref<9x4x32xf32, #tpu.memory_space<vmem>>, vector<1x4x32xf32>
    %82 = vector.shape_cast %81 : vector<1x4x32xf32> to vector<4x32xf32>
    %83 = vector.shape_cast %80 : vector<4x32xf32> to vector<1x4x32xf32>
    tpu.vector_store %arg11[%c5_58, %c0_59, %c0_60], %83 {strides = array<i32>} : memref<9x4x32xf32, #tpu.memory_space<vmem>>, vector<1x4x32xf32>,
    %84 = vector.extract_strided_slice %59 {offsets = [24, 0], sizes = [4, 32], strides = [1, 1]} : vector<32x32xf32> to vector<4x32xf32>
    %c6_61 = arith.constant 6 : index
    %c0_62 = arith.constant 0 : index
    %c0_63 = arith.constant 0 : index
    %85 = vector.load %arg11[%c6_61, %c0_62, %c0_63] : memref<9x4x32xf32, #tpu.memory_space<vmem>>, vector<1x4x32xf32>
    %86 = vector.shape_cast %85 : vector<1x4x32xf32> to vector<4x32xf32>
    %87 = vector.shape_cast %84 : vector<4x32xf32> to vector<1x4x32xf32>
    tpu.vector_store %arg11[%c6_61, %c0_62, %c0_63], %87 {strides = array<i32>} : memref<9x4x32xf32, #tpu.memory_space<vmem>>, vector<1x4x32xf32>,
    %88 = vector.extract_strided_slice %59 {offsets = [28, 0], sizes = [4, 32], strides = [1, 1]} : vector<32x32xf32> to vector<4x32xf32>
    %c7_64 = arith.constant 7 : index
    %c0_65 = arith.constant 0 : index
    %c0_66 = arith.constant 0 : index
    %89 = vector.load %arg11[%c7_64, %c0_65, %c0_66] : memref<9x4x32xf32, #tpu.memory_space<vmem>>, vector<1x4x32xf32>
    %90 = vector.shape_cast %89 : vector<1x4x32xf32> to vector<4x32xf32>
    %91 = vector.shape_cast %88 : vector<4x32xf32> to vector<1x4x32xf32>
    tpu.vector_store %arg11[%c7_64, %c0_65, %c0_66], %91 {strides = array<i32>} : memref<9x4x32xf32, #tpu.memory_space<vmem>>, vector<1x4x32xf32>,
    %c0_67 = arith.constant 0 : index
    %c0_68 = arith.constant 0 : index
    %92 = vector.load %arg6[%c0_67, %c0_68] : memref<1x32xf32, #tpu.memory_space<vmem>>, vector<1x32xf32>
    %cst_69 = arith.constant 0.000000e+00 : f32
    %93 = vector.broadcast %cst_69 : f32 to vector<4x32xf32>
    %c0_70 = arith.constant 0 : index
    %c0_71 = arith.constant 0 : index
    %c0_72 = arith.constant 0 : index
    %94 = vector.load %arg10[%c0_70, %c0_71, %c0_72] : memref<9x5x32xf32, #tpu.memory_space<vmem>>, vector<1x4x32xf32>
    %95 = vector.shape_cast %94 : vector<1x4x32xf32> to vector<4x32xf32>
    %c0_73 = arith.constant 0 : index
    %c0_74 = arith.constant 0 : index
    %96 = vector.load %arg5[%c0_73, %c0_74] : memref<9x32xf32, #tpu.memory_space<vmem>>, vector<1x32xf32>
    %97 = vector.broadcast %96 : vector<1x32xf32> to vector<4x32xf32>
    %98 = arith.mulf %95, %97 : vector<4x32xf32>
    %99 = arith.addf %93, %98 : vector<4x32xf32>
    %c0_75 = arith.constant 0 : index
    %c0_76 = arith.constant 0 : index
    %c0_77 = arith.constant 0 : index
    %100 = vector.load %arg11[%c0_75, %c0_76, %c0_77] : memref<9x4x32xf32, #tpu.memory_space<vmem>>, vector<1x4x32xf32>
    %101 = vector.shape_cast %100 : vector<1x4x32xf32> to vector<4x32xf32>
    %c1_78 = arith.constant 1 : index
    %c0_79 = arith.constant 0 : index
    %102 = vector.load %arg5[%c1_78, %c0_79] : memref<9x32xf32, #tpu.memory_space<vmem>>, vector<1x32xf32>
    %103 = vector.broadcast %102 : vector<1x32xf32> to vector<4x32xf32>
    %104 = arith.mulf %101, %103 : vector<4x32xf32>
    %105 = arith.addf %99, %104 : vector<4x32xf32>
    %c0_80 = arith.constant 0 : index
    %c1_81 = arith.constant 1 : index
    %c0_82 = arith.constant 0 : index
    %106 = vector.load %arg10[%c0_80, %c1_81, %c0_82] : memref<9x5x32xf32, #tpu.memory_space<vmem>>, vector<1x4x32xf32>
    %107 = vector.shape_cast %106 : vector<1x4x32xf32> to vector<4x32xf32>
    %c2_83 = arith.constant 2 : index
    %c0_84 = arith.constant 0 : index
    %108 = vector.load %arg5[%c2_83, %c0_84] : memref<9x32xf32, #tpu.memory_space<vmem>>, vector<1x32xf32>
    %109 = vector.broadcast %108 : vector<1x32xf32> to vector<4x32xf32>
    %110 = arith.mulf %107, %109 : vector<4x32xf32>
    %111 = arith.addf %105, %110 : vector<4x32xf32>
    %c1_85 = arith.constant 1 : index
    %c0_86 = arith.constant 0 : index
    %c0_87 = arith.constant 0 : index
    %112 = vector.load %arg10[%c1_85, %c0_86, %c0_87] : memref<9x5x32xf32, #tpu.memory_space<vmem>>, vector<1x4x32xf32>
    %113 = vector.shape_cast %112 : vector<1x4x32xf32> to vector<4x32xf32>
    %c3_88 = arith.constant 3 : index
    %c0_89 = arith.constant 0 : index
    %114 = vector.load %arg5[%c3_88, %c0_89] : memref<9x32xf32, #tpu.memory_space<vmem>>, vector<1x32xf32>
    %115 = vector.broadcast %114 : vector<1x32xf32> to vector<4x32xf32>
    %116 = arith.mulf %113, %115 : vector<4x32xf32>
    %117 = arith.addf %111, %116 : vector<4x32xf32>
    %c1_90 = arith.constant 1 : index
    %c0_91 = arith.constant 0 : index
    %c0_92 = arith.constant 0 : index
    %118 = vector.load %arg11[%c1_90, %c0_91, %c0_92] : memref<9x4x32xf32, #tpu.memory_space<vmem>>, vector<1x4x32xf32>
    %119 = vector.shape_cast %118 : vector<1x4x32xf32> to vector<4x32xf32>
    %c4_93 = arith.constant 4 : index
    %c0_94 = arith.constant 0 : index
    %120 = vector.load %arg5[%c4_93, %c0_94] : memref<9x32xf32, #tpu.memory_space<vmem>>, vector<1x32xf32>
    %121 = vector.broadcast %120 : vector<1x32xf32> to vector<4x32xf32>
    %122 = arith.mulf %119, %121 : vector<4x32xf32>
    %123 = arith.addf %117, %122 : vector<4x32xf32>
    %c1_95 = arith.constant 1 : index
    %c1_96 = arith.constant 1 : index
    %c0_97 = arith.constant 0 : index
    %124 = vector.load %arg10[%c1_95, %c1_96, %c0_97] : memref<9x5x32xf32, #tpu.memory_space<vmem>>, vector<1x4x32xf32>
    %125 = vector.shape_cast %124 : vector<1x4x32xf32> to vector<4x32xf32>
    %c5_98 = arith.constant 5 : index
    %c0_99 = arith.constant 0 : index
    %126 = vector.load %arg5[%c5_98, %c0_99] : memref<9x32xf32, #tpu.memory_space<vmem>>, vector<1x32xf32>
    %127 = vector.broadcast %126 : vector<1x32xf32> to vector<4x32xf32>
    %128 = arith.mulf %125, %127 : vector<4x32xf32>
    %129 = arith.addf %123, %128 : vector<4x32xf32>
    %c2_100 = arith.constant 2 : index
    %c0_101 = arith.constant 0 : index
    %c0_102 = arith.constant 0 : index
    %130 = vector.load %arg10[%c2_100, %c0_101, %c0_102] : memref<9x5x32xf32, #tpu.memory_space<vmem>>, vector<1x4x32xf32>
    %131 = vector.shape_cast %130 : vector<1x4x32xf32> to vector<4x32xf32>
    %c6_103 = arith.constant 6 : index
    %c0_104 = arith.constant 0 : index
    %132 = vector.load %arg5[%c6_103, %c0_104] : memref<9x32xf32, #tpu.memory_space<vmem>>, vector<1x32xf32>
    %133 = vector.broadcast %132 : vector<1x32xf32> to vector<4x32xf32>
    %134 = arith.mulf %131, %133 : vector<4x32xf32>
    %135 = arith.addf %129, %134 : vector<4x32xf32>
    %c2_105 = arith.constant 2 : index
    %c0_106 = arith.constant 0 : index
    %c0_107 = arith.constant 0 : index
    %136 = vector.load %arg11[%c2_105, %c0_106, %c0_107] : memref<9x4x32xf32, #tpu.memory_space<vmem>>, vector<1x4x32xf32>
    %137 = vector.shape_cast %136 : vector<1x4x32xf32> to vector<4x32xf32>
    %c7_108 = arith.constant 7 : index
    %c0_109 = arith.constant 0 : index
    %138 = vector.load %arg5[%c7_108, %c0_109] : memref<9x32xf32, #tpu.memory_space<vmem>>, vector<1x32xf32>
    %139 = vector.broadcast %138 : vector<1x32xf32> to vector<4x32xf32>
    %140 = arith.mulf %137, %139 : vector<4x32xf32>
    %141 = arith.addf %135, %140 : vector<4x32xf32>
    %c2_110 = arith.constant 2 : index
    %c1_111 = arith.constant 1 : index
    %c0_112 = arith.constant 0 : index
    %142 = vector.load %arg10[%c2_110, %c1_111, %c0_112] : memref<9x5x32xf32, #tpu.memory_space<vmem>>, vector<1x4x32xf32>
    %143 = vector.shape_cast %142 : vector<1x4x32xf32> to vector<4x32xf32>
    %c8 = arith.constant 8 : index
    %c0_113 = arith.constant 0 : index
    %144 = vector.load %arg5[%c8, %c0_113] : memref<9x32xf32, #tpu.memory_space<vmem>>, vector<1x32xf32>
    %145 = vector.broadcast %144 : vector<1x32xf32> to vector<4x32xf32>
    %146 = arith.mulf %143, %145 : vector<4x32xf32>
    %147 = arith.addf %141, %146 : vector<4x32xf32>
    %148 = vector.broadcast %92 : vector<1x32xf32> to vector<4x32xf32>
    %149 = arith.addf %147, %148 : vector<4x32xf32>
    %cst_114 = arith.constant 0.000000e+00 : f32
    %cst_115 = arith.constant 6.000000e+00 : f32
    %150 = vector.broadcast %cst_114 : f32 to vector<4x32xf32>
    %151 = arith.maximumf %150, %149 : vector<4x32xf32>
    %152 = vector.broadcast %cst_115 : f32 to vector<4x32xf32>
    %153 = arith.minimumf %152, %151 : vector<4x32xf32>
    %c0_116 = arith.constant 0 : index
    %c0_117 = arith.constant 0 : index
    %154 = vector.load %arg12[%c0_116, %c0_117] : memref<16x32xf32, #tpu.memory_space<vmem>>, vector<4x32xf32>
    tpu.vector_store %arg12[%c0_116, %c0_117], %153 {strides = array<i32>} : memref<16x32xf32, #tpu.memory_space<vmem>>, vector<4x32xf32>,
    %cst_118 = arith.constant 0.000000e+00 : f32
    %155 = vector.broadcast %cst_118 : f32 to vector<4x32xf32>
    %c2_119 = arith.constant 2 : index
    %c0_120 = arith.constant 0 : index
    %c0_121 = arith.constant 0 : index
    %156 = vector.load %arg10[%c2_119, %c0_120, %c0_121] : memref<9x5x32xf32, #tpu.memory_space<vmem>>, vector<1x4x32xf32>
    %157 = vector.shape_cast %156 : vector<1x4x32xf32> to vector<4x32xf32>
    %c0_122 = arith.constant 0 : index
    %c0_123 = arith.constant 0 : index
    %158 = vector.load %arg5[%c0_122, %c0_123] : memref<9x32xf32, #tpu.memory_space<vmem>>, vector<1x32xf32>
    %159 = vector.broadcast %158 : vector<1x32xf32> to vector<4x32xf32>
    %160 = arith.mulf %157, %159 : vector<4x32xf32>
    %161 = arith.addf %155, %160 : vector<4x32xf32>
    %c2_124 = arith.constant 2 : index
    %c0_125 = arith.constant 0 : index
    %c0_126 = arith.constant 0 : index
    %162 = vector.load %arg11[%c2_124, %c0_125, %c0_126] : memref<9x4x32xf32, #tpu.memory_space<vmem>>, vector<1x4x32xf32>
    %163 = vector.shape_cast %162 : vector<1x4x32xf32> to vector<4x32xf32>
    %c1_127 = arith.constant 1 : index
    %c0_128 = arith.constant 0 : index
    %164 = vector.load %arg5[%c1_127, %c0_128] : memref<9x32xf32, #tpu.memory_space<vmem>>, vector<1x32xf32>
    %165 = vector.broadcast %164 : vector<1x32xf32> to vector<4x32xf32>
    %166 = arith.mulf %163, %165 : vector<4x32xf32>
    %167 = arith.addf %161, %166 : vector<4x32xf32>
    %c2_129 = arith.constant 2 : index
    %c1_130 = arith.constant 1 : index
    %c0_131 = arith.constant 0 : index
    %168 = vector.load %arg10[%c2_129, %c1_130, %c0_131] : memref<9x5x32xf32, #tpu.memory_space<vmem>>, vector<1x4x32xf32>
    %169 = vector.shape_cast %168 : vector<1x4x32xf32> to vector<4x32xf32>
    %c2_132 = arith.constant 2 : index
    %c0_133 = arith.constant 0 : index
    %170 = vector.load %arg5[%c2_132, %c0_133] : memref<9x32xf32, #tpu.memory_space<vmem>>, vector<1x32xf32>
    %171 = vector.broadcast %170 : vector<1x32xf32> to vector<4x32xf32>
    %172 = arith.mulf %169, %171 : vector<4x32xf32>
    %173 = arith.addf %167, %172 : vector<4x32xf32>
    %c3_134 = arith.constant 3 : index
    %c0_135 = arith.constant 0 : index
    %c0_136 = arith.constant 0 : index
    %174 = vector.load %arg10[%c3_134, %c0_135, %c0_136] : memref<9x5x32xf32, #tpu.memory_space<vmem>>, vector<1x4x32xf32>
    %175 = vector.shape_cast %174 : vector<1x4x32xf32> to vector<4x32xf32>
    %c3_137 = arith.constant 3 : index
    %c0_138 = arith.constant 0 : index
    %176 = vector.load %arg5[%c3_137, %c0_138] : memref<9x32xf32, #tpu.memory_space<vmem>>, vector<1x32xf32>
    %177 = vector.broadcast %176 : vector<1x32xf32> to vector<4x32xf32>
    %178 = arith.mulf %175, %177 : vector<4x32xf32>
    %179 = arith.addf %173, %178 : vector<4x32xf32>
    %c3_139 = arith.constant 3 : index
    %c0_140 = arith.constant 0 : index
    %c0_141 = arith.constant 0 : index
    %180 = vector.load %arg11[%c3_139, %c0_140, %c0_141] : memref<9x4x32xf32, #tpu.memory_space<vmem>>, vector<1x4x32xf32>
    %181 = vector.shape_cast %180 : vector<1x4x32xf32> to vector<4x32xf32>
    %c4_142 = arith.constant 4 : index
    %c0_143 = arith.constant 0 : index
    %182 = vector.load %arg5[%c4_142, %c0_143] : memref<9x32xf32, #tpu.memory_space<vmem>>, vector<1x32xf32>
    %183 = vector.broadcast %182 : vector<1x32xf32> to vector<4x32xf32>
    %184 = arith.mulf %181, %183 : vector<4x32xf32>
    %185 = arith.addf %179, %184 : vector<4x32xf32>
    %c3_144 = arith.constant 3 : index
    %c1_145 = arith.constant 1 : index
    %c0_146 = arith.constant 0 : index
    %186 = vector.load %arg10[%c3_144, %c1_145, %c0_146] : memref<9x5x32xf32, #tpu.memory_space<vmem>>, vector<1x4x32xf32>
    %187 = vector.shape_cast %186 : vector<1x4x32xf32> to vector<4x32xf32>
    %c5_147 = arith.constant 5 : index
    %c0_148 = arith.constant 0 : index
    %188 = vector.load %arg5[%c5_147, %c0_148] : memref<9x32xf32, #tpu.memory_space<vmem>>, vector<1x32xf32>
    %189 = vector.broadcast %188 : vector<1x32xf32> to vector<4x32xf32>
    %190 = arith.mulf %187, %189 : vector<4x32xf32>
    %191 = arith.addf %185, %190 : vector<4x32xf32>
    %c4_149 = arith.constant 4 : index
    %c0_150 = arith.constant 0 : index
    %c0_151 = arith.constant 0 : index
    %192 = vector.load %arg10[%c4_149, %c0_150, %c0_151] : memref<9x5x32xf32, #tpu.memory_space<vmem>>, vector<1x4x32xf32>
    %193 = vector.shape_cast %192 : vector<1x4x32xf32> to vector<4x32xf32>
    %c6_152 = arith.constant 6 : index
    %c0_153 = arith.constant 0 : index
    %194 = vector.load %arg5[%c6_152, %c0_153] : memref<9x32xf32, #tpu.memory_space<vmem>>, vector<1x32xf32>
    %195 = vector.broadcast %194 : vector<1x32xf32> to vector<4x32xf32>
    %196 = arith.mulf %193, %195 : vector<4x32xf32>
    %197 = arith.addf %191, %196 : vector<4x32xf32>
    %c4_154 = arith.constant 4 : index
    %c0_155 = arith.constant 0 : index
    %c0_156 = arith.constant 0 : index
    %198 = vector.load %arg11[%c4_154, %c0_155, %c0_156] : memref<9x4x32xf32, #tpu.memory_space<vmem>>, vector<1x4x32xf32>
    %199 = vector.shape_cast %198 : vector<1x4x32xf32> to vector<4x32xf32>
    %c7_157 = arith.constant 7 : index
    %c0_158 = arith.constant 0 : index
    %200 = vector.load %arg5[%c7_157, %c0_158] : memref<9x32xf32, #tpu.memory_space<vmem>>, vector<1x32xf32>
    %201 = vector.broadcast %200 : vector<1x32xf32> to vector<4x32xf32>
    %202 = arith.mulf %199, %201 : vector<4x32xf32>
    %203 = arith.addf %197, %202 : vector<4x32xf32>
    %c4_159 = arith.constant 4 : index
    %c1_160 = arith.constant 1 : index
    %c0_161 = arith.constant 0 : index
    %204 = vector.load %arg10[%c4_159, %c1_160, %c0_161] : memref<9x5x32xf32, #tpu.memory_space<vmem>>, vector<1x4x32xf32>
    %205 = vector.shape_cast %204 : vector<1x4x32xf32> to vector<4x32xf32>
    %c8_162 = arith.constant 8 : index
    %c0_163 = arith.constant 0 : index
    %206 = vector.load %arg5[%c8_162, %c0_163] : memref<9x32xf32, #tpu.memory_space<vmem>>, vector<1x32xf32>
    %207 = vector.broadcast %206 : vector<1x32xf32> to vector<4x32xf32>
    %208 = arith.mulf %205, %207 : vector<4x32xf32>
    %209 = arith.addf %203, %208 : vector<4x32xf32>
    %210 = vector.broadcast %92 : vector<1x32xf32> to vector<4x32xf32>
    %211 = arith.addf %209, %210 : vector<4x32xf32>
    %cst_164 = arith.constant 0.000000e+00 : f32
    %cst_165 = arith.constant 6.000000e+00 : f32
    %212 = vector.broadcast %cst_164 : f32 to vector<4x32xf32>
    %213 = arith.maximumf %212, %211 : vector<4x32xf32>
    %214 = vector.broadcast %cst_165 : f32 to vector<4x32xf32>
    %215 = arith.minimumf %214, %213 : vector<4x32xf32>
    %c4_166 = arith.constant 4 : index
    %c0_167 = arith.constant 0 : index
    %216 = vector.load %arg12[%c4_166, %c0_167] : memref<16x32xf32, #tpu.memory_space<vmem>>, vector<4x32xf32>
    tpu.vector_store %arg12[%c4_166, %c0_167], %215 {strides = array<i32>} : memref<16x32xf32, #tpu.memory_space<vmem>>, vector<4x32xf32>,
    %cst_168 = arith.constant 0.000000e+00 : f32
    %217 = vector.broadcast %cst_168 : f32 to vector<4x32xf32>
    %c4_169 = arith.constant 4 : index
    %c0_170 = arith.constant 0 : index
    %c0_171 = arith.constant 0 : index
    %218 = vector.load %arg10[%c4_169, %c0_170, %c0_171] : memref<9x5x32xf32, #tpu.memory_space<vmem>>, vector<1x4x32xf32>
    %219 = vector.shape_cast %218 : vector<1x4x32xf32> to vector<4x32xf32>
    %c0_172 = arith.constant 0 : index
    %c0_173 = arith.constant 0 : index
    %220 = vector.load %arg5[%c0_172, %c0_173] : memref<9x32xf32, #tpu.memory_space<vmem>>, vector<1x32xf32>
    %221 = vector.broadcast %220 : vector<1x32xf32> to vector<4x32xf32>
    %222 = arith.mulf %219, %221 : vector<4x32xf32>
    %223 = arith.addf %217, %222 : vector<4x32xf32>
    %c4_174 = arith.constant 4 : index
    %c0_175 = arith.constant 0 : index
    %c0_176 = arith.constant 0 : index
    %224 = vector.load %arg11[%c4_174, %c0_175, %c0_176] : memref<9x4x32xf32, #tpu.memory_space<vmem>>, vector<1x4x32xf32>
    %225 = vector.shape_cast %224 : vector<1x4x32xf32> to vector<4x32xf32>
    %c1_177 = arith.constant 1 : index
    %c0_178 = arith.constant 0 : index
    %226 = vector.load %arg5[%c1_177, %c0_178] : memref<9x32xf32, #tpu.memory_space<vmem>>, vector<1x32xf32>
    %227 = vector.broadcast %226 : vector<1x32xf32> to vector<4x32xf32>
    %228 = arith.mulf %225, %227 : vector<4x32xf32>
    %229 = arith.addf %223, %228 : vector<4x32xf32>
    %c4_179 = arith.constant 4 : index
    %c1_180 = arith.constant 1 : index
    %c0_181 = arith.constant 0 : index
    %230 = vector.load %arg10[%c4_179, %c1_180, %c0_181] : memref<9x5x32xf32, #tpu.memory_space<vmem>>, vector<1x4x32xf32>
    %231 = vector.shape_cast %230 : vector<1x4x32xf32> to vector<4x32xf32>
    %c2_182 = arith.constant 2 : index
    %c0_183 = arith.constant 0 : index
    %232 = vector.load %arg5[%c2_182, %c0_183] : memref<9x32xf32, #tpu.memory_space<vmem>>, vector<1x32xf32>
    %233 = vector.broadcast %232 : vector<1x32xf32> to vector<4x32xf32>
    %234 = arith.mulf %231, %233 : vector<4x32xf32>
    %235 = arith.addf %229, %234 : vector<4x32xf32>
    %c5_184 = arith.constant 5 : index
    %c0_185 = arith.constant 0 : index
    %c0_186 = arith.constant 0 : index
    %236 = vector.load %arg10[%c5_184, %c0_185, %c0_186] : memref<9x5x32xf32, #tpu.memory_space<vmem>>, vector<1x4x32xf32>
    %237 = vector.shape_cast %236 : vector<1x4x32xf32> to vector<4x32xf32>
    %c3_187 = arith.constant 3 : index
    %c0_188 = arith.constant 0 : index
    %238 = vector.load %arg5[%c3_187, %c0_188] : memref<9x32xf32, #tpu.memory_space<vmem>>, vector<1x32xf32>
    %239 = vector.broadcast %238 : vector<1x32xf32> to vector<4x32xf32>
    %240 = arith.mulf %237, %239 : vector<4x32xf32>
    %241 = arith.addf %235, %240 : vector<4x32xf32>
    %c5_189 = arith.constant 5 : index
    %c0_190 = arith.constant 0 : index
    %c0_191 = arith.constant 0 : index
    %242 = vector.load %arg11[%c5_189, %c0_190, %c0_191] : memref<9x4x32xf32, #tpu.memory_space<vmem>>, vector<1x4x32xf32>
    %243 = vector.shape_cast %242 : vector<1x4x32xf32> to vector<4x32xf32>
    %c4_192 = arith.constant 4 : index
    %c0_193 = arith.constant 0 : index
    %244 = vector.load %arg5[%c4_192, %c0_193] : memref<9x32xf32, #tpu.memory_space<vmem>>, vector<1x32xf32>
    %245 = vector.broadcast %244 : vector<1x32xf32> to vector<4x32xf32>
    %246 = arith.mulf %243, %245 : vector<4x32xf32>
    %247 = arith.addf %241, %246 : vector<4x32xf32>
    %c5_194 = arith.constant 5 : index
    %c1_195 = arith.constant 1 : index
    %c0_196 = arith.constant 0 : index
    %248 = vector.load %arg10[%c5_194, %c1_195, %c0_196] : memref<9x5x32xf32, #tpu.memory_space<vmem>>, vector<1x4x32xf32>
    %249 = vector.shape_cast %248 : vector<1x4x32xf32> to vector<4x32xf32>
    %c5_197 = arith.constant 5 : index
    %c0_198 = arith.constant 0 : index
    %250 = vector.load %arg5[%c5_197, %c0_198] : memref<9x32xf32, #tpu.memory_space<vmem>>, vector<1x32xf32>
    %251 = vector.broadcast %250 : vector<1x32xf32> to vector<4x32xf32>
    %252 = arith.mulf %249, %251 : vector<4x32xf32>
    %253 = arith.addf %247, %252 : vector<4x32xf32>
    %c6_199 = arith.constant 6 : index
    %c0_200 = arith.constant 0 : index
    %c0_201 = arith.constant 0 : index
    %254 = vector.load %arg10[%c6_199, %c0_200, %c0_201] : memref<9x5x32xf32, #tpu.memory_space<vmem>>, vector<1x4x32xf32>
    %255 = vector.shape_cast %254 : vector<1x4x32xf32> to vector<4x32xf32>
    %c6_202 = arith.constant 6 : index
    %c0_203 = arith.constant 0 : index
    %256 = vector.load %arg5[%c6_202, %c0_203] : memref<9x32xf32, #tpu.memory_space<vmem>>, vector<1x32xf32>
    %257 = vector.broadcast %256 : vector<1x32xf32> to vector<4x32xf32>
    %258 = arith.mulf %255, %257 : vector<4x32xf32>
    %259 = arith.addf %253, %258 : vector<4x32xf32>
    %c6_204 = arith.constant 6 : index
    %c0_205 = arith.constant 0 : index
    %c0_206 = arith.constant 0 : index
    %260 = vector.load %arg11[%c6_204, %c0_205, %c0_206] : memref<9x4x32xf32, #tpu.memory_space<vmem>>, vector<1x4x32xf32>
    %261 = vector.shape_cast %260 : vector<1x4x32xf32> to vector<4x32xf32>
    %c7_207 = arith.constant 7 : index
    %c0_208 = arith.constant 0 : index
    %262 = vector.load %arg5[%c7_207, %c0_208] : memref<9x32xf32, #tpu.memory_space<vmem>>, vector<1x32xf32>
    %263 = vector.broadcast %262 : vector<1x32xf32> to vector<4x32xf32>
    %264 = arith.mulf %261, %263 : vector<4x32xf32>
    %265 = arith.addf %259, %264 : vector<4x32xf32>
    %c6_209 = arith.constant 6 : index
    %c1_210 = arith.constant 1 : index
    %c0_211 = arith.constant 0 : index
    %266 = vector.load %arg10[%c6_209, %c1_210, %c0_211] : memref<9x5x32xf32, #tpu.memory_space<vmem>>, vector<1x4x32xf32>
    %267 = vector.shape_cast %266 : vector<1x4x32xf32> to vector<4x32xf32>
    %c8_212 = arith.constant 8 : index
    %c0_213 = arith.constant 0 : index
    %268 = vector.load %arg5[%c8_212, %c0_213] : memref<9x32xf32, #tpu.memory_space<vmem>>, vector<1x32xf32>
    %269 = vector.broadcast %268 : vector<1x32xf32> to vector<4x32xf32>
    %270 = arith.mulf %267, %269 : vector<4x32xf32>
    %271 = arith.addf %265, %270 : vector<4x32xf32>
    %272 = vector.broadcast %92 : vector<1x32xf32> to vector<4x32xf32>
    %273 = arith.addf %271, %272 : vector<4x32xf32>
    %cst_214 = arith.constant 0.000000e+00 : f32
    %cst_215 = arith.constant 6.000000e+00 : f32
    %274 = vector.broadcast %cst_214 : f32 to vector<4x32xf32>
    %275 = arith.maximumf %274, %273 : vector<4x32xf32>
    %276 = vector.broadcast %cst_215 : f32 to vector<4x32xf32>
    %277 = arith.minimumf %276, %275 : vector<4x32xf32>
    %c8_216 = arith.constant 8 : index
    %c0_217 = arith.constant 0 : index
    %278 = vector.load %arg12[%c8_216, %c0_217] : memref<16x32xf32, #tpu.memory_space<vmem>>, vector<4x32xf32>
    tpu.vector_store %arg12[%c8_216, %c0_217], %277 {strides = array<i32>} : memref<16x32xf32, #tpu.memory_space<vmem>>, vector<4x32xf32>,
    %cst_218 = arith.constant 0.000000e+00 : f32
    %279 = vector.broadcast %cst_218 : f32 to vector<4x32xf32>
    %c6_219 = arith.constant 6 : index
    %c0_220 = arith.constant 0 : index
    %c0_221 = arith.constant 0 : index
    %280 = vector.load %arg10[%c6_219, %c0_220, %c0_221] : memref<9x5x32xf32, #tpu.memory_space<vmem>>, vector<1x4x32xf32>
    %281 = vector.shape_cast %280 : vector<1x4x32xf32> to vector<4x32xf32>
    %c0_222 = arith.constant 0 : index
    %c0_223 = arith.constant 0 : index
    %282 = vector.load %arg5[%c0_222, %c0_223] : memref<9x32xf32, #tpu.memory_space<vmem>>, vector<1x32xf32>
    %283 = vector.broadcast %282 : vector<1x32xf32> to vector<4x32xf32>
    %284 = arith.mulf %281, %283 : vector<4x32xf32>
    %285 = arith.addf %279, %284 : vector<4x32xf32>
    %c6_224 = arith.constant 6 : index
    %c0_225 = arith.constant 0 : index
    %c0_226 = arith.constant 0 : index
    %286 = vector.load %arg11[%c6_224, %c0_225, %c0_226] : memref<9x4x32xf32, #tpu.memory_space<vmem>>, vector<1x4x32xf32>
    %287 = vector.shape_cast %286 : vector<1x4x32xf32> to vector<4x32xf32>
    %c1_227 = arith.constant 1 : index
    %c0_228 = arith.constant 0 : index
    %288 = vector.load %arg5[%c1_227, %c0_228] : memref<9x32xf32, #tpu.memory_space<vmem>>, vector<1x32xf32>
    %289 = vector.broadcast %288 : vector<1x32xf32> to vector<4x32xf32>
    %290 = arith.mulf %287, %289 : vector<4x32xf32>
    %291 = arith.addf %285, %290 : vector<4x32xf32>
    %c6_229 = arith.constant 6 : index
    %c1_230 = arith.constant 1 : index
    %c0_231 = arith.constant 0 : index
    %292 = vector.load %arg10[%c6_229, %c1_230, %c0_231] : memref<9x5x32xf32, #tpu.memory_space<vmem>>, vector<1x4x32xf32>
    %293 = vector.shape_cast %292 : vector<1x4x32xf32> to vector<4x32xf32>
    %c2_232 = arith.constant 2 : index
    %c0_233 = arith.constant 0 : index
    %294 = vector.load %arg5[%c2_232, %c0_233] : memref<9x32xf32, #tpu.memory_space<vmem>>, vector<1x32xf32>
    %295 = vector.broadcast %294 : vector<1x32xf32> to vector<4x32xf32>
    %296 = arith.mulf %293, %295 : vector<4x32xf32>
    %297 = arith.addf %291, %296 : vector<4x32xf32>
    %c7_234 = arith.constant 7 : index
    %c0_235 = arith.constant 0 : index
    %c0_236 = arith.constant 0 : index
    %298 = vector.load %arg10[%c7_234, %c0_235, %c0_236] : memref<9x5x32xf32, #tpu.memory_space<vmem>>, vector<1x4x32xf32>
    %299 = vector.shape_cast %298 : vector<1x4x32xf32> to vector<4x32xf32>
    %c3_237 = arith.constant 3 : index
    %c0_238 = arith.constant 0 : index
    %300 = vector.load %arg5[%c3_237, %c0_238] : memref<9x32xf32, #tpu.memory_space<vmem>>, vector<1x32xf32>
    %301 = vector.broadcast %300 : vector<1x32xf32> to vector<4x32xf32>
    %302 = arith.mulf %299, %301 : vector<4x32xf32>
    %303 = arith.addf %297, %302 : vector<4x32xf32>
    %c7_239 = arith.constant 7 : index
    %c0_240 = arith.constant 0 : index
    %c0_241 = arith.constant 0 : index
    %304 = vector.load %arg11[%c7_239, %c0_240, %c0_241] : memref<9x4x32xf32, #tpu.memory_space<vmem>>, vector<1x4x32xf32>
    %305 = vector.shape_cast %304 : vector<1x4x32xf32> to vector<4x32xf32>
    %c4_242 = arith.constant 4 : index
    %c0_243 = arith.constant 0 : index
    %306 = vector.load %arg5[%c4_242, %c0_243] : memref<9x32xf32, #tpu.memory_space<vmem>>, vector<1x32xf32>
    %307 = vector.broadcast %306 : vector<1x32xf32> to vector<4x32xf32>
    %308 = arith.mulf %305, %307 : vector<4x32xf32>
    %309 = arith.addf %303, %308 : vector<4x32xf32>
    %c7_244 = arith.constant 7 : index
    %c1_245 = arith.constant 1 : index
    %c0_246 = arith.constant 0 : index
    %310 = vector.load %arg10[%c7_244, %c1_245, %c0_246] : memref<9x5x32xf32, #tpu.memory_space<vmem>>, vector<1x4x32xf32>
    %311 = vector.shape_cast %310 : vector<1x4x32xf32> to vector<4x32xf32>
    %c5_247 = arith.constant 5 : index
    %c0_248 = arith.constant 0 : index
    %312 = vector.load %arg5[%c5_247, %c0_248] : memref<9x32xf32, #tpu.memory_space<vmem>>, vector<1x32xf32>
    %313 = vector.broadcast %312 : vector<1x32xf32> to vector<4x32xf32>
    %314 = arith.mulf %311, %313 : vector<4x32xf32>
    %315 = arith.addf %309, %314 : vector<4x32xf32>
    %c8_249 = arith.constant 8 : index
    %c0_250 = arith.constant 0 : index
    %c0_251 = arith.constant 0 : index
    %316 = vector.load %arg10[%c8_249, %c0_250, %c0_251] : memref<9x5x32xf32, #tpu.memory_space<vmem>>, vector<1x4x32xf32>
    %317 = vector.shape_cast %316 : vector<1x4x32xf32> to vector<4x32xf32>
    %c6_252 = arith.constant 6 : index
    %c0_253 = arith.constant 0 : index
    %318 = vector.load %arg5[%c6_252, %c0_253] : memref<9x32xf32, #tpu.memory_space<vmem>>, vector<1x32xf32>
    %319 = vector.broadcast %318 : vector<1x32xf32> to vector<4x32xf32>
    %320 = arith.mulf %317, %319 : vector<4x32xf32>
    %321 = arith.addf %315, %320 : vector<4x32xf32>
    %c8_254 = arith.constant 8 : index
    %c0_255 = arith.constant 0 : index
    %c0_256 = arith.constant 0 : index
    %322 = vector.load %arg11[%c8_254, %c0_255, %c0_256] : memref<9x4x32xf32, #tpu.memory_space<vmem>>, vector<1x4x32xf32>
    %323 = vector.shape_cast %322 : vector<1x4x32xf32> to vector<4x32xf32>
    %c7_257 = arith.constant 7 : index
    %c0_258 = arith.constant 0 : index
    %324 = vector.load %arg5[%c7_257, %c0_258] : memref<9x32xf32, #tpu.memory_space<vmem>>, vector<1x32xf32>
    %325 = vector.broadcast %324 : vector<1x32xf32> to vector<4x32xf32>
    %326 = arith.mulf %323, %325 : vector<4x32xf32>
    %327 = arith.addf %321, %326 : vector<4x32xf32>
    %c8_259 = arith.constant 8 : index
    %c1_260 = arith.constant 1 : index
    %c0_261 = arith.constant 0 : index
    %328 = vector.load %arg10[%c8_259, %c1_260, %c0_261] : memref<9x5x32xf32, #tpu.memory_space<vmem>>, vector<1x4x32xf32>
    %329 = vector.shape_cast %328 : vector<1x4x32xf32> to vector<4x32xf32>
    %c8_262 = arith.constant 8 : index
    %c0_263 = arith.constant 0 : index
    %330 = vector.load %arg5[%c8_262, %c0_263] : memref<9x32xf32, #tpu.memory_space<vmem>>, vector<1x32xf32>
    %331 = vector.broadcast %330 : vector<1x32xf32> to vector<4x32xf32>
    %332 = arith.mulf %329, %331 : vector<4x32xf32>
    %333 = arith.addf %327, %332 : vector<4x32xf32>
    %334 = vector.broadcast %92 : vector<1x32xf32> to vector<4x32xf32>
    %335 = arith.addf %333, %334 : vector<4x32xf32>
    %cst_264 = arith.constant 0.000000e+00 : f32
    %cst_265 = arith.constant 6.000000e+00 : f32
    %336 = vector.broadcast %cst_264 : f32 to vector<4x32xf32>
    %337 = arith.maximumf %336, %335 : vector<4x32xf32>
    %338 = vector.broadcast %cst_265 : f32 to vector<4x32xf32>
    %339 = arith.minimumf %338, %337 : vector<4x32xf32>
    %c12 = arith.constant 12 : index
    %c0_266 = arith.constant 0 : index
    %340 = vector.load %arg12[%c12, %c0_266] : memref<16x32xf32, #tpu.memory_space<vmem>>, vector<4x32xf32>
    tpu.vector_store %arg12[%c12, %c0_266], %339 {strides = array<i32>} : memref<16x32xf32, #tpu.memory_space<vmem>>, vector<4x32xf32>,
    %c0_267 = arith.constant 0 : index
    %c0_268 = arith.constant 0 : index
    %341 = vector.load %arg12[%c0_267, %c0_268] : memref<16x32xf32, #tpu.memory_space<vmem>>, vector<16x32xf32>
    %342 = arith.truncf %341 : vector<16x32xf32> to vector<16x32xbf16>
    %c0_269 = arith.constant 0 : index
    %c0_270 = arith.constant 0 : index
    %343 = vector.load %arg7[%c0_269, %c0_270] : memref<32x16xbf16, #tpu.memory_space<vmem>>, vector<32x16xbf16>
    %cst_271 = arith.constant dense<0.000000e+00> : vector<16x16xf32>
    %344 = tpu.matmul %342, %343, %cst_271 {dimension_numbers = #tpu.dot_dimension_numbers<[1], [0], [0], [1], [0, 0, 1, 1], [], []>} : vector<16x32xbf16>, vector<32x16xbf16>, vector<16x16xf32> -> vector<16x16xf32>
    %c0_272 = arith.constant 0 : index
    %c0_273 = arith.constant 0 : index
    %345 = vector.load %arg8[%c0_272, %c0_273] : memref<1x16xf32, #tpu.memory_space<vmem>>, vector<1x16xf32>
    %346 = vector.broadcast %345 : vector<1x16xf32> to vector<16x16xf32>
    %347 = arith.addf %344, %346 : vector<16x16xf32>
    %c0_274 = arith.constant 0 : index
    %c0_275 = arith.constant 0 : index
    %c0_276 = arith.constant 0 : index
    %348 = vector.load %arg9[%c0_274, %c0_275, %c0_276] : memref<1x16x16xf32, #tpu.memory_space<vmem>>, vector<1x16x16xf32>
    %349 = vector.shape_cast %348 : vector<1x16x16xf32> to vector<16x16xf32>
    %350 = vector.shape_cast %347 : vector<16x16xf32> to vector<1x16x16xf32>
    tpu.vector_store %arg9[%c0_274, %c0_275, %c0_276], %350 {strides = array<i32>} : memref<1x16x16xf32, #tpu.memory_space<vmem>>, vector<1x16x16xf32>,
    return
  }
  func.func @transform_0(%arg0: i32) -> (i32, i32, i32) {
    %c0_i32 = arith.constant 0 : i32
    %c0_i32_0 = arith.constant 0 : i32
    %c0_i32_1 = arith.constant 0 : i32
    return %arg0, %c0_i32, %c0_i32_0 : i32, i32, i32
  }
  func.func @transform_1(%arg0: i32) -> (i32, i32, i32) {
    %c0_i32 = arith.constant 0 : i32
    %c0_i32_0 = arith.constant 0 : i32
    %c0_i32_1 = arith.constant 0 : i32
    return %arg0, %c0_i32, %c0_i32_0 : i32, i32, i32
  }
  func.func @transform_2(%arg0: i32) -> (i32, i32) {
    %c0_i32 = arith.constant 0 : i32
    %c0_i32_0 = arith.constant 0 : i32
    %c0_i32_1 = arith.constant 0 : i32
    return %c0_i32, %c0_i32_0 : i32, i32
  }
  func.func @transform_3(%arg0: i32) -> (i32, i32) {
    %c0_i32 = arith.constant 0 : i32
    %c0_i32_0 = arith.constant 0 : i32
    %c0_i32_1 = arith.constant 0 : i32
    return %c0_i32, %c0_i32_0 : i32, i32
  }
  func.func @transform_4(%arg0: i32) -> (i32, i32) {
    %c0_i32 = arith.constant 0 : i32
    %c0_i32_0 = arith.constant 0 : i32
    %c0_i32_1 = arith.constant 0 : i32
    return %c0_i32, %c0_i32_0 : i32, i32
  }
  func.func @transform_5(%arg0: i32) -> (i32, i32) {
    %c0_i32 = arith.constant 0 : i32
    %c0_i32_0 = arith.constant 0 : i32
    %c0_i32_1 = arith.constant 0 : i32
    return %c0_i32, %c0_i32_0 : i32, i32
  }
  func.func @transform_6(%arg0: i32) -> (i32, i32) {
    %c0_i32 = arith.constant 0 : i32
    %c0_i32_0 = arith.constant 0 : i32
    %c0_i32_1 = arith.constant 0 : i32
    return %c0_i32, %c0_i32_0 : i32, i32
  }
  func.func @transform_7(%arg0: i32) -> (i32, i32) {
    %c0_i32 = arith.constant 0 : i32
    %c0_i32_0 = arith.constant 0 : i32
    %c0_i32_1 = arith.constant 0 : i32
    return %c0_i32, %c0_i32_0 : i32, i32
  }
  func.func @transform_8(%arg0: i32) -> (i32, i32, i32) {
    %c0_i32 = arith.constant 0 : i32
    %c0_i32_0 = arith.constant 0 : i32
    %c0_i32_1 = arith.constant 0 : i32
    return %arg0, %c0_i32, %c0_i32_0 : i32, i32, i32
  }
}

module attributes {stable_mosaic.version = 11 : i64} {
  func.func @_ir_s2_kernel(%arg0: i32, %arg1: memref<1x8x16xf32, #tpu.memory_space<vmem>>, %arg2: memref<1x8x16xf32, #tpu.memory_space<vmem>>, %arg3: memref<16x64xbf16, #tpu.memory_space<vmem>>, %arg4: memref<1x64xf32, #tpu.memory_space<vmem>>, %arg5: memref<9x64xf32, #tpu.memory_space<vmem>>, %arg6: memref<1x64xf32, #tpu.memory_space<vmem>>, %arg7: memref<64x24xbf16, #tpu.memory_space<vmem>>, %arg8: memref<1x24xf32, #tpu.memory_space<vmem>>, %arg9: memref<1x4x24xf32, #tpu.memory_space<vmem>>, %arg10: memref<5x3x64xf32, #tpu.memory_space<vmem>>, %arg11: memref<5x2x64xf32, #tpu.memory_space<vmem>>, %arg12: memref<4x64xf32, #tpu.memory_space<vmem>>) attributes {dimension_semantics = [#tpu.dimension_semantics<parallel>], iteration_bounds = array<i64: 2>, scalar_prefetch = 0 : i64, scratch_operands = 3 : i64, tpu.core_type = #tpu.core_type<tc>, window_params = [{transform_indices = @transform_0, window_bounds = array<i64: 1, 8, 16>}, {transform_indices = @transform_1, window_bounds = array<i64: 1, 8, 16>}, {pipeline_mode = #tpu.pipeline_mode<synchronous>, transform_indices = @transform_2, window_bounds = array<i64: 16, 64>}, {pipeline_mode = #tpu.pipeline_mode<synchronous>, transform_indices = @transform_3, window_bounds = array<i64: 1, 64>}, {pipeline_mode = #tpu.pipeline_mode<synchronous>, transform_indices = @transform_4, window_bounds = array<i64: 9, 64>}, {pipeline_mode = #tpu.pipeline_mode<synchronous>, transform_indices = @transform_5, window_bounds = array<i64: 1, 64>}, {pipeline_mode = #tpu.pipeline_mode<synchronous>, transform_indices = @transform_6, window_bounds = array<i64: 64, 24>}, {pipeline_mode = #tpu.pipeline_mode<synchronous>, transform_indices = @transform_7, window_bounds = array<i64: 1, 24>}, {transform_indices = @transform_8, window_bounds = array<i64: 1, 4, 24>}]} {
    %cst = arith.constant 0.000000e+00 : f32
    %0 = vector.broadcast %cst : f32 to vector<5x3x64xf32>
    %c0 = arith.constant 0 : index
    %c0_0 = arith.constant 0 : index
    %c0_1 = arith.constant 0 : index
    %1 = vector.load %arg10[%c0, %c0_0, %c0_1] : memref<5x3x64xf32, #tpu.memory_space<vmem>>, vector<5x3x64xf32>
    tpu.vector_store %arg10[%c0, %c0_0, %c0_1], %0 {strides = array<i32>} : memref<5x3x64xf32, #tpu.memory_space<vmem>>, vector<5x3x64xf32>,
    %cst_2 = arith.constant 0.000000e+00 : f32
    %2 = vector.broadcast %cst_2 : f32 to vector<5x2x64xf32>
    %c0_3 = arith.constant 0 : index
    %c0_4 = arith.constant 0 : index
    %c0_5 = arith.constant 0 : index
    %3 = vector.load %arg11[%c0_3, %c0_4, %c0_5] : memref<5x2x64xf32, #tpu.memory_space<vmem>>, vector<5x2x64xf32>
    tpu.vector_store %arg11[%c0_3, %c0_4, %c0_5], %2 {strides = array<i32>} : memref<5x2x64xf32, #tpu.memory_space<vmem>>, vector<5x2x64xf32>,
    %c0_6 = arith.constant 0 : index
    %c0_7 = arith.constant 0 : index
    %c0_8 = arith.constant 0 : index
    %4 = vector.load %arg1[%c0_6, %c0_7, %c0_8] : memref<1x8x16xf32, #tpu.memory_space<vmem>>, vector<1x8x16xf32>
    %5 = vector.shape_cast %4 : vector<1x8x16xf32> to vector<8x16xf32>
    %6 = arith.truncf %5 : vector<8x16xf32> to vector<8x16xbf16>
    %c0_9 = arith.constant 0 : index
    %c0_10 = arith.constant 0 : index
    %7 = vector.load %arg3[%c0_9, %c0_10] : memref<16x64xbf16, #tpu.memory_space<vmem>>, vector<16x64xbf16>
    %cst_11 = arith.constant dense<0.000000e+00> : vector<8x64xf32>
    %8 = tpu.matmul %6, %7, %cst_11 {dimension_numbers = #tpu.dot_dimension_numbers<[1], [0], [0], [1], [0, 0, 1, 1], [], []>} : vector<8x16xbf16>, vector<16x64xbf16>, vector<8x64xf32> -> vector<8x64xf32>
    %c0_12 = arith.constant 0 : index
    %c0_13 = arith.constant 0 : index
    %9 = vector.load %arg4[%c0_12, %c0_13] : memref<1x64xf32, #tpu.memory_space<vmem>>, vector<1x64xf32>
    %10 = vector.broadcast %9 : vector<1x64xf32> to vector<8x64xf32>
    %11 = arith.addf %8, %10 : vector<8x64xf32>
    %cst_14 = arith.constant 0.000000e+00 : f32
    %cst_15 = arith.constant 6.000000e+00 : f32
    %12 = vector.broadcast %cst_14 : f32 to vector<8x64xf32>
    %13 = arith.maximumf %12, %11 : vector<8x64xf32>
    %14 = vector.broadcast %cst_15 : f32 to vector<8x64xf32>
    %15 = arith.minimumf %14, %13 : vector<8x64xf32>
    %16 = vector.extract_strided_slice %15 {offsets = [0, 0], sizes = [2, 64], strides = [1, 1]} : vector<8x64xf32> to vector<2x64xf32>
    %c0_16 = arith.constant 0 : index
    %c0_17 = arith.constant 0 : index
    %c0_18 = arith.constant 0 : index
    %17 = vector.load %arg10[%c0_16, %c0_17, %c0_18] : memref<5x3x64xf32, #tpu.memory_space<vmem>>, vector<1x2x64xf32>
    %18 = vector.shape_cast %17 : vector<1x2x64xf32> to vector<2x64xf32>
    %19 = vector.shape_cast %16 : vector<2x64xf32> to vector<1x2x64xf32>
    tpu.vector_store %arg10[%c0_16, %c0_17, %c0_18], %19 {strides = array<i32>} : memref<5x3x64xf32, #tpu.memory_space<vmem>>, vector<1x2x64xf32>,
    %20 = vector.extract_strided_slice %15 {offsets = [2, 0], sizes = [2, 64], strides = [1, 1]} : vector<8x64xf32> to vector<2x64xf32>
    %c1 = arith.constant 1 : index
    %c0_19 = arith.constant 0 : index
    %c0_20 = arith.constant 0 : index
    %21 = vector.load %arg10[%c1, %c0_19, %c0_20] : memref<5x3x64xf32, #tpu.memory_space<vmem>>, vector<1x2x64xf32>
    %22 = vector.shape_cast %21 : vector<1x2x64xf32> to vector<2x64xf32>
    %23 = vector.shape_cast %20 : vector<2x64xf32> to vector<1x2x64xf32>
    tpu.vector_store %arg10[%c1, %c0_19, %c0_20], %23 {strides = array<i32>} : memref<5x3x64xf32, #tpu.memory_space<vmem>>, vector<1x2x64xf32>,
    %24 = vector.extract_strided_slice %15 {offsets = [4, 0], sizes = [2, 64], strides = [1, 1]} : vector<8x64xf32> to vector<2x64xf32>
    %c2 = arith.constant 2 : index
    %c0_21 = arith.constant 0 : index
    %c0_22 = arith.constant 0 : index
    %25 = vector.load %arg10[%c2, %c0_21, %c0_22] : memref<5x3x64xf32, #tpu.memory_space<vmem>>, vector<1x2x64xf32>
    %26 = vector.shape_cast %25 : vector<1x2x64xf32> to vector<2x64xf32>
    %27 = vector.shape_cast %24 : vector<2x64xf32> to vector<1x2x64xf32>
    tpu.vector_store %arg10[%c2, %c0_21, %c0_22], %27 {strides = array<i32>} : memref<5x3x64xf32, #tpu.memory_space<vmem>>, vector<1x2x64xf32>,
    %28 = vector.extract_strided_slice %15 {offsets = [6, 0], sizes = [2, 64], strides = [1, 1]} : vector<8x64xf32> to vector<2x64xf32>
    %c3 = arith.constant 3 : index
    %c0_23 = arith.constant 0 : index
    %c0_24 = arith.constant 0 : index
    %29 = vector.load %arg10[%c3, %c0_23, %c0_24] : memref<5x3x64xf32, #tpu.memory_space<vmem>>, vector<1x2x64xf32>
    %30 = vector.shape_cast %29 : vector<1x2x64xf32> to vector<2x64xf32>
    %31 = vector.shape_cast %28 : vector<2x64xf32> to vector<1x2x64xf32>
    tpu.vector_store %arg10[%c3, %c0_23, %c0_24], %31 {strides = array<i32>} : memref<5x3x64xf32, #tpu.memory_space<vmem>>, vector<1x2x64xf32>,
    %c0_25 = arith.constant 0 : index
    %c0_26 = arith.constant 0 : index
    %c0_27 = arith.constant 0 : index
    %32 = vector.load %arg2[%c0_25, %c0_26, %c0_27] : memref<1x8x16xf32, #tpu.memory_space<vmem>>, vector<1x8x16xf32>
    %33 = vector.shape_cast %32 : vector<1x8x16xf32> to vector<8x16xf32>
    %34 = arith.truncf %33 : vector<8x16xf32> to vector<8x16xbf16>
    %c0_28 = arith.constant 0 : index
    %c0_29 = arith.constant 0 : index
    %35 = vector.load %arg3[%c0_28, %c0_29] : memref<16x64xbf16, #tpu.memory_space<vmem>>, vector<16x64xbf16>
    %cst_30 = arith.constant dense<0.000000e+00> : vector<8x64xf32>
    %36 = tpu.matmul %34, %35, %cst_30 {dimension_numbers = #tpu.dot_dimension_numbers<[1], [0], [0], [1], [0, 0, 1, 1], [], []>} : vector<8x16xbf16>, vector<16x64xbf16>, vector<8x64xf32> -> vector<8x64xf32>
    %c0_31 = arith.constant 0 : index
    %c0_32 = arith.constant 0 : index
    %37 = vector.load %arg4[%c0_31, %c0_32] : memref<1x64xf32, #tpu.memory_space<vmem>>, vector<1x64xf32>
    %38 = vector.broadcast %37 : vector<1x64xf32> to vector<8x64xf32>
    %39 = arith.addf %36, %38 : vector<8x64xf32>
    %cst_33 = arith.constant 0.000000e+00 : f32
    %cst_34 = arith.constant 6.000000e+00 : f32
    %40 = vector.broadcast %cst_33 : f32 to vector<8x64xf32>
    %41 = arith.maximumf %40, %39 : vector<8x64xf32>
    %42 = vector.broadcast %cst_34 : f32 to vector<8x64xf32>
    %43 = arith.minimumf %42, %41 : vector<8x64xf32>
    %44 = vector.extract_strided_slice %43 {offsets = [0, 0], sizes = [2, 64], strides = [1, 1]} : vector<8x64xf32> to vector<2x64xf32>
    %c0_35 = arith.constant 0 : index
    %c0_36 = arith.constant 0 : index
    %c0_37 = arith.constant 0 : index
    %45 = vector.load %arg11[%c0_35, %c0_36, %c0_37] : memref<5x2x64xf32, #tpu.memory_space<vmem>>, vector<1x2x64xf32>
    %46 = vector.shape_cast %45 : vector<1x2x64xf32> to vector<2x64xf32>
    %47 = vector.shape_cast %44 : vector<2x64xf32> to vector<1x2x64xf32>
    tpu.vector_store %arg11[%c0_35, %c0_36, %c0_37], %47 {strides = array<i32>} : memref<5x2x64xf32, #tpu.memory_space<vmem>>, vector<1x2x64xf32>,
    %48 = vector.extract_strided_slice %43 {offsets = [2, 0], sizes = [2, 64], strides = [1, 1]} : vector<8x64xf32> to vector<2x64xf32>
    %c1_38 = arith.constant 1 : index
    %c0_39 = arith.constant 0 : index
    %c0_40 = arith.constant 0 : index
    %49 = vector.load %arg11[%c1_38, %c0_39, %c0_40] : memref<5x2x64xf32, #tpu.memory_space<vmem>>, vector<1x2x64xf32>
    %50 = vector.shape_cast %49 : vector<1x2x64xf32> to vector<2x64xf32>
    %51 = vector.shape_cast %48 : vector<2x64xf32> to vector<1x2x64xf32>
    tpu.vector_store %arg11[%c1_38, %c0_39, %c0_40], %51 {strides = array<i32>} : memref<5x2x64xf32, #tpu.memory_space<vmem>>, vector<1x2x64xf32>,
    %52 = vector.extract_strided_slice %43 {offsets = [4, 0], sizes = [2, 64], strides = [1, 1]} : vector<8x64xf32> to vector<2x64xf32>
    %c2_41 = arith.constant 2 : index
    %c0_42 = arith.constant 0 : index
    %c0_43 = arith.constant 0 : index
    %53 = vector.load %arg11[%c2_41, %c0_42, %c0_43] : memref<5x2x64xf32, #tpu.memory_space<vmem>>, vector<1x2x64xf32>
    %54 = vector.shape_cast %53 : vector<1x2x64xf32> to vector<2x64xf32>
    %55 = vector.shape_cast %52 : vector<2x64xf32> to vector<1x2x64xf32>
    tpu.vector_store %arg11[%c2_41, %c0_42, %c0_43], %55 {strides = array<i32>} : memref<5x2x64xf32, #tpu.memory_space<vmem>>, vector<1x2x64xf32>,
    %56 = vector.extract_strided_slice %43 {offsets = [6, 0], sizes = [2, 64], strides = [1, 1]} : vector<8x64xf32> to vector<2x64xf32>
    %c3_44 = arith.constant 3 : index
    %c0_45 = arith.constant 0 : index
    %c0_46 = arith.constant 0 : index
    %57 = vector.load %arg11[%c3_44, %c0_45, %c0_46] : memref<5x2x64xf32, #tpu.memory_space<vmem>>, vector<1x2x64xf32>
    %58 = vector.shape_cast %57 : vector<1x2x64xf32> to vector<2x64xf32>
    %59 = vector.shape_cast %56 : vector<2x64xf32> to vector<1x2x64xf32>
    tpu.vector_store %arg11[%c3_44, %c0_45, %c0_46], %59 {strides = array<i32>} : memref<5x2x64xf32, #tpu.memory_space<vmem>>, vector<1x2x64xf32>,
    %c0_47 = arith.constant 0 : index
    %c0_48 = arith.constant 0 : index
    %60 = vector.load %arg6[%c0_47, %c0_48] : memref<1x64xf32, #tpu.memory_space<vmem>>, vector<1x64xf32>
    %cst_49 = arith.constant 0.000000e+00 : f32
    %61 = vector.broadcast %cst_49 : f32 to vector<2x64xf32>
    %c0_50 = arith.constant 0 : index
    %c0_51 = arith.constant 0 : index
    %c0_52 = arith.constant 0 : index
    %62 = vector.load %arg10[%c0_50, %c0_51, %c0_52] : memref<5x3x64xf32, #tpu.memory_space<vmem>>, vector<1x2x64xf32>
    %63 = vector.shape_cast %62 : vector<1x2x64xf32> to vector<2x64xf32>
    %c0_53 = arith.constant 0 : index
    %c0_54 = arith.constant 0 : index
    %64 = vector.load %arg5[%c0_53, %c0_54] : memref<9x64xf32, #tpu.memory_space<vmem>>, vector<1x64xf32>
    %65 = vector.broadcast %64 : vector<1x64xf32> to vector<2x64xf32>
    %66 = arith.mulf %63, %65 : vector<2x64xf32>
    %67 = arith.addf %61, %66 : vector<2x64xf32>
    %c0_55 = arith.constant 0 : index
    %c0_56 = arith.constant 0 : index
    %c0_57 = arith.constant 0 : index
    %68 = vector.load %arg11[%c0_55, %c0_56, %c0_57] : memref<5x2x64xf32, #tpu.memory_space<vmem>>, vector<1x2x64xf32>
    %69 = vector.shape_cast %68 : vector<1x2x64xf32> to vector<2x64xf32>
    %c1_58 = arith.constant 1 : index
    %c0_59 = arith.constant 0 : index
    %70 = vector.load %arg5[%c1_58, %c0_59] : memref<9x64xf32, #tpu.memory_space<vmem>>, vector<1x64xf32>
    %71 = vector.broadcast %70 : vector<1x64xf32> to vector<2x64xf32>
    %72 = arith.mulf %69, %71 : vector<2x64xf32>
    %73 = arith.addf %67, %72 : vector<2x64xf32>
    %c0_60 = arith.constant 0 : index
    %c1_61 = arith.constant 1 : index
    %c0_62 = arith.constant 0 : index
    %74 = vector.load %arg10[%c0_60, %c1_61, %c0_62] : memref<5x3x64xf32, #tpu.memory_space<vmem>>, vector<1x2x64xf32>
    %75 = vector.shape_cast %74 : vector<1x2x64xf32> to vector<2x64xf32>
    %c2_63 = arith.constant 2 : index
    %c0_64 = arith.constant 0 : index
    %76 = vector.load %arg5[%c2_63, %c0_64] : memref<9x64xf32, #tpu.memory_space<vmem>>, vector<1x64xf32>
    %77 = vector.broadcast %76 : vector<1x64xf32> to vector<2x64xf32>
    %78 = arith.mulf %75, %77 : vector<2x64xf32>
    %79 = arith.addf %73, %78 : vector<2x64xf32>
    %c1_65 = arith.constant 1 : index
    %c0_66 = arith.constant 0 : index
    %c0_67 = arith.constant 0 : index
    %80 = vector.load %arg10[%c1_65, %c0_66, %c0_67] : memref<5x3x64xf32, #tpu.memory_space<vmem>>, vector<1x2x64xf32>
    %81 = vector.shape_cast %80 : vector<1x2x64xf32> to vector<2x64xf32>
    %c3_68 = arith.constant 3 : index
    %c0_69 = arith.constant 0 : index
    %82 = vector.load %arg5[%c3_68, %c0_69] : memref<9x64xf32, #tpu.memory_space<vmem>>, vector<1x64xf32>
    %83 = vector.broadcast %82 : vector<1x64xf32> to vector<2x64xf32>
    %84 = arith.mulf %81, %83 : vector<2x64xf32>
    %85 = arith.addf %79, %84 : vector<2x64xf32>
    %c1_70 = arith.constant 1 : index
    %c0_71 = arith.constant 0 : index
    %c0_72 = arith.constant 0 : index
    %86 = vector.load %arg11[%c1_70, %c0_71, %c0_72] : memref<5x2x64xf32, #tpu.memory_space<vmem>>, vector<1x2x64xf32>
    %87 = vector.shape_cast %86 : vector<1x2x64xf32> to vector<2x64xf32>
    %c4 = arith.constant 4 : index
    %c0_73 = arith.constant 0 : index
    %88 = vector.load %arg5[%c4, %c0_73] : memref<9x64xf32, #tpu.memory_space<vmem>>, vector<1x64xf32>
    %89 = vector.broadcast %88 : vector<1x64xf32> to vector<2x64xf32>
    %90 = arith.mulf %87, %89 : vector<2x64xf32>
    %91 = arith.addf %85, %90 : vector<2x64xf32>
    %c1_74 = arith.constant 1 : index
    %c1_75 = arith.constant 1 : index
    %c0_76 = arith.constant 0 : index
    %92 = vector.load %arg10[%c1_74, %c1_75, %c0_76] : memref<5x3x64xf32, #tpu.memory_space<vmem>>, vector<1x2x64xf32>
    %93 = vector.shape_cast %92 : vector<1x2x64xf32> to vector<2x64xf32>
    %c5 = arith.constant 5 : index
    %c0_77 = arith.constant 0 : index
    %94 = vector.load %arg5[%c5, %c0_77] : memref<9x64xf32, #tpu.memory_space<vmem>>, vector<1x64xf32>
    %95 = vector.broadcast %94 : vector<1x64xf32> to vector<2x64xf32>
    %96 = arith.mulf %93, %95 : vector<2x64xf32>
    %97 = arith.addf %91, %96 : vector<2x64xf32>
    %c2_78 = arith.constant 2 : index
    %c0_79 = arith.constant 0 : index
    %c0_80 = arith.constant 0 : index
    %98 = vector.load %arg10[%c2_78, %c0_79, %c0_80] : memref<5x3x64xf32, #tpu.memory_space<vmem>>, vector<1x2x64xf32>
    %99 = vector.shape_cast %98 : vector<1x2x64xf32> to vector<2x64xf32>
    %c6 = arith.constant 6 : index
    %c0_81 = arith.constant 0 : index
    %100 = vector.load %arg5[%c6, %c0_81] : memref<9x64xf32, #tpu.memory_space<vmem>>, vector<1x64xf32>
    %101 = vector.broadcast %100 : vector<1x64xf32> to vector<2x64xf32>
    %102 = arith.mulf %99, %101 : vector<2x64xf32>
    %103 = arith.addf %97, %102 : vector<2x64xf32>
    %c2_82 = arith.constant 2 : index
    %c0_83 = arith.constant 0 : index
    %c0_84 = arith.constant 0 : index
    %104 = vector.load %arg11[%c2_82, %c0_83, %c0_84] : memref<5x2x64xf32, #tpu.memory_space<vmem>>, vector<1x2x64xf32>
    %105 = vector.shape_cast %104 : vector<1x2x64xf32> to vector<2x64xf32>
    %c7 = arith.constant 7 : index
    %c0_85 = arith.constant 0 : index
    %106 = vector.load %arg5[%c7, %c0_85] : memref<9x64xf32, #tpu.memory_space<vmem>>, vector<1x64xf32>
    %107 = vector.broadcast %106 : vector<1x64xf32> to vector<2x64xf32>
    %108 = arith.mulf %105, %107 : vector<2x64xf32>
    %109 = arith.addf %103, %108 : vector<2x64xf32>
    %c2_86 = arith.constant 2 : index
    %c1_87 = arith.constant 1 : index
    %c0_88 = arith.constant 0 : index
    %110 = vector.load %arg10[%c2_86, %c1_87, %c0_88] : memref<5x3x64xf32, #tpu.memory_space<vmem>>, vector<1x2x64xf32>
    %111 = vector.shape_cast %110 : vector<1x2x64xf32> to vector<2x64xf32>
    %c8 = arith.constant 8 : index
    %c0_89 = arith.constant 0 : index
    %112 = vector.load %arg5[%c8, %c0_89] : memref<9x64xf32, #tpu.memory_space<vmem>>, vector<1x64xf32>
    %113 = vector.broadcast %112 : vector<1x64xf32> to vector<2x64xf32>
    %114 = arith.mulf %111, %113 : vector<2x64xf32>
    %115 = arith.addf %109, %114 : vector<2x64xf32>
    %116 = vector.broadcast %60 : vector<1x64xf32> to vector<2x64xf32>
    %117 = arith.addf %115, %116 : vector<2x64xf32>
    %cst_90 = arith.constant 0.000000e+00 : f32
    %cst_91 = arith.constant 6.000000e+00 : f32
    %118 = vector.broadcast %cst_90 : f32 to vector<2x64xf32>
    %119 = arith.maximumf %118, %117 : vector<2x64xf32>
    %120 = vector.broadcast %cst_91 : f32 to vector<2x64xf32>
    %121 = arith.minimumf %120, %119 : vector<2x64xf32>
    %c0_92 = arith.constant 0 : index
    %c0_93 = arith.constant 0 : index
    %122 = vector.load %arg12[%c0_92, %c0_93] : memref<4x64xf32, #tpu.memory_space<vmem>>, vector<2x64xf32>
    tpu.vector_store %arg12[%c0_92, %c0_93], %121 {strides = array<i32>} : memref<4x64xf32, #tpu.memory_space<vmem>>, vector<2x64xf32>,
    %cst_94 = arith.constant 0.000000e+00 : f32
    %123 = vector.broadcast %cst_94 : f32 to vector<2x64xf32>
    %c2_95 = arith.constant 2 : index
    %c0_96 = arith.constant 0 : index
    %c0_97 = arith.constant 0 : index
    %124 = vector.load %arg10[%c2_95, %c0_96, %c0_97] : memref<5x3x64xf32, #tpu.memory_space<vmem>>, vector<1x2x64xf32>
    %125 = vector.shape_cast %124 : vector<1x2x64xf32> to vector<2x64xf32>
    %c0_98 = arith.constant 0 : index
    %c0_99 = arith.constant 0 : index
    %126 = vector.load %arg5[%c0_98, %c0_99] : memref<9x64xf32, #tpu.memory_space<vmem>>, vector<1x64xf32>
    %127 = vector.broadcast %126 : vector<1x64xf32> to vector<2x64xf32>
    %128 = arith.mulf %125, %127 : vector<2x64xf32>
    %129 = arith.addf %123, %128 : vector<2x64xf32>
    %c2_100 = arith.constant 2 : index
    %c0_101 = arith.constant 0 : index
    %c0_102 = arith.constant 0 : index
    %130 = vector.load %arg11[%c2_100, %c0_101, %c0_102] : memref<5x2x64xf32, #tpu.memory_space<vmem>>, vector<1x2x64xf32>
    %131 = vector.shape_cast %130 : vector<1x2x64xf32> to vector<2x64xf32>
    %c1_103 = arith.constant 1 : index
    %c0_104 = arith.constant 0 : index
    %132 = vector.load %arg5[%c1_103, %c0_104] : memref<9x64xf32, #tpu.memory_space<vmem>>, vector<1x64xf32>
    %133 = vector.broadcast %132 : vector<1x64xf32> to vector<2x64xf32>
    %134 = arith.mulf %131, %133 : vector<2x64xf32>
    %135 = arith.addf %129, %134 : vector<2x64xf32>
    %c2_105 = arith.constant 2 : index
    %c1_106 = arith.constant 1 : index
    %c0_107 = arith.constant 0 : index
    %136 = vector.load %arg10[%c2_105, %c1_106, %c0_107] : memref<5x3x64xf32, #tpu.memory_space<vmem>>, vector<1x2x64xf32>
    %137 = vector.shape_cast %136 : vector<1x2x64xf32> to vector<2x64xf32>
    %c2_108 = arith.constant 2 : index
    %c0_109 = arith.constant 0 : index
    %138 = vector.load %arg5[%c2_108, %c0_109] : memref<9x64xf32, #tpu.memory_space<vmem>>, vector<1x64xf32>
    %139 = vector.broadcast %138 : vector<1x64xf32> to vector<2x64xf32>
    %140 = arith.mulf %137, %139 : vector<2x64xf32>
    %141 = arith.addf %135, %140 : vector<2x64xf32>
    %c3_110 = arith.constant 3 : index
    %c0_111 = arith.constant 0 : index
    %c0_112 = arith.constant 0 : index
    %142 = vector.load %arg10[%c3_110, %c0_111, %c0_112] : memref<5x3x64xf32, #tpu.memory_space<vmem>>, vector<1x2x64xf32>
    %143 = vector.shape_cast %142 : vector<1x2x64xf32> to vector<2x64xf32>
    %c3_113 = arith.constant 3 : index
    %c0_114 = arith.constant 0 : index
    %144 = vector.load %arg5[%c3_113, %c0_114] : memref<9x64xf32, #tpu.memory_space<vmem>>, vector<1x64xf32>
    %145 = vector.broadcast %144 : vector<1x64xf32> to vector<2x64xf32>
    %146 = arith.mulf %143, %145 : vector<2x64xf32>
    %147 = arith.addf %141, %146 : vector<2x64xf32>
    %c3_115 = arith.constant 3 : index
    %c0_116 = arith.constant 0 : index
    %c0_117 = arith.constant 0 : index
    %148 = vector.load %arg11[%c3_115, %c0_116, %c0_117] : memref<5x2x64xf32, #tpu.memory_space<vmem>>, vector<1x2x64xf32>
    %149 = vector.shape_cast %148 : vector<1x2x64xf32> to vector<2x64xf32>
    %c4_118 = arith.constant 4 : index
    %c0_119 = arith.constant 0 : index
    %150 = vector.load %arg5[%c4_118, %c0_119] : memref<9x64xf32, #tpu.memory_space<vmem>>, vector<1x64xf32>
    %151 = vector.broadcast %150 : vector<1x64xf32> to vector<2x64xf32>
    %152 = arith.mulf %149, %151 : vector<2x64xf32>
    %153 = arith.addf %147, %152 : vector<2x64xf32>
    %c3_120 = arith.constant 3 : index
    %c1_121 = arith.constant 1 : index
    %c0_122 = arith.constant 0 : index
    %154 = vector.load %arg10[%c3_120, %c1_121, %c0_122] : memref<5x3x64xf32, #tpu.memory_space<vmem>>, vector<1x2x64xf32>
    %155 = vector.shape_cast %154 : vector<1x2x64xf32> to vector<2x64xf32>
    %c5_123 = arith.constant 5 : index
    %c0_124 = arith.constant 0 : index
    %156 = vector.load %arg5[%c5_123, %c0_124] : memref<9x64xf32, #tpu.memory_space<vmem>>, vector<1x64xf32>
    %157 = vector.broadcast %156 : vector<1x64xf32> to vector<2x64xf32>
    %158 = arith.mulf %155, %157 : vector<2x64xf32>
    %159 = arith.addf %153, %158 : vector<2x64xf32>
    %c4_125 = arith.constant 4 : index
    %c0_126 = arith.constant 0 : index
    %c0_127 = arith.constant 0 : index
    %160 = vector.load %arg10[%c4_125, %c0_126, %c0_127] : memref<5x3x64xf32, #tpu.memory_space<vmem>>, vector<1x2x64xf32>
    %161 = vector.shape_cast %160 : vector<1x2x64xf32> to vector<2x64xf32>
    %c6_128 = arith.constant 6 : index
    %c0_129 = arith.constant 0 : index
    %162 = vector.load %arg5[%c6_128, %c0_129] : memref<9x64xf32, #tpu.memory_space<vmem>>, vector<1x64xf32>
    %163 = vector.broadcast %162 : vector<1x64xf32> to vector<2x64xf32>
    %164 = arith.mulf %161, %163 : vector<2x64xf32>
    %165 = arith.addf %159, %164 : vector<2x64xf32>
    %c4_130 = arith.constant 4 : index
    %c0_131 = arith.constant 0 : index
    %c0_132 = arith.constant 0 : index
    %166 = vector.load %arg11[%c4_130, %c0_131, %c0_132] : memref<5x2x64xf32, #tpu.memory_space<vmem>>, vector<1x2x64xf32>
    %167 = vector.shape_cast %166 : vector<1x2x64xf32> to vector<2x64xf32>
    %c7_133 = arith.constant 7 : index
    %c0_134 = arith.constant 0 : index
    %168 = vector.load %arg5[%c7_133, %c0_134] : memref<9x64xf32, #tpu.memory_space<vmem>>, vector<1x64xf32>
    %169 = vector.broadcast %168 : vector<1x64xf32> to vector<2x64xf32>
    %170 = arith.mulf %167, %169 : vector<2x64xf32>
    %171 = arith.addf %165, %170 : vector<2x64xf32>
    %c4_135 = arith.constant 4 : index
    %c1_136 = arith.constant 1 : index
    %c0_137 = arith.constant 0 : index
    %172 = vector.load %arg10[%c4_135, %c1_136, %c0_137] : memref<5x3x64xf32, #tpu.memory_space<vmem>>, vector<1x2x64xf32>
    %173 = vector.shape_cast %172 : vector<1x2x64xf32> to vector<2x64xf32>
    %c8_138 = arith.constant 8 : index
    %c0_139 = arith.constant 0 : index
    %174 = vector.load %arg5[%c8_138, %c0_139] : memref<9x64xf32, #tpu.memory_space<vmem>>, vector<1x64xf32>
    %175 = vector.broadcast %174 : vector<1x64xf32> to vector<2x64xf32>
    %176 = arith.mulf %173, %175 : vector<2x64xf32>
    %177 = arith.addf %171, %176 : vector<2x64xf32>
    %178 = vector.broadcast %60 : vector<1x64xf32> to vector<2x64xf32>
    %179 = arith.addf %177, %178 : vector<2x64xf32>
    %cst_140 = arith.constant 0.000000e+00 : f32
    %cst_141 = arith.constant 6.000000e+00 : f32
    %180 = vector.broadcast %cst_140 : f32 to vector<2x64xf32>
    %181 = arith.maximumf %180, %179 : vector<2x64xf32>
    %182 = vector.broadcast %cst_141 : f32 to vector<2x64xf32>
    %183 = arith.minimumf %182, %181 : vector<2x64xf32>
    %c2_142 = arith.constant 2 : index
    %c0_143 = arith.constant 0 : index
    %184 = vector.load %arg12[%c2_142, %c0_143] : memref<4x64xf32, #tpu.memory_space<vmem>>, vector<2x64xf32>
    tpu.vector_store %arg12[%c2_142, %c0_143], %183 {strides = array<i32>} : memref<4x64xf32, #tpu.memory_space<vmem>>, vector<2x64xf32>,
    %c0_144 = arith.constant 0 : index
    %c0_145 = arith.constant 0 : index
    %185 = vector.load %arg12[%c0_144, %c0_145] : memref<4x64xf32, #tpu.memory_space<vmem>>, vector<4x64xf32>
    %186 = arith.truncf %185 : vector<4x64xf32> to vector<4x64xbf16>
    %c0_146 = arith.constant 0 : index
    %c0_147 = arith.constant 0 : index
    %187 = vector.load %arg7[%c0_146, %c0_147] : memref<64x24xbf16, #tpu.memory_space<vmem>>, vector<64x24xbf16>
    %cst_148 = arith.constant dense<0.000000e+00> : vector<4x24xf32>
    %188 = tpu.matmul %186, %187, %cst_148 {dimension_numbers = #tpu.dot_dimension_numbers<[1], [0], [0], [1], [0, 0, 1, 1], [], []>} : vector<4x64xbf16>, vector<64x24xbf16>, vector<4x24xf32> -> vector<4x24xf32>
    %c0_149 = arith.constant 0 : index
    %c0_150 = arith.constant 0 : index
    %189 = vector.load %arg8[%c0_149, %c0_150] : memref<1x24xf32, #tpu.memory_space<vmem>>, vector<1x24xf32>
    %190 = vector.broadcast %189 : vector<1x24xf32> to vector<4x24xf32>
    %191 = arith.addf %188, %190 : vector<4x24xf32>
    %c0_151 = arith.constant 0 : index
    %c0_152 = arith.constant 0 : index
    %c0_153 = arith.constant 0 : index
    %192 = vector.load %arg9[%c0_151, %c0_152, %c0_153] : memref<1x4x24xf32, #tpu.memory_space<vmem>>, vector<1x4x24xf32>
    %193 = vector.shape_cast %192 : vector<1x4x24xf32> to vector<4x24xf32>
    %194 = vector.shape_cast %191 : vector<4x24xf32> to vector<1x4x24xf32>
    tpu.vector_store %arg9[%c0_151, %c0_152, %c0_153], %194 {strides = array<i32>} : memref<1x4x24xf32, #tpu.memory_space<vmem>>, vector<1x4x24xf32>,
    return
  }
  func.func @transform_0(%arg0: i32) -> (i32, i32, i32) {
    %c0_i32 = arith.constant 0 : i32
    %c0_i32_0 = arith.constant 0 : i32
    %c0_i32_1 = arith.constant 0 : i32
    return %arg0, %c0_i32, %c0_i32_0 : i32, i32, i32
  }
  func.func @transform_1(%arg0: i32) -> (i32, i32, i32) {
    %c0_i32 = arith.constant 0 : i32
    %c0_i32_0 = arith.constant 0 : i32
    %c0_i32_1 = arith.constant 0 : i32
    return %arg0, %c0_i32, %c0_i32_0 : i32, i32, i32
  }
  func.func @transform_2(%arg0: i32) -> (i32, i32) {
    %c0_i32 = arith.constant 0 : i32
    %c0_i32_0 = arith.constant 0 : i32
    %c0_i32_1 = arith.constant 0 : i32
    return %c0_i32, %c0_i32_0 : i32, i32
  }
  func.func @transform_3(%arg0: i32) -> (i32, i32) {
    %c0_i32 = arith.constant 0 : i32
    %c0_i32_0 = arith.constant 0 : i32
    %c0_i32_1 = arith.constant 0 : i32
    return %c0_i32, %c0_i32_0 : i32, i32
  }
  func.func @transform_4(%arg0: i32) -> (i32, i32) {
    %c0_i32 = arith.constant 0 : i32
    %c0_i32_0 = arith.constant 0 : i32
    %c0_i32_1 = arith.constant 0 : i32
    return %c0_i32, %c0_i32_0 : i32, i32
  }
  func.func @transform_5(%arg0: i32) -> (i32, i32) {
    %c0_i32 = arith.constant 0 : i32
    %c0_i32_0 = arith.constant 0 : i32
    %c0_i32_1 = arith.constant 0 : i32
    return %c0_i32, %c0_i32_0 : i32, i32
  }
  func.func @transform_6(%arg0: i32) -> (i32, i32) {
    %c0_i32 = arith.constant 0 : i32
    %c0_i32_0 = arith.constant 0 : i32
    %c0_i32_1 = arith.constant 0 : i32
    return %c0_i32, %c0_i32_0 : i32, i32
  }
  func.func @transform_7(%arg0: i32) -> (i32, i32) {
    %c0_i32 = arith.constant 0 : i32
    %c0_i32_0 = arith.constant 0 : i32
    %c0_i32_1 = arith.constant 0 : i32
    return %c0_i32, %c0_i32_0 : i32, i32
  }
  func.func @transform_8(%arg0: i32) -> (i32, i32, i32) {
    %c0_i32 = arith.constant 0 : i32
    %c0_i32_0 = arith.constant 0 : i32
    %c0_i32_1 = arith.constant 0 : i32
    return %arg0, %c0_i32, %c0_i32_0 : i32, i32, i32
  }
}

</mosaic_0001>

<bundles_post_ra>
// kernel: _lambda_.5
= control target key start
LH: loop header
LB: loop body
LE: loop exit
PB: predicated region body
PF: predicated region fallthrough
CT: control target
= control target key end

     0   :  { %s462_s12 = smov 0   ;;  %s520_s0 = inlined_call_operand.vmem [shape: f32[2,64,36], index: 0, kind: input, shape index: {}]   ;;  %s521_s1 = inlined_call_operand.vmem [shape: bf16[36,8], index: 1, kind: input, shape index: {}]   ;;  %s522_s2 = inlined_call_operand.vmem [shape: f32[1,8], index: 2, kind: input, shape index: {}]   ;;  %s523_s3 = inlined_call_operand.vmem [shape: f32[2,64,8], index: 3, kind: output, shape index: {}]  }
   0x1 LB: > { %s373_s13 = sadd.s32 4294967295, %s440_s12   ;;  %p377_p0 = scmp.ge.s32.totalorder %s440_s12, 1  ;;  %s440_s12 = sphi %s462_s12, %s13_s12  }
   0x2   : > { %p137_p1 = scmp.lt.s32.totalorder %s440_s12, 3 }
   0x4   : > { %p138_p2 = pnand %p377_p0, %p137_p1 }
   0x5   : > { %p161_p3 = scmp.lt.s32.totalorder (!%p138_p2), %s373_s13, 1 }
   0x6   : > { %141 = sbr.rel (%p138_p2) target bundleno = 230 (0xe6), region = 32 }
   0xb   : > { %v431_v0 = vld [vmem:[%s521_s1 + $0x10] ss:$0 sps:$4 sm:$0x33]   ;;  %vm224_vm0 = vcmask 1041408   ;;  %v432_v1 = vld [vmem:[%s521_s1 + $0x8] sm:$0xff]   ;;  %s525_s13 = smov (!%p161_p3, %s373_s13), 1 }
   0xc   : > { %421 = vmatprep.subr.msk.bf16.mxu0 %vm224_vm0, %v431_v0  ;;  %422 = vmatprep.subr.msk.bf16.mxu1 %vm224_vm0, %v431_v0  ;;  %v226_v2 = vsel %vm224_vm0, %v431_v0, 0  ;;  %v433_v3 = vld [vmem:[%s521_s1] sm:$0xff]   ;;  %s392_s20 = sshll.u32 %s525_s13, 6  ;;  %vm211_vm1 = vcmask 293888   ;;  %vm309_vm2 = vcmask 64512  }
   0xd   : > { %402 = vmatpush3.bf16.msra.mxu0 %v226_v2  ;;  %418 = vmatpush3.bf16.msra.mxu1 %v226_v2  ;;  %s165_s23 = scalar_lea.vmem %s520_s0, %s392_s20  ;;  %v382_v16 = vld [vmem:[%s522_s2] ss:$0 sm:$0xff]  ;;  %s499_s28 = scalar_lea.vmem %s523_s3, %s392_s20 }
   0xe   : > { %403 = vmatprep.subr.bf16.mxu0 %v432_v1  ;;  %416 = vmatprep.subr.bf16.mxu1 %v432_v1  ;;  %v172_v4 = vld [vmem:[%s165_s23] sm:$0xff]  ;;  %v173_v5 = vld [vmem:[%s165_s23 + $0x8] sm:$0xff]  ;;  %v174_v9 = vld [vmem:[%s165_s23 + $0x10] sm:$0xff] }
   0xf   : > { %v176_v6 = vld [vmem:[%s165_s23 + $0x20] sm:$0xff]  ;;  %v180_v7 = vpack.c.bf16 %v173_v5, %v172_v4  ;;  %v177_v8 = vld [vmem:[%s165_s23 + $0x28] sm:$0xff]  ;;  %v175_v10 = vld [vmem:[%s165_s23 + $0x18] sm:$0xff] }
  0x10   : > { %v182_v11 = vpack.c.bf16 %v177_v8, %v176_v6  ;;  %v178_v12 = vld [vmem:[%s165_s23 + $0x30] sm:$0xff]  ;;  %v179_v13 = vld [vmem:[%s165_s23 + $0x38] sm:$0xff]  ;;  %v181_v14 = vpack.c.bf16 %v175_v10, %v174_v9 }
  0x11   : > { %404 = vmatpush3.bf16.msra.mxu0 %v432_v1  ;;  %419 = vmatpush3.bf16.msra.mxu1 %v432_v1  ;;  %v183_v15 = vpack.c.bf16 %v179_v13, %v178_v12 }
  0x12   : > { %405 = vmatprep.subr.bf16.mxu0 %v433_v3  ;;  %417 = vmatprep.subr.bf16.mxu1 %v433_v3 }
  0x13   : > { %407 = vmatprep.mubr.msk.bf16.mxu0 %vm211_vm1, %v180_v7  ;;  %411 = vmatprep.mubr.msk.bf16.mxu1 %vm211_vm1, %v182_v11 }
  0x15   : > { %406 = vmatpush3.bf16.msra.mxu0 %v433_v3  ;;  %420 = vmatpush3.bf16.msra.mxu1 %v433_v3 }
  0x18   : > { %408 = vmatmul.mubr.msk.bf16.vlgmr.msra.gmra.mxu0 %vm211_vm1, %v181_v14  ;;  %412 = vmatmul.mubr.msk.bf16.vlgmr.msra.gmra.mxu1 %vm211_vm1, %v183_v15 }
  0xd8   : > { %v409_v17 = vpop.f32.mrf.mxu0  ;;  %v413_v18 = vpop.f32.mrf.mxu1 }
  0xd9   : > { %v271_v19 = vadd.f32 %v409_v17, %v382_v16  ;;  %v287_v20 = vadd.f32 %v413_v18, %v382_v16 }
  0xda   : > { %v262_v21 = vpop.f32.mrf.mxu0  ;;  %v278_v22 = vpop.f32.mrf.mxu1 }
  0xdb   : > { %v295_v23 = vmax.f32 %v271_v19, 0.0  ;;  %v299_v24 = vmax.f32 %v287_v20, 0.0  ;;  %v263_v25 = vadd.f32 %v382_v16, %v262_v21  ;;  %v279_v26 = vadd.f32 %v382_v16, %v278_v22 }
  0xdc   : > { %v410_v27 = vpop.f32.mrf.mxu0  ;;  %v414_v28 = vpop.f32.mrf.mxu1 }
  0xdd   : > { %v303_v29 = vmin.f32 %v295_v23, 6.0  ;;  %v307_v30 = vmin.f32 %v299_v24, 6.0  ;;  %v293_v31 = vmax.f32 %v263_v25, 0.0  ;;  %v297_v32 = vmax.f32 %v279_v26, 0.0 }
  0xde   : > { %v274_v33 = vadd.f32 %v410_v27, %v382_v16  ;;  %v290_v34 = vadd.f32 %v414_v28, %v382_v16  ;;  %v265_v35 = vpop.f32.mrf.mxu0  ;;  %v281_v36 = vpop.f32.mrf.mxu1 }
  0xdf   : > { %312 = vst.msk [vmem:[%s499_s28 + $0x10] sm:$0xff] %vm309_vm2, %v303_v29  ;;  %316 = vst.msk [vmem:[%s499_s28 + $0x30] sm:$0xff] %vm309_vm2, %v307_v30  ;;  %v301_v37 = vmin.f32 %v293_v31, 6.0  ;;  %v305_v38 = vmin.f32 %v297_v32, 6.0  ;;  %v266_v39 = vadd.f32 %v382_v16, %v265_v35  ;;  %v282_v40 = vadd.f32 %v382_v16, %v281_v36 }
  0xe0   : > { %v296_v41 = vmax.f32 %v274_v33, 0.0  ;;  %v300_v42 = vmax.f32 %v290_v34, 0.0 }
  0xe1   : > { %310 = vst.msk [vmem:[%s499_s28] sm:$0xff] %vm309_vm2, %v301_v37  ;;  %314 = vst.msk [vmem:[%s499_s28 + $0x20] sm:$0xff] %vm309_vm2, %v305_v38  ;;  %v294_v43 = vmax.f32 %v266_v39, 0.0  ;;  %v298_v44 = vmax.f32 %v282_v40, 0.0 }
  0xe2   : > { %v304_v45 = vmin.f32 %v296_v41, 6.0  ;;  %v308_v46 = vmin.f32 %v300_v42, 6.0 }
  0xe3   : > { %v302_v47 = vmin.f32 %v294_v43, 6.0  ;;  %v306_v48 = vmin.f32 %v298_v44, 6.0 }
  0xe4   : > { %313 = vst.msk [vmem:[%s499_s28 + $0x18] sm:$0xff] %vm309_vm2, %v304_v45  ;;  %317 = vst.msk [vmem:[%s499_s28 + $0x38] sm:$0xff] %vm309_vm2, %v308_v46 }
  0xe5   : > { %311 = vst.msk [vmem:[%s499_s28 + $0x8] sm:$0xff] %vm309_vm2, %v302_v47  ;;  %315 = vst.msk [vmem:[%s499_s28 + $0x28] sm:$0xff] %vm309_vm2, %v306_v48 }
  0xe6 PF: > { %s13_s12 = sadd.s32 1, %s440_s12  }
  0xe7   : > { %p10_p4 = scmp.ge.s32.totalorder %s13_s12, 4  }
  0xe9   :  { %12 = sbr.rel (!%p10_p4) target bundleno = 1 (0x1), region = 62 }

// kernel: _lambda_.8
= control target key start
LH: loop header
LB: loop body
LE: loop exit
PB: predicated region body
PF: predicated region fallthrough
CT: control target
= control target key end

     0   :  { %s810_s24 = smov 0   ;;  %s922_s0 = inlined_call_operand.vmem [shape: f32[2,16,16], index: 0, kind: input, shape index: {}]   ;;  %s923_s1 = inlined_call_operand.vmem [shape: bf16[16,64], index: 1, kind: input, shape index: {}]   ;;  %s924_s2 = inlined_call_operand.vmem [shape: f32[1,64], index: 2, kind: input, shape index: {}, may-alias: {2,4}]   ;;  %s925_s3 = inlined_call_operand.vmem [shape: f32[9,64], index: 3, kind: input, shape index: {}]   ;;  %s926_s4 = inlined_call_operand.vmem [shape: f32[1,64], index: 4, kind: input, shape index: {}, may-alias: {2,4}]   ;;  %s927_s5 = inlined_call_operand.vmem [shape: bf16[64,16], index: 5, kind: input, shape index: {}]   ;;  %s928_s6 = inlined_call_operand.vmem [shape: f32[1,16], index: 6, kind: input, shape index: {}]   ;;  %s929_s7 = inlined_call_operand.vmem [shape: f32[2,16,16], index: 7, kind: output, shape index: {}]  }
   0x1 LB: > { %s688_s25 = sadd.s32 4294967295, %s766_s24   ;;  %p692_p0 = scmp.ge.s32.totalorder %s766_s24, 1  ;;  %s766_s24 = sphi %s810_s24, %s17_s24  }
   0x2   : > { %p237_p1 = scmp.lt.s32.totalorder %s766_s24, 3 }
   0x4   : > { %p238_p2 = pnand %p692_p0, %p237_p1 }
   0x5   : > { %p269_p3 = scmp.lt.s32.totalorder (!%p238_p2), %s688_s25, 1 }
   0x6   : > { %241 = sbr.rel (%p238_p2) target bundleno = 466 (0x1d2), region = 48 }
   0xb   : > { %v755_v0 = vld [vmem:[%s923_s1] sm:$0xff]   ;;  %v768_v1 = vmov 0.0   ;;  %vm280_vm0 = vcmask 521216   ;;  %vm769_vm1 = vmmov 0   ;;  %s931_s25 = smov (!%p269_p3, %s688_s25), 1  ;;  %vm305_vm2 = vcmask 130048  }
   0xc   : > { %727 = vmatprep.subr.bf16.mxu0 %v768_v1  ;;  %733 = vmatprep.subr.bf16.mxu1 %v768_v1  ;;  %281 = vst.msk [vmem:[#allocation2] sm:$0x3f] %vm280_vm0, %v768_v1  ;;  %282 = vst.msk [vmem:[#allocation2 + $0x8] sm:$0x3f] %vm280_vm0, %v768_v1  ;;  %s718_s28 = sshll.u32 %s931_s25, 4  ;;  %v756_v5 = vld [vmem:[%s927_s5 + $0x18] sm:$0xff]  }
   0xd   : > { %728 = vmatpush3.bf16.msra.mxu0 %v755_v0  ;;  %729 = vmatprep.mubr.msk.bf16.mxu0 %vm769_vm1, %v768_v1  ;;  %283 = vst.msk [vmem:[#allocation2 + $0x10] sm:$0x3f] %vm280_vm0, %v768_v1  ;;  %286 = vst.msk [vmem:[#allocation2 + $0x28] sm:$0x3f] %vm280_vm0, %v768_v1  ;;  %s273_s8 = scalar_lea.vmem %s922_s0, %s718_s28  ;;  %v757_v6 = vld [vmem:[%s927_s5 + $0x10] sm:$0xff]   ;;  %v758_v7 = vld [vmem:[%s927_s5 + $0x8] sm:$0xff]   ;;  %s278_s23 = scalar_lea.vmem %s929_s7, %s718_s28 }
   0xe   : > { %284 = vst.msk [vmem:[#allocation2 + $0x18] sm:$0x3f] %vm280_vm0, %v768_v1  ;;  %285 = vst.msk [vmem:[#allocation2 + $0x20] sm:$0x3f] %vm280_vm0, %v768_v1  ;;  %741 = vmatprep.mubr.msk.bf16.mxu1 %vm769_vm1, %v768_v1  ;;  %v829_v2 = vld [vmem:[%s273_s8] sm:$0xff]  ;;  %v831_v3 = vld [vmem:[%s273_s8 + $0x8] sm:$0xff]  ;;  %734 = vmatpush3.bf16.msra.mxu1 %v756_v5 }
   0xf   : > { %v289_v4 = vpack.c.bf16 %v831_v3, %v829_v2  ;;  %735 = vmatprep.subr.bf16.mxu1 %v768_v1  ;;  %v759_v8 = vld [vmem:[%s927_s5] sm:$0xff]   ;;  %vm355_vm3 = vcmask 519168   ;;  %vm358_vm4 = vcmask 523268   ;;  %vm582_vm5 = vcmask 523264  }
  0x10   : > { %v697_v9 = vld [vmem:[%s924_s2] ss:$0 sm:$0xff]  ;;  %v701_v17 = vld [vmem:[%s925_s3 + $0x1] ss:$0 sm:$0xff]  ;;  %v702_v26 = vld [vmem:[%s925_s3 + $0x2] ss:$0 sm:$0xff] }
  0x11   : > { %730 = vmatmul.mubr.msk.bf16.vlgmr.msra.gmra.mxu0 %vm305_vm2, %v289_v4  ;;  %v700_v15 = vld [vmem:[%s925_s3] ss:$0 sm:$0xff]  ;;  %v867_v30 = vld [vmem:[%s925_s3 + $0x3] ss:$0 sm:$0xff]  ;;  %v872_v34 = vld [vmem:[%s925_s3 + $0x4] ss:$0 sm:$0xff] }
  0x12   : > { %736 = vmatpush3.bf16.msra.mxu1 %v757_v6  ;;  %v878_v50 = vld [vmem:[%s925_s3 + $0x5] ss:$0 sm:$0xff]  ;;  %v706_v51 = vld [vmem:[%s925_s3 + $0x6] ss:$0 sm:$0xff]  ;;  %v707_v4 = vld [vmem:[%s925_s3 + $0x7] ss:$0 sm:$0xff] }
  0x13   : > { %737 = vmatprep.subr.bf16.mxu1 %v768_v1  ;;  %v364_v14 = vld [vmem:[#allocation2] sm:$0xf] }
  0x14   : > { %v381_v16 = vld [vmem:[#allocation2 + $0x1] sm:$0xf]  ;;  %v373_v22 = vmul.f32 %v700_v15, %v364_v14 }
  0x15   : > { %v390_v23 = vmul.f32 %v701_v17, %v381_v16  ;;  %v398_v25 = vld [vmem:[#allocation2 + $0x2] sm:$0xf] }
  0x16   : > { %738 = vmatpush3.bf16.msra.mxu1 %v758_v7  ;;  %v407_v29 = vmul.f32 %v702_v26, %v398_v25 }
  0x17   : > { %739 = vmatprep.subr.bf16.mxu1 %v768_v1  ;;  %v394_v28 = vadd.f32 %v390_v23, %v373_v22 }
  0x19   : > { %v411_v41 = vadd.f32 %v407_v29, %v394_v28 }
  0x1a   : > { %740 = vmatpush3.bf16.msra.mxu1 %v759_v8 }
  0xd1   : > { %v343_v10 = vpop.f32.mrf.mxu0 }
  0xd2   : > { %v344_v11 = vadd.f32 %v697_v9, %v343_v10 }
  0xd3   : > { %v731_v12 = vpop.f32.mrf.mxu0 }
  0xd4   : > { %v350_v13 = vmax.f32 %v344_v11, 0.0 }
  0xd5   : > { %v346_v18 = vpop.f32.mrf.mxu0 }
  0xd6   : > { %v352_v19 = vmin.f32 %v350_v13, 6.0  ;;  %v347_v20 = vadd.f32 %v697_v9, %v346_v18 }
  0xd7   : > { %v732_v21 = vpop.f32.mrf.mxu0 }
  0xd8   : > { %356 = vst.msk [vmem:[#allocation2 + $0x9] sm:$0xf] %vm355_vm3, %v352_v19  ;;  %v351_v24 = vmax.f32 %v347_v20, 0.0  ;;  %v708_v20 = vld [vmem:[%s925_s3 + $0x8] ss:$0 sm:$0xff] }
  0xd9   : > { %359 = vst.msk [vmem:[#allocation2 + $0xd] sm:$0xf0] %vm358_vm4, %v352_v19 }
  0xda   : > { %v353_v27 = vmin.f32 %v351_v24, 6.0 }
  0xdc   : > { %361 = vst.msk [vmem:[#allocation2 + $0x19] sm:$0xf] %vm355_vm3, %v353_v27 }
  0xdd   : > { %363 = vst.msk [vmem:[#allocation2 + $0x1d] sm:$0xf0] %vm358_vm4, %v353_v27 }
  0xdf   : > { %v365_v31 = vld [vmem:[#allocation2 + $0x8] sm:$0xf] }
  0xe0   : > { %v366_v32 = vld [vmem:[#allocation2 + $0x10] sm:$0xf]  ;;  %v382_v33 = vld [vmem:[#allocation2 + $0x9] sm:$0xf]  ;;  %v374_v35 = vmul.f32 %v700_v15, %v365_v31 }
  0xe1   : > { %v375_v36 = vmul.f32 %v700_v15, %v366_v32  ;;  %v383_v37 = vld [vmem:[#allocation2 + $0x11] sm:$0xf]  ;;  %v391_v38 = vmul.f32 %v701_v17, %v382_v33  ;;  %v399_v39 = vld [vmem:[#allocation2 + $0xa] sm:$0xf] }
  0xe2   : > { %v400_v40 = vld [vmem:[#allocation2 + $0x12] sm:$0xf]  ;;  %v392_v42 = vmul.f32 %v701_v17, %v383_v37  ;;  %v415_v43 = vld [vmem:[#allocation2 + $0x8] sm:$0xf]  ;;  %v408_v47 = vmul.f32 %v702_v26, %v399_v39 }
  0xe3   : > { %v416_v44 = vld [vmem:[#allocation2 + $0x10] sm:$0xf]  ;;  %v432_v45 = vld [vmem:[#allocation2 + $0x9] sm:$0xf]  ;;  %v395_v46 = vadd.f32 %v391_v38, %v374_v35  ;;  %v424_v48 = vmul.f32 %v867_v30, %v415_v43  ;;  %v409_v53 = vmul.f32 %v702_v26, %v400_v40  ;;  %v367_v61 = vld [vmem:[#allocation2 + $0x18] sm:$0xf] }
  0xe4   : > { %v433_v49 = vld [vmem:[#allocation2 + $0x11] sm:$0xf]  ;;  %v396_v52 = vadd.f32 %v392_v42, %v375_v36  ;;  %v449_v54 = vld [vmem:[#allocation2 + $0xa] sm:$0xf]  ;;  %v425_v58 = vmul.f32 %v867_v30, %v416_v44  ;;  %v441_v60 = vmul.f32 %v872_v34, %v432_v45  ;;  %v384_v62 = vld [vmem:[#allocation2 + $0x19] sm:$0xf]  ;;  %v376_v5 = vmul.f32 %v700_v15, %v367_v61 }
  0xe5   : > { %v450_v55 = vld [vmem:[#allocation2 + $0x12] sm:$0xf]  ;;  %v412_v57 = vadd.f32 %v408_v47, %v395_v46  ;;  %v428_v59 = vadd.f32 %v424_v48, %v411_v41  ;;  %v401_v63 = vld [vmem:[#allocation2 + $0x1a] sm:$0xf]  ;;  %v442_v1 = vmul.f32 %v872_v34, %v433_v49  ;;  %v393_v6 = vmul.f32 %v701_v17, %v384_v62  ;;  %v418_v13 = vld [vmem:[#allocation2 + $0x20] sm:$0xf] }
  0xe6   : > { %v466_v56 = vld [vmem:[#allocation2 + $0x10] sm:$0xf]  ;;  %v413_v0 = vadd.f32 %v409_v53, %v396_v52  ;;  %v417_v7 = vld [vmem:[#allocation2 + $0x18] sm:$0xf]  ;;  %v458_v11 = vmul.f32 %v878_v50, %v449_v54  ;;  %v459_v18 = vmul.f32 %v878_v50, %v450_v55  ;;  %v410_v17 = vmul.f32 %v702_v26, %v401_v63  ;;  %v435_v27 = vld [vmem:[#allocation2 + $0x21] sm:$0xf] }
  0xe7   : > { %v434_v8 = vld [vmem:[#allocation2 + $0x19] sm:$0xf]  ;;  %v429_v9 = vadd.f32 %v425_v58, %v412_v57  ;;  %v445_v10 = vadd.f32 %v441_v60, %v428_v59  ;;  %v483_v12 = vld [vmem:[#allocation2 + $0x11] sm:$0xf]  ;;  %v426_v14 = vmul.f32 %v867_v30, %v417_v7  ;;  %v475_v19 = vmul.f32 %v706_v51, %v466_v56  ;;  %v468_v29 = vld [vmem:[#allocation2 + $0x20] sm:$0xf] }
  0xe8   : > { %v451_v16 = vld [vmem:[#allocation2 + $0x1a] sm:$0xf]  ;;  %v397_v15 = vadd.f32 %v393_v6, %v376_v5  ;;  %v500_v24 = vld [vmem:[#allocation2 + $0x12] sm:$0xf]  ;;  %v443_v28 = vmul.f32 %v872_v34, %v434_v8  ;;  %v492_v31 = vmul.f32 %v707_v4, %v483_v12  ;;  %v427_v33 = vmul.f32 %v867_v30, %v418_v13  ;;  %v469_v38 = vld [vmem:[#allocation2 + $0x28] sm:$0xf] }
  0xe9   : > { %v467_v21 = vld [vmem:[#allocation2 + $0x18] sm:$0xf]  ;;  %v446_v22 = vadd.f32 %v442_v1, %v429_v9  ;;  %v462_v23 = vadd.f32 %v458_v11, %v445_v10  ;;  %v430_v25 = vadd.f32 %v426_v14, %v413_v0  ;;  %v460_v35 = vmul.f32 %v878_v50, %v451_v16  ;;  %v452_v40 = vld [vmem:[#allocation2 + $0x22] sm:$0xf]  ;;  %v486_v48 = vld [vmem:[#allocation2 + $0x29] sm:$0xf] }
  0xea   : > { %v414_v32 = vadd.f32 %v410_v17, %v397_v15  ;;  %v484_v36 = vld [vmem:[#allocation2 + $0x19] sm:$0xf]  ;;  %v476_v41 = vmul.f32 %v706_v51, %v467_v21  ;;  %v485_v42 = vld [vmem:[#allocation2 + $0x21] sm:$0xf]  ;;  %v509_v43 = vmul.f32 %v708_v20, %v500_v24  ;;  %v444_v45 = vmul.f32 %v872_v34, %v435_v27  ;;  %v709_v55 = vld [vmem:[%s926_s4] ss:$0 sm:$0xff] }
  0xeb   : > { %v463_v37 = vadd.f32 %v459_v18, %v446_v22  ;;  %v479_v39 = vadd.f32 %v475_v19, %v462_v23  ;;  %v447_v26 = vadd.f32 %v443_v28, %v430_v25  ;;  %v477_v46 = vmul.f32 %v706_v51, %v468_v29  ;;  %v501_v47 = vld [vmem:[#allocation2 + $0x1a] sm:$0xf]  ;;  %v502_v59 = vld [vmem:[#allocation2 + $0x22] sm:$0xf]  ;;  %v503_v60 = vld [vmem:[#allocation2 + $0x2a] sm:$0xf] }
  0xec   : > { %v431_v44 = vadd.f32 %v427_v33, %v414_v32  ;;  %v493_v53 = vmul.f32 %v707_v4, %v484_v36  ;;  %v478_v54 = vmul.f32 %v706_v51, %v469_v38  ;;  %v461_v57 = vmul.f32 %v878_v50, %v452_v40  ;;  %v710_v25 = vld [vmem:[%s928_s6] ss:$0 sm:$0xff] }
  0xed   : > { %v496_v49 = vadd.f32 %v492_v31, %v479_v39  ;;  %v464_v52 = vadd.f32 %v460_v35, %v447_v26  ;;  %v480_v30 = vadd.f32 %v476_v41, %v463_v37  ;;  %v494_v58 = vmul.f32 %v707_v4, %v485_v42 }
  0xee   : > { %v448_v56 = vadd.f32 %v444_v45, %v431_v44  ;;  %v510_v63 = vmul.f32 %v708_v20, %v501_v47  ;;  %v495_v0 = vmul.f32 %v707_v4, %v486_v48  ;;  %v511_v7 = vmul.f32 %v708_v20, %v502_v59 }
  0xef   : > { %v513_v61 = vadd.f32 %v509_v43, %v496_v49  ;;  %v481_v34 = vadd.f32 %v477_v46, %v464_v52  ;;  %v497_v62 = vadd.f32 %v493_v53, %v480_v30  ;;  %v512_v8 = vmul.f32 %v708_v20, %v503_v60 }
  0xf0   : > { %v465_v1 = vadd.f32 %v461_v57, %v448_v56 }
  0xf1   : > { %v524_v5 = vadd.f32 %v709_v55, %v513_v61  ;;  %v498_v6 = vadd.f32 %v494_v58, %v481_v34  ;;  %v514_v51 = vadd.f32 %v510_v63, %v497_v62 }
  0xf2   : > { %v482_v9 = vadd.f32 %v478_v54, %v465_v1 }
  0xf3   : > { %v528_v10 = vmax.f32 %v524_v5, 0.0  ;;  %v515_v11 = vadd.f32 %v511_v7, %v498_v6  ;;  %v525_v12 = vadd.f32 %v709_v55, %v514_v51 }
  0xf4   : > { %v499_v13 = vadd.f32 %v495_v0, %v482_v9 }
  0xf5   : > { %v532_v50 = vmin.f32 %v528_v10, 6.0  ;;  %v526_v14 = vadd.f32 %v709_v55, %v515_v11  ;;  %v529_v16 = vmax.f32 %v525_v12, 0.0 }
  0xf6   : > { %v516_v18 = vadd.f32 %v512_v8, %v499_v13 }
  0xf7   : > { %536 = vst.msk [vmem:[#allocation3] sm:$0xf] %vm355_vm3, %v532_v50  ;;  %v530_v19 = vmax.f32 %v526_v14, 0.0  ;;  %v533_v15 = vmin.f32 %v529_v16, 6.0 }
  0xf8   : > { %v527_v4 = vadd.f32 %v709_v55, %v516_v18 }
  0xf9   : > { %v534_v17 = vmin.f32 %v530_v19, 6.0  ;;  %537 = vst.msk [vmem:[#allocation3 + $0x4] sm:$0xf] %vm355_vm3, %v533_v15 }
  0xfa   : > { %v531_v21 = vmax.f32 %v527_v4, 0.0 }
  0xfb   : > { %538 = vst.msk [vmem:[#allocation3 + $0x8] sm:$0xf] %vm355_vm3, %v534_v17 }
  0xfc   : > { %v535_v20 = vmin.f32 %v531_v21, 6.0 }
  0xfe   : > { %539 = vst.msk [vmem:[#allocation3 + $0xc] sm:$0xf] %vm355_vm3, %v535_v20 }
 0x100   : > { %v540_v22 = vld [vmem:[#allocation3] sm:$0xff] }
 0x105   : > { %v541_v23 = vld [vmem:[#allocation3 + $0x8] sm:$0xff] }
 0x106   : > { %v542_v24 = vpack.c.bf16 %v541_v23, %v540_v22 }
 0x108   : > { %742 = vmatmul.mubr.msk.bf16.vlgmr.msra.gmra.mxu1 %vm582_vm5, %v542_v24 }
 0x1c8   : > { %v620_v27 = vpop.f32.mrf.mxu1 }
 0x1c9   : > { %v621_v28 = vadd.f32 %v710_v25, %v620_v27 }
 0x1ca   : > { %v743_v29 = vpop.f32.mrf.mxu1 }
 0x1cb   : > { %v629_v31 = vadd.f32 %v621_v28, %v829_v2 }
 0x1cc   : > { %v623_v32 = vpop.f32.mrf.mxu1 }
 0x1cd   : > { %631 = vst.msk [vmem:[%s278_s23] sm:$0xff] %vm305_vm2, %v629_v31  ;;  %v624_v33 = vadd.f32 %v710_v25, %v623_v32 }
 0x1ce   : > { %v744_v35 = vpop.f32.mrf.mxu1 }
 0x1cf   : > { %v630_v36 = vadd.f32 %v624_v33, %v831_v3 }
 0x1d1   : > { %632 = vst.msk [vmem:[%s278_s23 + $0x8] sm:$0xff] %vm305_vm2, %v630_v36 }
 0x1d2 PF: > { %s17_s24 = sadd.s32 1, %s766_s24  }
 0x1d3   : > { %p14_p4 = scmp.ge.s32.totalorder %s17_s24, 4  }
 0x1d5   :  { %16 = sbr.rel (!%p14_p4) target bundleno = 1 (0x1), region = 82 }

// kernel: _lambda_.6
= control target key start
LH: loop header
LB: loop body
LE: loop exit
PB: predicated region body
PF: predicated region fallthrough
CT: control target
= control target key end

     0   :  { %s847_s18 = smov 0   ;;  %s1183_s0 = inlined_call_operand.vmem [shape: f32[2,64,8], index: 0, kind: input, shape index: {}]   ;;  %s1184_s1 = inlined_call_operand.vmem [shape: f32[9,8], index: 1, kind: input, shape index: {}]   ;;  %s1185_s2 = inlined_call_operand.vmem [shape: f32[1,8], index: 2, kind: input, shape index: {}, may-alias: {2,4}]   ;;  %s1186_s3 = inlined_call_operand.vmem [shape: bf16[8,8], index: 3, kind: input, shape index: {}]   ;;  %s1187_s4 = inlined_call_operand.vmem [shape: f32[1,8], index: 4, kind: input, shape index: {}, may-alias: {2,4}]   ;;  %s1188_s5 = inlined_call_operand.vmem [shape: f32[2,64,8], index: 5, kind: output, shape index: {}]  }
   0x1 LB: > { %s752_s19 = sadd.s32 4294967295, %s814_s18   ;;  %p756_p0 = scmp.ge.s32.totalorder %s814_s18, 1  ;;  %s814_s18 = sphi %s847_s18, %s15_s18  }
   0x2   : > { %p187_p1 = scmp.lt.s32.totalorder %s814_s18, 3 }
   0x4   : > { %p188_p2 = pnand %p756_p0, %p187_p1 }
   0x5   : > { %p858_p3 = scmp.lt.s32.totalorder (!%p188_p2), %s752_s19, 1 }
   0x6   : > { %191 = sbr.rel (%p188_p2) target bundleno = 294 (0x126), region = 40 }
   0xb   : > { %v584_v0 = vld [vmem:[%s1186_s3] sm:$0xf]  ;;  %vm604_vm0 = vcmask 1043456   ;;  %vm226_vm1 = vcmask 64512   ;;  %v816_v2 = vmov 0.0   ;;  %vm228_vm2 = vcmask 58368  }
   0xc   : > { %797 = vmatprep.subr.msk.bf16.mxu0 %vm604_vm0, %v584_v0  ;;  %798 = vmatprep.subr.msk.bf16.mxu1 %vm604_vm0, %v584_v0  ;;  %v606_v1 = vsel %vm604_vm0, %v584_v0, 0  ;;  %227 = vst.msk [vmem:[#allocation2] sm:$0xff] %vm226_vm1, %v816_v2  ;;  %230 = vst.msk [vmem:[#allocation2 + $0x10] sm:$0xff] %vm226_vm1, %v816_v2  ;;  %s1191_s19 = smov (!%p858_p3, %s752_s19), 1  ;;  %v895_v3 = vld [vmem:[%s1184_s1] ss:$0 sm:$0xff] }
   0xd   : > { %232 = vst.msk [vmem:[#allocation2 + $0x20] sm:$0xff] %vm226_vm1, %v816_v2  ;;  %234 = vst.msk [vmem:[#allocation2 + $0x30] sm:$0xff] %vm226_vm1, %v816_v2  ;;  %786 = vmatpush3.bf16.msra.mxu0 %v606_v1  ;;  %796 = vmatpush3.bf16.msra.mxu1 %v606_v1  ;;  %s778_s23 = sshll.u32 %s1191_s19, 6  ;;  %v900_v4 = vld [vmem:[%s1184_s1 + $0x1] ss:$0 sm:$0xff] }
   0xe   : > { %236 = vst.msk [vmem:[#allocation2 + $0x40] sm:$0xff] %vm226_vm1, %v816_v2  ;;  %238 = vst.msk [vmem:[#allocation2 + $0x50] sm:$0xff] %vm226_vm1, %v816_v2  ;;  %s219_s26 = scalar_lea.vmem %s1183_s0, %s778_s23  ;;  %v905_v5 = vld [vmem:[%s1184_s1 + $0x2] ss:$0 sm:$0xff]  ;;  %v945_v21 = vld [vmem:[%s1184_s1 + $0x3] ss:$0 sm:$0xff]  ;;  %s224_s29 = scalar_lea.vmem %s1188_s5, %s778_s23 }
   0xf   : > { %240 = vst.msk [vmem:[#allocation2 + $0x60] sm:$0xff] %vm226_vm1, %v816_v2  ;;  %242 = vst.msk [vmem:[#allocation2 + $0x70] sm:$0xff] %vm226_vm1, %v816_v2  ;;  %v907_v6 = vld [vmem:[%s219_s26] sm:$0xff]  ;;  %v909_v7 = vld [vmem:[%s219_s26 + $0x8] sm:$0xff] }
  0x10   : > { %244 = vst.msk [vmem:[#allocation2 + $0x80] sm:$0xff] %vm226_vm1, %v816_v2  ;;  %246 = vst.msk [vmem:[#allocation2 + $0x90] sm:$0xff] %vm226_vm1, %v816_v2  ;;  %v911_v8 = vld [vmem:[%s219_s26 + $0x10] sm:$0xff]  ;;  %v919_v9 = vld [vmem:[%s219_s26 + $0x18] sm:$0xff] }
  0x11   : > { %229 = vst.msk [vmem:[#allocation2 + $0x8] sm:$0x3] %vm228_vm2, %v816_v2  ;;  %231 = vst.msk [vmem:[#allocation2 + $0x18] sm:$0x3] %vm228_vm2, %v816_v2  ;;  %v921_v10 = vld [vmem:[%s219_s26 + $0x20] sm:$0xff]  ;;  %v923_v11 = vld [vmem:[%s219_s26 + $0x28] sm:$0xff] }
  0x12   : > { %233 = vst.msk [vmem:[#allocation2 + $0x28] sm:$0x3] %vm228_vm2, %v816_v2  ;;  %235 = vst.msk [vmem:[#allocation2 + $0x38] sm:$0x3] %vm228_vm2, %v816_v2  ;;  %v931_v13 = vld [vmem:[%s219_s26 + $0x30] sm:$0xff]  ;;  %v933_v14 = vld [vmem:[%s219_s26 + $0x38] sm:$0xff] }
  0x13   : > { %237 = vst.msk [vmem:[#allocation2 + $0x48] sm:$0x3] %vm228_vm2, %v816_v2  ;;  %239 = vst.msk [vmem:[#allocation2 + $0x58] sm:$0x3] %vm228_vm2, %v816_v2  ;;  %v272_v12 = vld [vmem:[#allocation2] sm:$0xff] }
  0x14   : > { %241 = vst.msk [vmem:[#allocation2 + $0x68] sm:$0x3] %vm228_vm2, %v816_v2  ;;  %243 = vst.msk [vmem:[#allocation2 + $0x78] sm:$0x3] %vm228_vm2, %v816_v2  ;;  %v285_v15 = vmul.f32 %v895_v3, %v272_v12  ;;  %v950_v22 = vld [vmem:[%s1184_s1 + $0x4] ss:$0 sm:$0xff] }
  0x15   : > { %245 = vst.msk [vmem:[#allocation2 + $0x88] sm:$0x3] %vm228_vm2, %v816_v2  ;;  %247 = vst.msk [vmem:[#allocation2 + $0x98] sm:$0x3] %vm228_vm2, %v816_v2  ;;  %v955_v23 = vld [vmem:[%s1184_s1 + $0x5] ss:$0 sm:$0xff] }
  0x16   : > { %250 = vst.msk [vmem:[#allocation2 + $0x11] sm:$0xff] %vm226_vm1, %v907_v6  ;;  %253 = vst.msk [vmem:[#allocation2 + $0x21] sm:$0xff] %vm226_vm1, %v909_v7  ;;  %v960_v24 = vld [vmem:[%s1184_s1 + $0x6] ss:$0 sm:$0xff]  ;;  %v965_v25 = vld [vmem:[%s1184_s1 + $0x7] ss:$0 sm:$0xff] }
  0x17   : > { %256 = vst.msk [vmem:[#allocation2 + $0x31] sm:$0xff] %vm226_vm1, %v911_v8  ;;  %259 = vst.msk [vmem:[#allocation2 + $0x41] sm:$0xff] %vm226_vm1, %v919_v9  ;;  %v970_v26 = vld [vmem:[%s1184_s1 + $0x8] ss:$0 sm:$0xff] }
  0x18   : > { %262 = vst.msk [vmem:[#allocation2 + $0x51] sm:$0xff] %vm226_vm1, %v921_v10  ;;  %265 = vst.msk [vmem:[#allocation2 + $0x61] sm:$0xff] %vm226_vm1, %v923_v11  ;;  %v301_v16 = vld [vmem:[#allocation2 + $0x1] sm:$0xff] }
  0x19   : > { %v330_v17 = vld [vmem:[#allocation2 + $0x2] sm:$0xff]  ;;  %268 = vst.msk [vmem:[#allocation2 + $0x71] sm:$0xff] %vm226_vm1, %v931_v13  ;;  %271 = vst.msk [vmem:[#allocation2 + $0x81] sm:$0xff] %vm226_vm1, %v933_v14  ;;  %v314_v18 = vmul.f32 %v900_v4, %v301_v16 }
  0x1a   : > { %v343_v19 = vmul.f32 %v905_v5, %v330_v17 }
  0x1b   : > { %v322_v20 = vadd.f32 %v314_v18, %v285_v15 }
  0x1d   : > { %v273_v27 = vld [vmem:[#allocation2 + $0x10] sm:$0xff]  ;;  %v351_v30 = vadd.f32 %v343_v19, %v322_v20  ;;  %v975_v34 = vld [vmem:[#allocation2 + $0x20] sm:$0xff] }
  0x1e   : > { %v302_v28 = vld [vmem:[#allocation2 + $0x11] sm:$0xff]  ;;  %v286_v31 = vmul.f32 %v895_v3, %v273_v27  ;;  %v372_v35 = vmul.f32 %v945_v21, %v273_v27  ;;  %v978_v36 = vld [vmem:[#allocation2 + $0x21] sm:$0xff]  ;;  %v373_v38 = vmul.f32 %v945_v21, %v975_v34  ;;  %v459_v48 = vmul.f32 %v960_v24, %v975_v34 }
  0x1f   : > { %v331_v29 = vld [vmem:[#allocation2 + $0x12] sm:$0xff]  ;;  %v315_v32 = vmul.f32 %v900_v4, %v302_v28  ;;  %v980_v37 = vld [vmem:[#allocation2 + $0x22] sm:$0xff]  ;;  %v401_v39 = vmul.f32 %v950_v22, %v302_v28  ;;  %v402_v40 = vmul.f32 %v950_v22, %v978_v36  ;;  %v488_v53 = vmul.f32 %v965_v25, %v978_v36 }
  0x20   : > { %v344_v33 = vmul.f32 %v905_v5, %v331_v29  ;;  %v430_v41 = vmul.f32 %v955_v23, %v331_v29  ;;  %v988_v42 = vld [vmem:[#allocation2 + $0x30] sm:$0xff]  ;;  %v380_v46 = vadd.f32 %v372_v35, %v351_v30  ;;  %v431_v47 = vmul.f32 %v955_v23, %v980_v37  ;;  %v998_v49 = vld [vmem:[#allocation2 + $0x40] sm:$0xff] }
  0x21   : > { %v990_v43 = vld [vmem:[#allocation2 + $0x31] sm:$0xff]  ;;  %v323_v45 = vadd.f32 %v315_v32, %v286_v31  ;;  %v1002_v51 = vld [vmem:[#allocation2 + $0x41] sm:$0xff]  ;;  %v460_v52 = vmul.f32 %v960_v24, %v988_v42  ;;  %v517_v55 = vmul.f32 %v970_v26, %v980_v37  ;;  %v289_v62 = vmul.f32 %v895_v3, %v998_v49 }
  0x22   : > { %v992_v44 = vld [vmem:[#allocation2 + $0x32] sm:$0xff]  ;;  %v489_v54 = vmul.f32 %v965_v25, %v990_v43  ;;  %v1014_v57 = vld [vmem:[#allocation2 + $0x42] sm:$0xff]  ;;  %v409_v60 = vadd.f32 %v401_v39, %v380_v46  ;;  %v318_v0 = vmul.f32 %v900_v4, %v1002_v51 }
  0x23   : > { %v1000_v50 = vld [vmem:[#allocation2 + $0x50] sm:$0xff]  ;;  %v352_v59 = vadd.f32 %v344_v33, %v323_v45  ;;  %v518_v61 = vmul.f32 %v970_v26, %v992_v44  ;;  %v347_v2 = vmul.f32 %v905_v5, %v1014_v57  ;;  %v1032_v17 = vld [vmem:[#allocation2 + $0x60] sm:$0xff] }
  0x24   : > { %v1012_v56 = vld [vmem:[#allocation2 + $0x51] sm:$0xff]  ;;  %v290_v63 = vmul.f32 %v895_v3, %v1000_v50  ;;  %v438_v15 = vadd.f32 %v430_v41, %v409_v60  ;;  %v376_v18 = vmul.f32 %v945_v21, %v1000_v50  ;;  %v326_v19 = vadd.f32 %v318_v0, %v289_v62  ;;  %v1038_v28 = vld [vmem:[#allocation2 + $0x61] sm:$0xff] }
  0x25   : > { %v1016_v58 = vld [vmem:[#allocation2 + $0x52] sm:$0xff]  ;;  %v319_v1 = vmul.f32 %v900_v4, %v1012_v56  ;;  %v381_v12 = vadd.f32 %v373_v38, %v352_v59  ;;  %v377_v27 = vmul.f32 %v945_v21, %v1032_v17  ;;  %v405_v29 = vmul.f32 %v950_v22, %v1012_v56  ;;  %v1044_v33 = vld [vmem:[#allocation2 + $0x62] sm:$0xff] }
  0x26   : > { %v348_v16 = vmul.f32 %v905_v5, %v1016_v58  ;;  %v467_v31 = vadd.f32 %v459_v48, %v438_v15  ;;  %v406_v32 = vmul.f32 %v950_v22, %v1038_v28  ;;  %v434_v35 = vmul.f32 %v955_v23, %v1016_v58  ;;  %v1050_v45 = vld [vmem:[#allocation2 + $0x70] sm:$0xff] }
  0x27   : > { %v327_v20 = vadd.f32 %v319_v1, %v290_v63  ;;  %v410_v30 = vadd.f32 %v402_v40, %v381_v12  ;;  %v355_v38 = vadd.f32 %v347_v2, %v326_v19  ;;  %v435_v41 = vmul.f32 %v955_v23, %v1044_v33  ;;  %v1056_v60 = vld [vmem:[#allocation2 + $0x71] sm:$0xff]  ;;  %v1063_v63 = vld [vmem:[%s1185_s2] ss:$0 sm:$0xff] }
  0x28   : > { %v463_v46 = vmul.f32 %v960_v24, %v1032_v17  ;;  %v496_v48 = vadd.f32 %v488_v53, %v467_v31  ;;  %v464_v59 = vmul.f32 %v960_v24, %v1050_v45  ;;  %v492_v62 = vmul.f32 %v965_v25, %v1038_v28 }
  0x29   : > { %v356_v39 = vadd.f32 %v348_v16, %v327_v20  ;;  %v439_v40 = vadd.f32 %v431_v47, %v410_v30  ;;  %v384_v0 = vadd.f32 %v376_v18, %v355_v38  ;;  %v493_v2 = vmul.f32 %v965_v25, %v1056_v60  ;;  %v1067_v47 = vld [vmem:[#allocation2 + $0x72] sm:$0xff] }
  0x2a   : > { %v521_v53 = vmul.f32 %v970_v26, %v1044_v33  ;;  %v525_v15 = vadd.f32 %v517_v55, %v496_v48  ;;  %v522_v16 = vmul.f32 %v970_v26, %v1067_v47  ;;  %v287_v19 = vmul.f32 %v895_v3, %v975_v34 }
  0x2b   : > { %v385_v1 = vadd.f32 %v377_v27, %v356_v39  ;;  %v468_v12 = vadd.f32 %v460_v52, %v439_v40  ;;  %v413_v20 = vadd.f32 %v405_v29, %v384_v0  ;;  %v288_v18 = vmul.f32 %v895_v3, %v988_v42 }
  0x2c   : > { %v316_v27 = vmul.f32 %v900_v4, %v978_v36  ;;  %v540_v38 = vadd.f32 %v1063_v63, %v525_v15  ;;  %v317_v52 = vmul.f32 %v900_v4, %v990_v43  ;;  %v345_v55 = vmul.f32 %v905_v5, %v980_v37 }
  0x2d   : > { %v414_v30 = vadd.f32 %v406_v32, %v385_v1  ;;  %v497_v31 = vadd.f32 %v489_v54, %v468_v12  ;;  %v442_v39 = vadd.f32 %v434_v35, %v413_v20  ;;  %v346_v29 = vmul.f32 %v905_v5, %v992_v44 }
  0x2e   : > { %v324_v34 = vadd.f32 %v316_v27, %v287_v19  ;;  %v548_v48 = vmax.f32 %v540_v38, 0.0  ;;  %v325_v0 = vadd.f32 %v317_v52, %v288_v18  ;;  %v374_v36 = vmul.f32 %v945_v21, %v988_v42 }
  0x2f   : > { %v443_v40 = vadd.f32 %v435_v41, %v414_v30  ;;  %v526_v32 = vadd.f32 %v518_v61, %v497_v31  ;;  %v471_v54 = vadd.f32 %v463_v46, %v442_v39  ;;  %v375_v15 = vmul.f32 %v945_v21, %v998_v49 }
  0x30   : > { %v353_v12 = vadd.f32 %v345_v55, %v324_v34  ;;  %v556_v35 = vmin.f32 %v548_v48, 6.0  ;;  %v354_v41 = vadd.f32 %v346_v29, %v325_v0  ;;  %v403_v19 = vmul.f32 %v950_v22, %v990_v43 }
  0x31   : > { %v472_v1 = vadd.f32 %v464_v59, %v443_v40  ;;  %v541_v37 = vadd.f32 %v1063_v63, %v526_v32  ;;  %v500_v20 = vadd.f32 %v492_v62, %v471_v54  ;;  %v404_v18 = vmul.f32 %v950_v22, %v1002_v51 }
  0x32   : > { %v382_v30 = vadd.f32 %v374_v36, %v353_v12  ;;  %564 = vst.msk [vmem:[#allocation3] sm:$0xff] %vm226_vm1, %v556_v35  ;;  %v383_v46 = vadd.f32 %v375_v15, %v354_v41  ;;  %v432_v59 = vmul.f32 %v955_v23, %v992_v44  ;;  %v433_v27 = vmul.f32 %v955_v23, %v1014_v57 }
  0x33   : > { %v501_v61 = vadd.f32 %v493_v2, %v472_v1  ;;  %v549_v42 = vmax.f32 %v541_v37, 0.0  ;;  %v529_v31 = vadd.f32 %v521_v53, %v500_v20  ;;  %v461_v43 = vmul.f32 %v960_v24, %v998_v49  ;;  %v395_v37 = vld [vmem:[#allocation2 + $0x81] sm:$0xff] }
  0x34   : > { %v411_v52 = vadd.f32 %v403_v19, %v382_v30  ;;  %v412_v2 = vadd.f32 %v404_v18, %v383_v46  ;;  %v462_v55 = vmul.f32 %v960_v24, %v1000_v50  ;;  %v490_v39 = vmul.f32 %v965_v25, %v1002_v51  ;;  %v424_v19 = vld [vmem:[#allocation2 + $0x82] sm:$0xff]  ;;  %v453_v46 = vld [vmem:[#allocation2 + $0x90] sm:$0xff] }
  0x35   : > { %v530_v38 = vadd.f32 %v522_v16, %v501_v61  ;;  %v557_v62 = vmin.f32 %v549_v42, 6.0  ;;  %v544_v40 = vadd.f32 %v1063_v63, %v529_v31  ;;  %v491_v53 = vmul.f32 %v965_v25, %v1012_v56 }
  0x36   : > { %v440_v34 = vadd.f32 %v432_v59, %v411_v52  ;;  %v441_v16 = vadd.f32 %v433_v27, %v412_v2  ;;  %v519_v49 = vmul.f32 %v970_v26, %v1014_v57  ;;  %v520_v50 = vmul.f32 %v970_v26, %v1016_v58  ;;  %v366_v58 = vld [vmem:[#allocation2 + $0x80] sm:$0xff] }
  0x37   : > { %v545_v44 = vadd.f32 %v1063_v63, %v530_v38  ;;  %565 = vst.msk [vmem:[#allocation3 + $0x8] sm:$0xff] %vm226_vm1, %v557_v62  ;;  %v291_v51 = vmul.f32 %v895_v3, %v1032_v17  ;;  %v552_v29 = vmax.f32 %v544_v40, 0.0  ;;  %v292_v0 = vmul.f32 %v895_v3, %v1050_v45 }
  0x38   : > { %v469_v48 = vadd.f32 %v461_v43, %v440_v34  ;;  %v470_v36 = vadd.f32 %v462_v55, %v441_v16  ;;  %v320_v56 = vmul.f32 %v900_v4, %v1038_v28  ;;  %v321_v54 = vmul.f32 %v900_v4, %v1056_v60 }
  0x39   : > { %v553_v32 = vmax.f32 %v545_v44, 0.0  ;;  %v349_v57 = vmul.f32 %v905_v5, %v1044_v33  ;;  %v560_v1 = vmin.f32 %v552_v29, 6.0  ;;  %v350_v15 = vmul.f32 %v905_v5, %v1067_v47  ;;  %v572_v20 = vld [vmem:[#allocation3] sm:$0xff] }
  0x3a   : > { %v498_v17 = vadd.f32 %v490_v39, %v469_v48  ;;  %v499_v35 = vadd.f32 %v491_v53, %v470_v36  ;;  %v328_v3 = vadd.f32 %v320_v56, %v291_v51  ;;  %v329_v41 = vadd.f32 %v321_v54, %v292_v0 }
  0x3b   : > { %v561_v12 = vmin.f32 %v553_v32, 6.0  ;;  %v378_v28 = vmul.f32 %v945_v21, %v1050_v45  ;;  %568 = vst.msk [vmem:[#allocation3 + $0x20] sm:$0xff] %vm226_vm1, %v560_v1  ;;  %v379_v33 = vmul.f32 %v945_v21, %v366_v58  ;;  %v407_v61 = vmul.f32 %v950_v22, %v1056_v60  ;;  %v482_v60 = vld [vmem:[#allocation2 + $0x91] sm:$0xff] }
  0x3c   : > { %v527_v4 = vadd.f32 %v519_v49, %v498_v17  ;;  %v528_v5 = vadd.f32 %v520_v50, %v499_v35  ;;  %v357_v30 = vadd.f32 %v349_v57, %v328_v3  ;;  %v358_v18 = vadd.f32 %v350_v15, %v329_v41 }
  0x3d   : > { %569 = vst.msk [vmem:[#allocation3 + $0x28] sm:$0xff] %vm226_vm1, %v561_v12  ;;  %v408_v42 = vmul.f32 %v950_v22, %v395_v37  ;;  %v436_v27 = vmul.f32 %v955_v23, %v1067_v47  ;;  %v437_v31 = vmul.f32 %v955_v23, %v424_v19  ;;  %v466_v2 = vmul.f32 %v960_v24, %v453_v46  ;;  %v511_v23 = vld [vmem:[#allocation2 + $0x92] sm:$0xff] }
  0x3e   : > { %v573_v59 = vld [vmem:[#allocation3 + $0x8] sm:$0xff]  ;;  %v542_v45 = vadd.f32 %v1063_v63, %v527_v4  ;;  %v543_v21 = vadd.f32 %v1063_v63, %v528_v5  ;;  %v386_v52 = vadd.f32 %v378_v28, %v357_v30  ;;  %v387_v43 = vadd.f32 %v379_v33, %v358_v18 }
  0x3f   : > { %v580_v38 = vpack.c.bf16 %v573_v59, %v572_v20  ;;  %v465_v40 = vmul.f32 %v960_v24, %v366_v58  ;;  %v495_v47 = vmul.f32 %v965_v25, %v482_v60  ;;  %v494_v51 = vmul.f32 %v965_v25, %v395_v37 }
  0x40   : > { %v550_v62 = vmax.f32 %v542_v45, 0.0  ;;  %v551_v22 = vmax.f32 %v543_v21, 0.0  ;;  %v415_v55 = vadd.f32 %v407_v61, %v386_v52  ;;  %v416_v39 = vadd.f32 %v408_v42, %v387_v43 }
  0x41   : > { %787 = vmatprep.mubr.msk.bf16.mxu0 %vm226_vm1, %v580_v38  ;;  %v523_v24 = vmul.f32 %v970_v26, %v424_v19  ;;  %v524_v0 = vmul.f32 %v970_v26, %v511_v23 }
  0x42   : > { %v558_v44 = vmin.f32 %v550_v62, 6.0  ;;  %v576_v34 = vld [vmem:[#allocation3 + $0x20] sm:$0xff]  ;;  %v559_v16 = vmin.f32 %v551_v22, 6.0  ;;  %v444_v49 = vadd.f32 %v436_v27, %v415_v55  ;;  %v445_v50 = vadd.f32 %v437_v31, %v416_v39 }
  0x44   : > { %v577_v53 = vld [vmem:[#allocation3 + $0x28] sm:$0xff]  ;;  %566 = vst.msk [vmem:[#allocation3 + $0x10] sm:$0xff] %vm226_vm1, %v558_v44  ;;  %567 = vst.msk [vmem:[#allocation3 + $0x18] sm:$0xff] %vm226_vm1, %v559_v16  ;;  %v473_v32 = vadd.f32 %v465_v40, %v444_v49  ;;  %v474_v48 = vadd.f32 %v466_v2, %v445_v50 }
  0x45   : > { %v582_v29 = vpack.c.bf16 %v577_v53, %v576_v34 }
  0x46   : > { %v502_v36 = vadd.f32 %v494_v51, %v473_v32  ;;  %v503_v56 = vadd.f32 %v495_v47, %v474_v48 }
  0x47   : > { %791 = vmatprep.mubr.msk.bf16.mxu1 %vm226_vm1, %v582_v29 }
  0x48   : > { %v531_v54 = vadd.f32 %v523_v24, %v502_v36  ;;  %v532_v57 = vadd.f32 %v524_v0, %v503_v56 }
  0x4a   : > { %v546_v25 = vadd.f32 %v1063_v63, %v531_v54  ;;  %v547_v1 = vadd.f32 %v1063_v63, %v532_v57  ;;  %v771_v63 = vld [vmem:[%s1187_s4] ss:$0 sm:$0xff] }
  0x4b   : > { %v574_v58 = vld [vmem:[#allocation3 + $0x10] sm:$0xff]  ;;  %v575_v12 = vld [vmem:[#allocation3 + $0x18] sm:$0xff] }
  0x4c   : > { %v581_v17 = vpack.c.bf16 %v575_v12, %v574_v58  ;;  %v554_v15 = vmax.f32 %v546_v25, 0.0  ;;  %v555_v37 = vmax.f32 %v547_v1, 0.0 }
  0x4e   : > { %788 = vmatmul.mubr.msk.bf16.vlgmr.msra.gmra.mxu0 %vm226_vm1, %v581_v17  ;;  %v562_v35 = vmin.f32 %v554_v15, 6.0  ;;  %v563_v26 = vmin.f32 %v555_v37, 6.0 }
  0x50   : > { %570 = vst.msk [vmem:[#allocation3 + $0x30] sm:$0xff] %vm226_vm1, %v562_v35  ;;  %571 = vst.msk [vmem:[#allocation3 + $0x38] sm:$0xff] %vm226_vm1, %v563_v26 }
  0x57   : > { %v578_v3 = vld [vmem:[#allocation3 + $0x30] sm:$0xff]  ;;  %v579_v41 = vld [vmem:[#allocation3 + $0x38] sm:$0xff] }
  0x58   : > { %v583_v28 = vpack.c.bf16 %v579_v41, %v578_v3 }
  0x5a   : > { %792 = vmatmul.mubr.msk.bf16.vlgmr.msra.gmra.mxu1 %vm226_vm1, %v583_v28 }
 0x10e   : > { %v789_v19 = vpop.f32.mrf.mxu0 }
 0x10f   : > { %v651_v20 = vadd.f32 %v789_v19, %v771_v63 }
 0x110   : > { %v642_v4 = vpop.f32.mrf.mxu0 }
 0x111   : > { %v683_v33 = vadd.f32 %v651_v20, %v911_v8  ;;  %v643_v61 = vadd.f32 %v771_v63, %v642_v4 }
 0x112   : > { %v790_v5 = vpop.f32.mrf.mxu0 }
 0x113   : > { %691 = vst.msk [vmem:[%s224_s29 + $0x10] sm:$0xff] %vm226_vm1, %v683_v33  ;;  %v681_v30 = vadd.f32 %v643_v61, %v907_v6  ;;  %v654_v18 = vadd.f32 %v790_v5, %v771_v63 }
 0x114   : > { %v645_v42 = vpop.f32.mrf.mxu0 }
 0x115   : > { %689 = vst.msk [vmem:[%s224_s29] sm:$0xff] %vm226_vm1, %v681_v30  ;;  %v684_v46 = vadd.f32 %v654_v18, %v919_v9  ;;  %v646_v59 = vadd.f32 %v771_v63, %v645_v42 }
 0x117   : > { %692 = vst.msk [vmem:[%s224_s29 + $0x18] sm:$0xff] %vm226_vm1, %v684_v46  ;;  %v682_v45 = vadd.f32 %v646_v59, %v909_v7 }
 0x119   : > { %690 = vst.msk [vmem:[%s224_s29 + $0x8] sm:$0xff] %vm226_vm1, %v682_v45 }
 0x11a   : > { %v793_v8 = vpop.f32.mrf.mxu1 }
 0x11b   : > { %v667_v27 = vadd.f32 %v793_v8, %v771_v63 }
 0x11c   : > { %v658_v31 = vpop.f32.mrf.mxu1 }
 0x11d   : > { %v687_v38 = vadd.f32 %v667_v27, %v931_v13  ;;  %v659_v21 = vadd.f32 %v771_v63, %v658_v31 }
 0x11e   : > { %v794_v6 = vpop.f32.mrf.mxu1 }
 0x11f   : > { %695 = vst.msk [vmem:[%s224_s29 + $0x30] sm:$0xff] %vm226_vm1, %v687_v38  ;;  %v685_v52 = vadd.f32 %v659_v21, %v921_v10  ;;  %v670_v43 = vadd.f32 %v794_v6, %v771_v63 }
 0x120   : > { %v661_v9 = vpop.f32.mrf.mxu1 }
 0x121   : > { %693 = vst.msk [vmem:[%s224_s29 + $0x20] sm:$0xff] %vm226_vm1, %v685_v52  ;;  %v688_v60 = vadd.f32 %v670_v43, %v933_v14  ;;  %v662_v7 = vadd.f32 %v771_v63, %v661_v9 }
 0x123   : > { %696 = vst.msk [vmem:[%s224_s29 + $0x38] sm:$0xff] %vm226_vm1, %v688_v60  ;;  %v686_v62 = vadd.f32 %v662_v7, %v923_v11 }
 0x125   : > { %694 = vst.msk [vmem:[%s224_s29 + $0x28] sm:$0xff] %vm226_vm1, %v686_v62 }
 0x126 PF: > { %s15_s18 = sadd.s32 1, %s814_s18  }
 0x127   : > { %p12_p4 = scmp.ge.s32.totalorder %s15_s18, 4  }
 0x129   :  { %14 = sbr.rel (!%p12_p4) target bundleno = 1 (0x1), region = 78 }

// kernel: _lambda_.7
= control target key start
LH: loop header
LB: loop body
LE: loop exit
PB: predicated region body
PF: predicated region fallthrough
CT: control target
= control target key end

     0   :  { %s1155_s27 = smov 0   ;;  %s1280_s0 = inlined_call_operand.vmem [shape: f32[2,32,8], index: 0, kind: input, shape index: {}]   ;;  %s1281_s1 = inlined_call_operand.vmem [shape: f32[2,32,8], index: 1, kind: input, shape index: {}]   ;;  %s1282_s2 = inlined_call_operand.vmem [shape: bf16[8,32], index: 2, kind: input, shape index: {}]   ;;  %s1283_s3 = inlined_call_operand.vmem [shape: f32[1,32], index: 3, kind: input, shape index: {}, may-alias: {3,5}]   ;;  %s1284_s4 = inlined_call_operand.vmem [shape: f32[9,32], index: 4, kind: input, shape index: {}]   ;;  %s1285_s5 = inlined_call_operand.vmem [shape: f32[1,32], index: 5, kind: input, shape index: {}, may-alias: {3,5}]   ;;  %s1286_s6 = inlined_call_operand.vmem [shape: bf16[32,16], index: 6, kind: input, shape index: {}]   ;;  %s1287_s7 = inlined_call_operand.vmem [shape: f32[1,16], index: 7, kind: input, shape index: {}]   ;;  %s1288_s8 = inlined_call_operand.vmem [shape: f32[2,16,16], index: 8, kind: output, shape index: {}]  }
   0x1 LB: > { %s994_s28 = sadd.s32 4294967295, %s1106_s27   ;;  %p998_p0 = scmp.ge.s32.totalorder %s1106_s27, 1  ;;  %s1106_s27 = sphi %s1155_s27, %s18_s27  }
   0x2   : > { %p272_p1 = scmp.lt.s32.totalorder %s1106_s27, 3 }
   0x4   : > { %p273_p2 = pnand %p998_p0, %p272_p1 }
   0x5   : > { %p311_p3 = scmp.lt.s32.totalorder (!%p273_p2), %s994_s28, 1 }
   0x6   : > { %276 = sbr.rel (%p273_p2) target bundleno = 468 (0x1d4), region = 52 }
   0xb   : > { %v353_v0 = vld [vmem:[%s1282_s2] sm:$0xf]  ;;  %vm368_vm0 = vcmask 1043456   ;;  %vm327_vm1 = vcmask 258048   ;;  %s1290_s28 = smov (!%p311_p3, %s994_s28), 1  ;;  %vm337_vm2 = vcmask 257024  }
   0xc   : > { %v451_v1 = vld [vmem:[%s1282_s2] sm:$0xf]  ;;  %1086 = vmatprep.subr.msk.bf16.mxu0 %vm368_vm0, %v353_v0  ;;  %v370_v2 = vsel %vm368_vm0, %v353_v0, 0  ;;  %v1108_v4 = vmov 0.0   ;;  %s1054_s11 = sshll.u32 %s1290_s28, 5  ;;  %vm361_vm3 = vcmask 64512  }
   0xd   : > { %1087 = vmatprep.subr.msk.bf16.mxu1 %vm368_vm0, %v451_v1  ;;  %v466_v3 = vsel %vm368_vm0, %v451_v1, 0  ;;  %1067 = vmatpush3.bf16.msra.mxu0 %v370_v2  ;;  %332 = vst.msk [vmem:[#allocation2 + $0x20] sm:$0x1f] %vm327_vm1, %v1108_v4  ;;  %333 = vst.msk [vmem:[#allocation2 + $0x28] sm:$0x1f] %vm327_vm1, %v1108_v4  ;;  %s315_s14 = scalar_lea.vmem %s1280_s0, %s1054_s11  ;;  %s320_s17 = scalar_lea.vmem %s1281_s1, %s1054_s11  ;;  %v1098_v17 = vld [vmem:[%s1286_s6 + $0x8] sm:$0xff]  }
   0xe   : > { %1073 = vmatpush3.bf16.msra.mxu1 %v466_v3  ;;  %336 = vst.msk [vmem:[#allocation2 + $0x40] sm:$0x1f] %vm327_vm1, %v1108_v4  ;;  %328 = vst.msk [vmem:[#allocation2] sm:$0x1f] %vm327_vm1, %v1108_v4  ;;  %1078 = vmatprep.subr.bf16.mxu0 %v1108_v4  ;;  %v347_v5 = vld [vmem:[%s315_s14] sm:$0xff]  ;;  %v348_v6 = vld [vmem:[%s315_s14 + $0x8] sm:$0xff] }
   0xf   : > { %329 = vst.msk [vmem:[#allocation2 + $0x8] sm:$0x1f] %vm327_vm1, %v1108_v4  ;;  %330 = vst.msk [vmem:[#allocation2 + $0x10] sm:$0x1f] %vm327_vm1, %v1108_v4  ;;  %v445_v7 = vld [vmem:[%s320_s17] sm:$0xff]  ;;  %v351_v8 = vpack.c.bf16 %v348_v6, %v347_v5  ;;  %v446_v9 = vld [vmem:[%s320_s17 + $0x8] sm:$0xff] }
  0x10   : > { %331 = vst.msk [vmem:[#allocation2 + $0x18] sm:$0x1f] %vm327_vm1, %v1108_v4  ;;  %334 = vst.msk [vmem:[#allocation2 + $0x30] sm:$0x1f] %vm327_vm1, %v1108_v4  ;;  %v349_v10 = vld [vmem:[%s315_s14 + $0x10] sm:$0xff]  ;;  %v350_v11 = vld [vmem:[%s315_s14 + $0x18] sm:$0xff]  ;;  %v449_v12 = vpack.c.bf16 %v446_v9, %v445_v7 }
  0x11   : > { %335 = vst.msk [vmem:[#allocation2 + $0x38] sm:$0x1f] %vm327_vm1, %v1108_v4  ;;  %v352_v13 = vpack.c.bf16 %v350_v11, %v349_v10  ;;  %v447_v14 = vld [vmem:[%s320_s17 + $0x10] sm:$0xff]  ;;  %v448_v15 = vld [vmem:[%s320_s17 + $0x18] sm:$0xff]  ;;  %1068 = vmatprep.mubr.msk.bf16.mxu0 %vm361_vm3, %v351_v8  ;;  %vm1109_vm4 = vmmov 0   ;;  %v1099_v18 = vld [vmem:[%s1286_s6] sm:$0xff]  }
  0x12   : > { %338 = vst.msk [vmem:[#allocation3] sm:$0xf] %vm337_vm2, %v1108_v4  ;;  %339 = vst.msk [vmem:[#allocation3 + $0x4] sm:$0xf] %vm337_vm2, %v1108_v4  ;;  %v450_v16 = vpack.c.bf16 %v448_v15, %v447_v14  ;;  %1074 = vmatprep.mubr.msk.bf16.mxu1 %vm361_vm3, %v449_v12  ;;  %v1005_v19 = vld [vmem:[%s1283_s3] ss:$0 sm:$0xff] }
  0x13   : > { %340 = vst.msk [vmem:[#allocation3 + $0x8] sm:$0xf] %vm337_vm2, %v1108_v4  ;;  %341 = vst.msk [vmem:[#allocation3 + $0xc] sm:$0xf] %vm337_vm2, %v1108_v4  ;;  %1069 = vmatmul.mubr.msk.bf16.vlgmr.msra.gmra.mxu0 %vm361_vm3, %v352_v13  ;;  %vm431_vm5 = vcmask 261124   ;;  %vm879_vm6 = vcmask 261120  }
  0x14   : > { %342 = vst.msk [vmem:[#allocation3 + $0x10] sm:$0xf] %vm337_vm2, %v1108_v4  ;;  %343 = vst.msk [vmem:[#allocation3 + $0x14] sm:$0xf] %vm337_vm2, %v1108_v4  ;;  %1075 = vmatmul.mubr.msk.bf16.vlgmr.msra.gmra.mxu1 %vm361_vm3, %v450_v16  ;;  %1082 = vmatprep.mubr.msk.bf16.mxu0 %vm1109_vm4, %v1108_v4  ;;  %v1030_v51 = vld [vmem:[%s1284_s4] ss:$0 sm:$0xff] }
  0x15   : > { %344 = vst.msk [vmem:[#allocation3 + $0x18] sm:$0xf] %vm337_vm2, %v1108_v4  ;;  %345 = vst.msk [vmem:[#allocation3 + $0x1c] sm:$0xf] %vm337_vm2, %v1108_v4  ;;  %1079 = vmatpush3.bf16.msra.mxu0 %v1098_v17  ;;  %v1031_v54 = vld [vmem:[%s1284_s4 + $0x1] ss:$0 sm:$0xff] }
  0x16   : > { %346 = vst.msk [vmem:[#allocation3 + $0x20] sm:$0xf] %vm337_vm2, %v1108_v4  ;;  %1080 = vmatprep.subr.bf16.mxu0 %v1108_v4  ;;  %v1221_v57 = vld [vmem:[%s1284_s4 + $0x2] ss:$0 sm:$0xff]  ;;  %v1226_v59 = vld [vmem:[%s1284_s4 + $0x3] ss:$0 sm:$0xff] }
  0x17   : > { %v1232_v7 = vld [vmem:[%s1284_s4 + $0x4] ss:$0 sm:$0xff]  ;;  %v1238_v11 = vld [vmem:[%s1284_s4 + $0x5] ss:$0 sm:$0xff]  ;;  %s1056_s24 = sshll.u32 %s1290_s28, 4  ;;  %vm924_vm7 = vcmask 130048  }
  0x18   : > { %s325_s9 = scalar_lea.vmem %s1288_s8, %s1056_s24 }
  0x19   : > { %1081 = vmatpush3.bf16.msra.mxu0 %v1099_v18 }
  0xd3   : > { %v1070_v20 = vpop.f32.mrf.mxu0 }
  0xd4   : > { %v415_v21 = vadd.f32 %v1070_v20, %v1005_v19  ;;  %v1076_v22 = vpop.f32.mrf.mxu1 }
  0xd5   : > { %v511_v23 = vadd.f32 %v1076_v22, %v1005_v19  ;;  %v406_v24 = vpop.f32.mrf.mxu0 }
  0xd6   : > { %v423_v25 = vmax.f32 %v415_v21, 0.0  ;;  %v407_v26 = vadd.f32 %v1005_v19, %v406_v24  ;;  %v502_v27 = vpop.f32.mrf.mxu1 }
  0xd7   : > { %v519_v28 = vmax.f32 %v511_v23, 0.0  ;;  %v503_v29 = vadd.f32 %v1005_v19, %v502_v27  ;;  %v1071_v30 = vpop.f32.mrf.mxu0 }
  0xd8   : > { %v427_v31 = vmin.f32 %v423_v25, 6.0  ;;  %v421_v32 = vmax.f32 %v407_v26, 0.0  ;;  %v418_v33 = vadd.f32 %v1071_v30, %v1005_v19  ;;  %v1077_v34 = vpop.f32.mrf.mxu1  ;;  %v824_v26 = vld [vmem:[#allocation2 + $0x40] sm:$0xf] }
  0xd9   : > { %v523_v35 = vmin.f32 %v519_v28, 6.0  ;;  %v517_v36 = vmax.f32 %v503_v29, 0.0  ;;  %v514_v37 = vadd.f32 %v1077_v34, %v1005_v19  ;;  %v409_v38 = vpop.f32.mrf.mxu0 }
  0xda   : > { %438 = vst.msk [vmem:[#allocation2 + $0x20] sm:$0xf] %vm337_vm2, %v427_v31  ;;  %v425_v39 = vmin.f32 %v421_v32, 6.0  ;;  %v424_v40 = vmax.f32 %v418_v33, 0.0  ;;  %v410_v41 = vadd.f32 %v1005_v19, %v409_v38  ;;  %v505_v42 = vpop.f32.mrf.mxu1  ;;  %v1027_v33 = vld [vmem:[%s1284_s4 + $0x6] ss:$0 sm:$0xff] }
  0xdb   : > { %440 = vst.msk [vmem:[#allocation2 + $0x24] sm:$0xf0] %vm431_vm5, %v427_v31  ;;  %535 = vst.msk [vmem:[#allocation3 + $0x10] sm:$0xf0] %vm431_vm5, %v523_v35  ;;  %v521_v43 = vmin.f32 %v517_v36, 6.0  ;;  %v520_v44 = vmax.f32 %v514_v37, 0.0  ;;  %v506_v45 = vadd.f32 %v1005_v19, %v505_v42 }
  0xdc   : > { %533 = vst.msk [vmem:[#allocation3 + $0x10] sm:$0xf] %vm337_vm2, %v523_v35  ;;  %429 = vst.msk [vmem:[#allocation2] sm:$0xf] %vm337_vm2, %v425_v39  ;;  %v428_v46 = vmin.f32 %v424_v40, 6.0  ;;  %v422_v47 = vmax.f32 %v410_v41, 0.0 }
  0xdd   : > { %432 = vst.msk [vmem:[#allocation2 + $0x4] sm:$0xf0] %vm431_vm5, %v425_v39  ;;  %527 = vst.msk [vmem:[#allocation3] sm:$0xf0] %vm431_vm5, %v521_v43  ;;  %v524_v48 = vmin.f32 %v520_v44, 6.0  ;;  %v518_v49 = vmax.f32 %v506_v45, 0.0 }
  0xde   : > { %525 = vst.msk [vmem:[#allocation3] sm:$0xf] %vm337_vm2, %v521_v43  ;;  %442 = vst.msk [vmem:[#allocation2 + $0x30] sm:$0xf] %vm337_vm2, %v428_v46  ;;  %v426_v50 = vmin.f32 %v422_v47, 6.0  ;;  %v830_v43 = vmul.f32 %v1027_v33, %v824_v26 }
  0xdf   : > { %444 = vst.msk [vmem:[#allocation2 + $0x34] sm:$0xf0] %vm431_vm5, %v428_v46  ;;  %539 = vst.msk [vmem:[#allocation3 + $0x18] sm:$0xf0] %vm431_vm5, %v524_v48  ;;  %v522_v52 = vmin.f32 %v518_v49, 6.0 }
  0xe0   : > { %537 = vst.msk [vmem:[#allocation3 + $0x18] sm:$0xf] %vm337_vm2, %v524_v48  ;;  %434 = vst.msk [vmem:[#allocation2 + $0x10] sm:$0xf] %vm337_vm2, %v426_v50 }
  0xe1   : > { %436 = vst.msk [vmem:[#allocation2 + $0x14] sm:$0xf0] %vm431_vm5, %v426_v50  ;;  %v699_v53 = vld [vmem:[#allocation2 + $0x20] sm:$0xf]  ;;  %531 = vst.msk [vmem:[#allocation3 + $0x8] sm:$0xf0] %vm431_vm5, %v522_v52 }
  0xe2   : > { %529 = vst.msk [vmem:[#allocation3 + $0x8] sm:$0xf] %vm337_vm2, %v522_v52  ;;  %v705_v55 = vmul.f32 %v1030_v51, %v699_v53  ;;  %v715_v56 = vld [vmem:[#allocation2 + $0x21] sm:$0xf]  ;;  %v723_v62 = vld [vmem:[#allocation2 + $0x28] sm:$0xf] }
  0xe3   : > { %v707_v58 = vld [vmem:[#allocation3 + $0x10] sm:$0xf]  ;;  %v541_v61 = vld [vmem:[#allocation2] sm:$0xf]  ;;  %v721_v2 = vmul.f32 %v1221_v57, %v715_v56  ;;  %v731_v6 = vld [vmem:[#allocation3 + $0x14] sm:$0xf]  ;;  %v729_v10 = vmul.f32 %v1226_v59, %v723_v62 }
  0xe4   : > { %v713_v60 = vmul.f32 %v1031_v54, %v707_v58  ;;  %v547_v63 = vmul.f32 %v1030_v51, %v541_v61  ;;  %v557_v0 = vld [vmem:[#allocation2 + $0x1] sm:$0xf]  ;;  %v565_v8 = vld [vmem:[#allocation2 + $0x8] sm:$0xf]  ;;  %v573_v18 = vld [vmem:[#allocation3 + $0x4] sm:$0xf]  ;;  %v737_v22 = vmul.f32 %v1232_v7, %v731_v6 }
  0xe5   : > { %v549_v1 = vld [vmem:[#allocation3] sm:$0xf]  ;;  %v775_v5 = vld [vmem:[#allocation2 + $0x30] sm:$0xf]  ;;  %v563_v13 = vmul.f32 %v1221_v57, %v557_v0  ;;  %v571_v23 = vmul.f32 %v1226_v59, %v565_v8  ;;  %v579_v37 = vmul.f32 %v1232_v7, %v573_v18  ;;  %v1028_v52 = vld [vmem:[%s1284_s4 + $0x7] ss:$0 sm:$0xff] }
  0xe6   : > { %v714_v3 = vadd.f32 %v713_v60, %v705_v55  ;;  %v555_v4 = vmul.f32 %v1031_v54, %v549_v1  ;;  %v781_v9 = vmul.f32 %v1030_v51, %v775_v5  ;;  %v791_v15 = vld [vmem:[#allocation2 + $0x31] sm:$0xf]  ;;  %v739_v17 = vld [vmem:[#allocation2 + $0x29] sm:$0xf]  ;;  %v799_v25 = vld [vmem:[#allocation2 + $0x38] sm:$0xf] }
  0xe7   : > { %v783_v16 = vld [vmem:[#allocation3 + $0x18] sm:$0xf]  ;;  %v623_v20 = vld [vmem:[#allocation2 + $0x10] sm:$0xf]  ;;  %v581_v27 = vld [vmem:[#allocation2 + $0x9] sm:$0xf]  ;;  %v797_v29 = vmul.f32 %v1221_v57, %v791_v15  ;;  %v745_v34 = vmul.f32 %v1238_v11, %v739_v17  ;;  %v805_v40 = vmul.f32 %v1226_v59, %v799_v25 }
  0xe8   : > { %v722_v12 = vadd.f32 %v721_v2, %v714_v3  ;;  %v556_v14 = vadd.f32 %v555_v4, %v547_v63  ;;  %v789_v19 = vmul.f32 %v1031_v54, %v783_v16  ;;  %v747_v28 = vld [vmem:[#allocation2 + $0x30] sm:$0xf]  ;;  %v629_v31 = vmul.f32 %v1030_v51, %v623_v20  ;;  %v807_v38 = vld [vmem:[#allocation3 + $0x1c] sm:$0xf]  ;;  %v755_v41 = vld [vmem:[#allocation3 + $0x18] sm:$0xf] }
  0xe9   : > { %v631_v32 = vld [vmem:[#allocation3 + $0x8] sm:$0xf]  ;;  %v587_v46 = vmul.f32 %v1238_v11, %v581_v27  ;;  %v753_v49 = vmul.f32 %v1027_v33, %v747_v28  ;;  %v815_v50 = vld [vmem:[#allocation2 + $0x39] sm:$0xf]  ;;  %v813_v56 = vmul.f32 %v1232_v7, %v807_v38  ;;  %v761_v62 = vmul.f32 %v1028_v52, %v755_v41  ;;  %v833_v63 = vld [vmem:[#allocation3 + $0x20] sm:$0xf] }
  0xea   : > { %v730_v21 = vadd.f32 %v729_v10, %v722_v12  ;;  %v564_v24 = vadd.f32 %v563_v13, %v556_v14  ;;  %v790_v30 = vadd.f32 %v789_v19, %v781_v9  ;;  %v639_v39 = vld [vmem:[#allocation2 + $0x11] sm:$0xf]  ;;  %v637_v45 = vmul.f32 %v1031_v54, %v631_v32  ;;  %v647_v51 = vld [vmem:[#allocation2 + $0x18] sm:$0xf]  ;;  %v1029_v3 = vld [vmem:[%s1284_s4 + $0x8] ss:$0 sm:$0xff] }
  0xeb   : > { %v589_v44 = vld [vmem:[#allocation2 + $0x10] sm:$0xf]  ;;  %v645_v58 = vmul.f32 %v1221_v57, %v639_v39  ;;  %v655_v2 = vld [vmem:[#allocation3 + $0xc] sm:$0xf]  ;;  %v821_v4 = vmul.f32 %v1238_v11, %v815_v50  ;;  %v653_v8 = vmul.f32 %v1226_v59, %v647_v51  ;;  %v841_v12 = vld [vmem:[#allocation2 + $0x41] sm:$0xf]  ;;  %v839_v18 = vmul.f32 %v1028_v52, %v833_v63 }
  0xec   : > { %v738_v35 = vadd.f32 %v737_v22, %v730_v21  ;;  %v572_v36 = vadd.f32 %v571_v23, %v564_v24  ;;  %v798_v42 = vadd.f32 %v797_v29, %v790_v30  ;;  %v763_v53 = vld [vmem:[#allocation2 + $0x31] sm:$0xf]  ;;  %v638_v61 = vadd.f32 %v637_v45, %v629_v31  ;;  %v663_v14 = vld [vmem:[#allocation2 + $0x19] sm:$0xf]  ;;  %v1020_v16 = vld [vmem:[%s1285_s5] ss:$0 sm:$0xff] }
  0xed   : > { %v597_v60 = vld [vmem:[#allocation3 + $0x8] sm:$0xf]  ;;  %v595_v1 = vmul.f32 %v1027_v33, %v589_v44  ;;  %v769_v57 = vmul.f32 %v1029_v3, %v763_v53  ;;  %v661_v20 = vmul.f32 %v1232_v7, %v655_v2  ;;  %v671_v21 = vld [vmem:[#allocation2 + $0x20] sm:$0xf]  ;;  %v847_v25 = vmul.f32 %v1029_v3, %v841_v12  ;;  %v679_v28 = vld [vmem:[#allocation3 + $0x10] sm:$0xf] }
  0xee   : > { %v580_v47 = vadd.f32 %v579_v37, %v572_v36  ;;  %v746_v48 = vadd.f32 %v745_v34, %v738_v35  ;;  %v806_v55 = vadd.f32 %v805_v40, %v798_v42  ;;  %v605_v6 = vld [vmem:[#allocation2 + $0x11] sm:$0xf]  ;;  %v646_v9 = vadd.f32 %v645_v58, %v638_v61  ;;  %v687_v35 = vld [vmem:[#allocation2 + $0x21] sm:$0xf]  ;;  %v1048_v53 = vld [vmem:[%s1287_s7] ss:$0 sm:$0xff] }
  0xef   : > { %v603_v15 = vmul.f32 %v1028_v52, %v597_v60  ;;  %v611_v23 = vmul.f32 %v1029_v3, %v605_v6  ;;  %v669_v26 = vmul.f32 %v1238_v11, %v663_v14  ;;  %v677_v31 = vmul.f32 %v1027_v33, %v671_v21 }
  0xf0   : > { %v754_v54 = vadd.f32 %v753_v49, %v746_v48  ;;  %v588_v0 = vadd.f32 %v587_v46, %v580_v47  ;;  %v814_v5 = vadd.f32 %v813_v56, %v806_v55  ;;  %v654_v19 = vadd.f32 %v653_v8, %v646_v9 }
  0xf1   : > { %v685_v38 = vmul.f32 %v1028_v52, %v679_v28  ;;  %v693_v42 = vmul.f32 %v1029_v3, %v687_v35 }
  0xf2   : > { %v762_v10 = vadd.f32 %v761_v62, %v754_v54  ;;  %v596_v13 = vadd.f32 %v595_v1, %v588_v0  ;;  %v822_v17 = vadd.f32 %v821_v4, %v814_v5  ;;  %v662_v27 = vadd.f32 %v661_v20, %v654_v19 }
  0xf4   : > { %v770_v22 = vadd.f32 %v769_v57, %v762_v10  ;;  %v604_v59 = vadd.f32 %v603_v15, %v596_v13  ;;  %v831_v24 = vadd.f32 %v830_v43, %v822_v17  ;;  %v670_v34 = vadd.f32 %v669_v26, %v662_v27 }
  0xf6   : > { %v771_v29 = vadd.f32 %v1020_v16, %v770_v22  ;;  %v612_v30 = vadd.f32 %v611_v23, %v604_v59  ;;  %v840_v32 = vadd.f32 %v839_v18, %v831_v24  ;;  %v678_v39 = vadd.f32 %v677_v31, %v670_v34 }
  0xf8   : > { %v772_v36 = vmax.f32 %v771_v29, 0.0  ;;  %v619_v37 = vadd.f32 %v1020_v16, %v612_v30  ;;  %v848_v7 = vadd.f32 %v847_v25, %v840_v32  ;;  %v686_v43 = vadd.f32 %v685_v38, %v678_v39 }
  0xfa   : > { %v773_v40 = vmin.f32 %v772_v36, 6.0  ;;  %v620_v41 = vmax.f32 %v619_v37, 0.0  ;;  %v849_v44 = vadd.f32 %v1020_v16, %v848_v7  ;;  %v694_v45 = vadd.f32 %v693_v42, %v686_v43 }
  0xfc   : > { %774 = vst.msk [vmem:[#allocation4 + $0x8] sm:$0xf] %vm337_vm2, %v773_v40  ;;  %v621_v11 = vmin.f32 %v620_v41, 6.0  ;;  %v850_v46 = vmax.f32 %v849_v44, 0.0  ;;  %v695_v33 = vadd.f32 %v1020_v16, %v694_v45 }
  0xfe   : > { %622 = vst.msk [vmem:[#allocation4] sm:$0xf] %vm337_vm2, %v621_v11  ;;  %v851_v47 = vmin.f32 %v850_v46, 6.0  ;;  %v696_v48 = vmax.f32 %v695_v33, 0.0 }
 0x100   : > { %852 = vst.msk [vmem:[#allocation4 + $0xc] sm:$0xf] %vm337_vm2, %v851_v47  ;;  %v697_v49 = vmin.f32 %v696_v48, 6.0 }
 0x102   : > { %698 = vst.msk [vmem:[#allocation4 + $0x4] sm:$0xf] %vm337_vm2, %v697_v49 }
 0x107   : > { %v854_v51 = vld [vmem:[#allocation4 + $0x8] sm:$0xff] }
 0x109   : > { %v853_v50 = vld [vmem:[#allocation4] sm:$0xff] }
 0x10a   : > { %v855_v52 = vpack.c.bf16 %v854_v51, %v853_v50 }
 0x10c   : > { %1083 = vmatmul.mubr.msk.bf16.vlgmr.msra.gmra.mxu0 %vm879_vm6, %v855_v52 }
 0x1cc   : > { %v917_v55 = vpop.f32.mrf.mxu0 }
 0x1cd   : > { %v918_v56 = vadd.f32 %v1048_v53, %v917_v55 }
 0x1ce   : > { %v1084_v58 = vpop.f32.mrf.mxu0 }
 0x1cf   : > { %925 = vst.msk [vmem:[%s325_s9] sm:$0xff] %vm924_vm7, %v918_v56 }
 0x1d0   : > { %v920_v60 = vpop.f32.mrf.mxu0 }
 0x1d1   : > { %v921_v61 = vadd.f32 %v1048_v53, %v920_v60 }
 0x1d2   : > { %v1085_v54 = vpop.f32.mrf.mxu0 }
 0x1d3   : > { %926 = vst.msk [vmem:[%s325_s9 + $0x8] sm:$0xff] %vm924_vm7, %v921_v61 }
 0x1d4 PF: > { %s18_s27 = sadd.s32 1, %s1106_s27  }
 0x1d5   : > { %p15_p4 = scmp.ge.s32.totalorder %s18_s27, 4  }
 0x1d7   :  { %17 = sbr.rel (!%p15_p4) target bundleno = 1 (0x1), region = 101 }

// kernel: _lambda_.9
= control target key start
LH: loop header
LB: loop body
LE: loop exit
PB: predicated region body
PF: predicated region fallthrough
CT: control target
= control target key end

     0   :  { %13 = vsyncpa [#allocation6], 0  ;;  %s1212_s0 = inlined_call_operand.vmem [shape: f32[2,8,16], index: 0, kind: input, shape index: {}]   ;;  %s1213_s1 = inlined_call_operand.vmem [shape: f32[2,8,16], index: 1, kind: input, shape index: {}]   ;;  %s1214_s2 = inlined_call_operand.vmem [shape: bf16[16,64], index: 2, kind: input, shape index: {}]   ;;  %s1215_s3 = inlined_call_operand.vmem [shape: f32[1,64], index: 3, kind: input, shape index: {}, may-alias: {3,5}]   ;;  %s1216_s4 = inlined_call_operand.vmem [shape: f32[9,64], index: 4, kind: input, shape index: {}]   ;;  %s1217_s5 = inlined_call_operand.vmem [shape: f32[1,64], index: 5, kind: input, shape index: {}, may-alias: {3,5}]   ;;  %s1218_s6 = inlined_call_operand.vmem [shape: bf16[64,24], index: 6, kind: input, shape index: {}]   ;;  %s1219_s7 = inlined_call_operand.vmem [shape: f32[1,24], index: 7, kind: input, shape index: {}]   ;;  %s1220_s8 = inlined_call_operand.hbm [shape: f32[2,4,24], index: 8, kind: output, shape index: {}]  }
   0x1   :  { %15 = vsyncpa [#allocation6 + $0x1], 0  ;;  %s1038_s27 = smov 0   ;;  %s1040_s28 = smov 0  }
   0x2   :  { %s1042_s29 = smov 0   ;;  %s1044_s30 = smov 0  }
   0x3 LB: > { %s1059_s9 = sadd.s32 4294967295, %s988_s30   ;;  %s806_s10 = sadd.s32 4294967294, %s988_s30   ;;  %s988_s30 = sphi %s1044_s30, %s1226_s30   ;;  %s984_s29 = sphi %s1042_s29, %s1225_s29   ;;  %s980_s28 = sphi %s1040_s28, %s1224_s28   ;;  %s976_s27 = sphi %s1038_s27, %s1223_s27  }
   0x4   : > { %s1063_s11 = sadd.s32 1, %s988_s30   ;;  %s206_s12 = sadd.s32 1, %s984_s29 }
   0x5   : > { %s203_s13 = ssub.s32 %s988_s30, %s1063_s11  ;;  %p216_p0 = scmp.ne.s32.totalorder %s984_s29, %s980_s28 }
   0x6   : > { %p204_p1 = scmp.eq.s32.totalorder %s203_s13, 0  ;;  %p217_p2 = scmp.eq.s32.totalorder %s1059_s9, 1 }
   0x7   : > { %p222_p3 = scmp.ne.s32.totalorder %s980_s28, %s976_s27  ;;  %p223_p4 = scmp.eq.s32.totalorder %s806_s10, 1 }
   0x8   : > { %s1074_s14 = scalar_select %p204_p1, %s984_s29, %s206_s12  }
   0x9   : > { %p1076_p5 = por %p217_p2, %p216_p0  ;;  %p1080_p6 = por %p223_p4, %p222_p3 }
   0xa   : > { %p809_p7 = scmp.ge.s32.totalorder %s988_s30, 1  ;;  %p273_p8 = scmp.lt.s32.totalorder %s988_s30, 3 }
   0xc   : > { %p274_p9 = pnand %p809_p7, %p273_p8 }
   0xd   : > { %p310_p10 = scmp.lt.s32.totalorder (!%p274_p9), %s1059_s9, 1  ;;  %s845_s24 = sshll.u32 (!%p274_p9), %s1059_s9, 6 }
   0xe   : > { %277 = sbr.rel (%p274_p9) target bundleno = 486 (0x1e6), region = 52  ;;  %s1171_s13 = scalar_lea.hbm (!%p274_p9), %s1220_s8, %s845_s24 }
   0xf   : > { %s992_s18 = smov (!%p274_p9), [#allocation5]  }
  0x13   : > { %v922_v0 = vld [vmem:[%s1214_s2] sm:$0xff]   ;;  %v990_v1 = vmov 0.0   ;;  %vm991_vm0 = vmmov 0   ;;  %vm319_vm1 = vcmask 518144   ;;  %vm325_vm2 = vcmask 517120   ;;  %s311_s19 = scalar_select %p310_p10, %s1059_s9, 1 }
  0x14   : > { %857 = vmatprep.subr.bf16.mxu1 %v990_v1  ;;  %869 = vmatprep.subr.bf16.mxu0 %v990_v1  ;;  %320 = vst.msk [vmem:[#allocation2] sm:$0x7] %vm319_vm1, %v990_v1  ;;  %321 = vst.msk [vmem:[#allocation2 + $0x4] sm:$0x7] %vm319_vm1, %v990_v1  ;;  %vm348_vm3 = vcmask 130048   ;;  %v923_v3 = vld [vmem:[%s1214_s2] sm:$0xff]  }
  0x15   : > { %858 = vmatpush3.bf16.msra.mxu1 %v922_v0  ;;  %859 = vmatprep.mubr.msk.bf16.mxu1 %vm991_vm0, %v990_v1  ;;  %322 = vst.msk [vmem:[#allocation2 + $0x8] sm:$0x7] %vm319_vm1, %v990_v1  ;;  %323 = vst.msk [vmem:[#allocation2 + $0xc] sm:$0x7] %vm319_vm1, %v990_v1  ;;  %s811_s20 = sshll.u32 %s311_s19, 3  ;;  %v924_v7 = vld [vmem:[%s1218_s6 + $0x18] sm:$0xff]  }
  0x16   : > { %863 = vmatprep.subr.bf16.mxu1 %v990_v1  ;;  %324 = vst.msk [vmem:[#allocation2 + $0x10] sm:$0x7] %vm319_vm1, %v990_v1  ;;  %877 = vmatprep.mubr.msk.bf16.mxu0 %vm991_vm0, %v990_v1  ;;  %s313_s23 = scalar_lea.vmem %s1212_s0, %s811_s20  ;;  %s317_s12 = scalar_lea.vmem %s1213_s1, %s811_s20  ;;  %v925_v8 = vld [vmem:[%s1218_s6 + $0x10] sm:$0xff]   ;;  %v926_v9 = vld [vmem:[%s1218_s6 + $0x8] sm:$0xff]   ;;  %v927_v10 = vld [vmem:[%s1218_s6] sm:$0xff]   ;;  %vm396_vm4 = vcmask 519170  }
  0x17   : > { %330 = vst.msk [vmem:[#allocation3 + $0x8] sm:$0x3] %vm325_vm2, %v990_v1  ;;  %326 = vst.msk [vmem:[#allocation3] sm:$0x3] %vm325_vm2, %v990_v1  ;;  %v331_v2 = vld [vmem:[%s313_s23] sm:$0xff]  ;;  %870 = vmatpush3.bf16.msra.mxu0 %v924_v7  ;;  %vm399_vm5 = vcmask 521220  }
  0x18   : > { %327 = vst.msk [vmem:[#allocation3 + $0x2] sm:$0x3] %vm325_vm2, %v990_v1  ;;  %328 = vst.msk [vmem:[#allocation3 + $0x4] sm:$0x3] %vm325_vm2, %v990_v1  ;;  %v332_v4 = vpack.c.bf16 %v331_v2, %v331_v2  ;;  %v404_v5 = vld [vmem:[%s317_s12] sm:$0xff]  ;;  %871 = vmatprep.subr.bf16.mxu0 %v990_v1  ;;  %vm402_vm6 = vcmask 523270  }
  0x19   : > { %329 = vst.msk [vmem:[#allocation3 + $0x6] sm:$0x3] %vm325_vm2, %v990_v1  ;;  %v405_v6 = vpack.c.bf16 %v404_v5, %v404_v5  ;;  %v813_v11 = vld [vmem:[%s1215_s3] ss:$0 sm:$0xff]  ;;  %v820_v28 = vld [vmem:[%s1216_s4 + $0x1] ss:$0 sm:$0xff] }
  0x1a   : > { %860 = vmatmul.mubr.msk.bf16.vlgmr.msra.gmra.mxu1 %vm348_vm3, %v332_v4  ;;  %v819_v27 = vld [vmem:[%s1216_s4] ss:$0 sm:$0xff]  ;;  %v821_v31 = vld [vmem:[%s1216_s4 + $0x2] ss:$0 sm:$0xff]  ;;  %v822_v38 = vld [vmem:[%s1216_s4 + $0x3] ss:$0 sm:$0xff] }
  0x1b   : > { %864 = vmatpush3.bf16.msra.mxu1 %v923_v3  ;;  %865 = vmatprep.mubr.msk.bf16.mxu1 %vm991_vm0, %v990_v1  ;;  %v823_v46 = vld [vmem:[%s1216_s4 + $0x4] ss:$0 sm:$0xff]  ;;  %v824_v52 = vld [vmem:[%s1216_s4 + $0x5] ss:$0 sm:$0xff]  ;;  %v825_v60 = vld [vmem:[%s1216_s4 + $0x6] ss:$0 sm:$0xff] }
  0x1c   : > { %872 = vmatpush3.bf16.msra.mxu0 %v925_v8  ;;  %v826_v4 = vld [vmem:[%s1216_s4 + $0x7] ss:$0 sm:$0xff]  ;;  %vm675_vm7 = vcmask 523264   ;;  %s307_s20 = sand.u32 1, %s980_s28   ;;  %vm719_vm8 = vcmask 191488   ;;  %s932_s19 = sshll.u32 %s992_s18, 4  ;;  %s933_s19 = int_to_ptr.vmem [resolvable:$false] %s932_s19 }
  0x1d   : > { %873 = vmatprep.subr.bf16.mxu0 %v990_v1  ;;  %v605_v58 = vld [vmem:[#allocation2 + $0x10] sm:$0x3]  ;;  %s810_s21 = sshll.u32 %s307_s20, 2  ;;  %s722_s17 = scalar_lea.sflag [#allocation6], %s307_s20 }
  0x1e   : > { %s309_s25 = scalar_lea.vmem [#allocation5], %s810_s21  ;;  %s934_s21 = scalar_lea.vmem %s933_s19, 128 }
  0x1f   : > { %s735_s26 = sshll.u32 %s309_s25, 4  ;;  %s1173_s26 = int_to_ptr.vmem [resolvable:$true] %s735_s26 }
  0x20   : > { %874 = vmatpush3.bf16.msra.mxu0 %v926_v9  ;;  %v622_v9 = vld [vmem:[#allocation2 + $0x11] sm:$0x3]  ;;  %s928_s9 = scalar_lea.vmem %s1173_s26, 64  ;;  %p935_p0 = scmp.lt.s32.totalorder %s1173_s26, %s933_s19 }
  0x21   : > { %875 = vmatprep.subr.bf16.mxu0 %v990_v1  ;;  %v614_v1 = vld [vmem:[#allocation3 + $0x8] sm:$0x3]  ;;  %p929_p11 = scmp.ne.s32.totalorder %s1173_s26, %s928_s9  ;;  %p936_p1 = scmp.lt.s32.totalorder %s934_s21, %s928_s9 }
  0x22   : > { %866 = vmatmul.mubr.msk.bf16.vlgmr.msra.gmra.mxu1 %vm348_vm3, %v405_v6  ;;  %v611_v6 = vmul.f32 %v825_v60, %v605_v58 }
  0x23   : > { %p930_p12 = pnand %p929_p11, %p1076_p5  ;;  %p937_p2 = por %p936_p1, %p935_p0 }
  0x24   : > { %876 = vmatpush3.bf16.msra.mxu0 %v927_v10 }
  0x25   : > { %p931_p13 = pneg %p930_p12 }
  0x27   : > { %p938_p3 = pnand %p937_p2, %p931_p13 }
  0xda   : > { %v386_v12 = vpop.f32.mrf.mxu1 }
  0xdb   : > { %v387_v13 = vadd.f32 %v813_v11, %v386_v12 }
  0xdc   : > { %v861_v14 = vpop.f32.mrf.mxu1 }
  0xdd   : > { %v392_v15 = vmax.f32 %v387_v13, 0.0  ;;  %v620_v13 = vmul.f32 %v826_v4, %v614_v1 }
  0xde   : > { %v389_v16 = vpop.f32.mrf.mxu1 }
  0xdf   : > { %v393_v17 = vmin.f32 %v392_v15, 6.0 }
  0xe0   : > { %v862_v18 = vpop.f32.mrf.mxu1 }
  0xe1   : > { %394 = vst.msk [vmem:[#allocation2] sm:$0x3] %vm325_vm2, %v393_v17 }
  0xe2   : > { %397 = vst.msk [vmem:[#allocation2 + $0x2] sm:$0xc] %vm396_vm4, %v393_v17  ;;  %v458_v19 = vpop.f32.mrf.mxu1 }
  0xe3   : > { %400 = vst.msk [vmem:[#allocation2 + $0x4] sm:$0x30] %vm399_vm5, %v393_v17  ;;  %v459_v20 = vadd.f32 %v813_v11, %v458_v19  ;;  %v827_v11 = vld [vmem:[%s1216_s4 + $0x8] ss:$0 sm:$0xff] }
  0xe4   : > { %403 = vst.msk [vmem:[#allocation2 + $0x6] sm:$0xc0] %vm402_vm6, %v393_v17  ;;  %v867_v21 = vpop.f32.mrf.mxu1  ;;  %v628_v17 = vmul.f32 %v827_v11, %v622_v9 }
  0xe5   : > { %v464_v22 = vmax.f32 %v459_v20, 0.0  ;;  %v828_v20 = vld [vmem:[%s1217_s5] ss:$0 sm:$0xff] }
  0xe6   : > { %v461_v23 = vpop.f32.mrf.mxu1 }
  0xe7   : > { %v465_v24 = vmin.f32 %v464_v22, 6.0 }
  0xe8   : > { %v868_v25 = vpop.f32.mrf.mxu1  ;;  %v474_v26 = vld [vmem:[#allocation2] sm:$0x3] }
  0xe9   : > { %466 = vst.msk [vmem:[#allocation3] sm:$0x3] %vm325_vm2, %v465_v24  ;;  %v490_v30 = vld [vmem:[#allocation2 + $0x1] sm:$0x3]  ;;  %v480_v33 = vmul.f32 %v819_v27, %v474_v26  ;;  %v498_v37 = vld [vmem:[#allocation2 + $0x4] sm:$0x3] }
  0xea   : > { %468 = vst.msk [vmem:[#allocation3] sm:$0xc] %vm396_vm4, %v465_v24  ;;  %v556_v29 = vld [vmem:[#allocation2 + $0x8] sm:$0x3]  ;;  %v496_v41 = vmul.f32 %v821_v31, %v490_v30  ;;  %v504_v48 = vmul.f32 %v822_v38, %v498_v37  ;;  %v514_v51 = vld [vmem:[#allocation2 + $0x5] sm:$0x3] }
  0xeb   : > { %470 = vst.msk [vmem:[#allocation3] sm:$0x30] %vm399_vm5, %v465_v24  ;;  %v572_v34 = vld [vmem:[#allocation2 + $0x9] sm:$0x3]  ;;  %v562_v39 = vmul.f32 %v819_v27, %v556_v29  ;;  %v580_v42 = vld [vmem:[#allocation2 + $0xc] sm:$0x3]  ;;  %v520_v63 = vmul.f32 %v824_v52, %v514_v51 }
  0xec   : > { %472 = vst.msk [vmem:[#allocation3] sm:$0xc0] %vm402_vm6, %v465_v24  ;;  %v578_v44 = vmul.f32 %v821_v31, %v572_v34  ;;  %v586_v53 = vmul.f32 %v822_v38, %v580_v42  ;;  %v596_v55 = vld [vmem:[#allocation2 + $0xd] sm:$0x3]  ;;  %v522_v59 = vld [vmem:[#allocation2 + $0x8] sm:$0x3] }
  0xed   : > { %v602_v2 = vmul.f32 %v824_v52, %v596_v55  ;;  %v528_v7 = vmul.f32 %v825_v60, %v522_v59  ;;  %v538_v10 = vld [vmem:[#allocation2 + $0x9] sm:$0x3] }
  0xee   : > { %v544_v18 = vmul.f32 %v827_v11, %v538_v10 }
  0xf0   : > { %v482_v32 = vld [vmem:[#allocation3] sm:$0x3] }
  0xf1   : > { %v488_v35 = vmul.f32 %v820_v28, %v482_v32  ;;  %v506_v45 = vld [vmem:[#allocation3 + $0x2] sm:$0x3]  ;;  %v838_v32 = vld [vmem:[%s1219_s7] ss:$0 sm:$0xff] }
  0xf2   : > { %v564_v36 = vld [vmem:[#allocation3 + $0x4] sm:$0x3]  ;;  %v512_v57 = vmul.f32 %v823_v46, %v506_v45 }
  0xf3   : > { %v570_v40 = vmul.f32 %v820_v28, %v564_v36  ;;  %v489_v43 = vadd.f32 %v488_v35, %v480_v33  ;;  %v588_v50 = vld [vmem:[#allocation3 + $0x6] sm:$0x3]  ;;  %v530_v3 = vld [vmem:[#allocation3 + $0x4] sm:$0x3] }
  0xf4   : > { %v594_v62 = vmul.f32 %v823_v46, %v588_v50  ;;  %v536_v15 = vmul.f32 %v826_v4, %v530_v3 }
  0xf5   : > { %v571_v47 = vadd.f32 %v570_v40, %v562_v39  ;;  %v497_v49 = vadd.f32 %v496_v41, %v489_v43 }
  0xf7   : > { %v579_v54 = vadd.f32 %v578_v44, %v571_v47  ;;  %v505_v56 = vadd.f32 %v504_v48, %v497_v49 }
  0xf9   : > { %v587_v61 = vadd.f32 %v586_v53, %v579_v54  ;;  %v513_v0 = vadd.f32 %v512_v57, %v505_v56 }
  0xfb   : > { %v595_v5 = vadd.f32 %v594_v62, %v587_v61  ;;  %v521_v8 = vadd.f32 %v520_v63, %v513_v0 }
  0xfd   : > { %v603_v12 = vadd.f32 %v602_v2, %v595_v5  ;;  %v529_v14 = vadd.f32 %v528_v7, %v521_v8 }
  0xff   : > { %v612_v16 = vadd.f32 %v611_v6, %v603_v12  ;;  %v537_v19 = vadd.f32 %v536_v15, %v529_v14 }
 0x101   : > { %v621_v21 = vadd.f32 %v620_v13, %v612_v16  ;;  %v545_v22 = vadd.f32 %v544_v18, %v537_v19 }
 0x103   : > { %v629_v23 = vadd.f32 %v628_v17, %v621_v21  ;;  %v552_v24 = vadd.f32 %v828_v20, %v545_v22 }
 0x105   : > { %v630_v25 = vadd.f32 %v828_v20, %v629_v23  ;;  %v553_v26 = vmax.f32 %v552_v24, 0.0 }
 0x107   : > { %v631_v27 = vmax.f32 %v630_v25, 0.0  ;;  %v554_v28 = vmin.f32 %v553_v26, 6.0 }
 0x109   : > { %v632_v29 = vmin.f32 %v631_v27, 6.0  ;;  %555 = vst.msk [vmem:[#allocation4] sm:$0x3] %vm325_vm2, %v554_v28 }
 0x10b   : > { %633 = vst.msk [vmem:[#allocation4 + $0x2] sm:$0x3] %vm325_vm2, %v632_v29 }
 0x112   : > { %v634_v30 = vld [vmem:[#allocation4] sm:$0xf] }
 0x113   : > { %v635_v31 = vpack.c.bf16 %v634_v30, %v634_v30 }
 0x115   : > { %878 = vmatmul.mubr.msk.bf16.vlgmr.msra.gmra.mxu0 %vm675_vm7, %v635_v31 }
 0x1d5   : > { %v713_v33 = vpop.f32.mrf.mxu0 }
 0x1d6   : > { %v714_v34 = vadd.f32 %v838_v32, %v713_v33 }
 0x1d7   : > { %v879_v35 = vpop.f32.mrf.mxu0 }
 0x1d8   : > { %720 = vst.msk [vmem:[%s309_s25] sm:$0xf] %vm719_vm8, %v714_v34 }
 0x1d9   : > { %v716_v36 = vpop.f32.mrf.mxu0 }
 0x1da   : > { %941 = shalt.err (!%p938_p3)
}
 0x1db   : > { %s942_s22 = scalar_lea.hbm %s1171_s13, 64  ;;  %s946_s24 = scalar_lea.hbm %s1220_s8, 128 }
 0x1dc   : > { %p943_p4 = scmp.ne.s32.totalorder %s1171_s13, %s942_s22  ;;  %p947_p9 = scmp.lt.s32.totalorder %s1171_s13, %s1220_s8 }
 0x1dd   : > { %p948_p10 = scmp.lt.s32.totalorder %s946_s24, %s942_s22 }
 0x1de   : > { %p944_p7 = pnand %p943_p4, %p1076_p5 }
 0x1df   : > { %p949_p11 = por %p948_p10, %p947_p9 }
 0x1e0   : > { %p945_p8 = pneg %p944_p7 }
 0x1e2   : > { %p950_p12 = pnand %p949_p11, %p945_p8 }
 0x1e4   : > { %953 = shalt.err (!%p950_p12)
}
 0x1e5   : > { %881 = dma.vmem_to_hbm [thread:$0]  (%p1076_p5), %s1173_s26, 64, %s1171_s13, %s722_s17   ;;  %v880_v37 = vpop.f32.mrf.mxu0 }
 0x1e6 PF: > { %p887_p13 = scmp.ge.s32.totalorder %s988_s30, 2  ;;  %s747_s12 = sand.u32 1, %s976_s27  }
 0x1e7   : > { %s748_s9 = scalar_lea.sflag [#allocation6], %s747_s12 }
 0x1e8   : > { %p884_p0 = pnand %p887_p13, %p1080_p6 }
 0x1ea   : > { %p885_p1 = pneg %p884_p0 }
 0x1ec   : > { %971 = dma.done.wait (%p885_p1), %s748_s9, 64  }
 0x1ed   : > { %973 = vsyncadd (%p885_p1), %s748_s9, 4294967232  ;;  %p18_p2 = scmp.ge.s32.totalorder %s1063_s11, 4   ;;  %s1223_s27 = smov %s980_s28 }
 0x1ee   : > { %s1224_s28 = smov %s984_s29  ;;  %s1225_s29 = smov %s1074_s14 }
 0x1ef   : > { %s1226_s30 = smov %s1063_s11  ;;  %20 = sbr.rel (!%p18_p2) target bundleno = 3 (0x3), region = 98 }
 0x1f4   :  { %753 = vsyncpa [#allocation6], 1 }
 0x1f5   :  { %755 = vsyncpa [#allocation6 + $0x1], 1 }

</bundles_post_ra>
